<compile_context>
chip_gen: v7x
topology: tpu7x:2x2x1
jax: 0.10.0
libtpu: 0.0.40
codegen_flags: <defaults>
</compile_context>

<pallas_src>
import functools
import math

import numpy as np
import jax
import jax.numpy as jnp
from jax import lax
from jax.experimental import pallas as pl
from jax.experimental.pallas import tpu as pltpu

BF16 = jnp.bfloat16
_VMEM_LIMIT = 40 * 1024 * 1024          # v7x-safe (64 MiB/TC physical)
_BUFFERED1 = [False]                    # set in __main__ by _detect_buffered1()


# ----------------------------- in-kernel helpers -----------------------------

def _mm_t(a, w):
    # a: (S, d_in), w: (d_out, d_in) -> (S, d_out); bf16 inputs, f32 MXU accumulation.
    return lax.dot_general(a, w, (((1,), (1,)), ((), ())),
                           preferred_element_type=jnp.float32)


def _rmsnorm_f32(x_f32, gamma, eps=1e-5):
    ms = jnp.mean(x_f32 * x_f32, axis=-1, keepdims=True)
    return x_f32 * lax.rsqrt(ms + eps) * gamma


def _wspec(shape, index_map):
    """BlockSpec for weights whose block index is constant over the whole grid.

    Single-buffered when supported: the default double-buffer would just hold a
    second pointless copy of every weight in VMEM."""
    if _BUFFERED1[0]:
        return pl.BlockSpec(shape, index_map, pipeline_mode=pl.Buffered(1))
    return pl.BlockSpec(shape, index_map)


def _detect_buffered1():
    """Feature-test pl.Buffered(1) on a constant-index input; fall back if unsupported."""
    if not hasattr(pl, "Buffered"):
        return False

    def _k(x_ref, o_ref):
        o_ref[...] = x_ref[...] * 2.0

    try:
        x = jnp.arange(8 * 128, dtype=jnp.float32).reshape(8, 128)
        y = pl.pallas_call(
            _k,
            out_shape=jax.ShapeDtypeStruct((16, 256), jnp.float32),
            grid=(2, 2),
            in_specs=[pl.BlockSpec((8, 128), lambda i, j: (0, 0),
                                   pipeline_mode=pl.Buffered(1))],
            out_specs=pl.BlockSpec((8, 128), lambda i, j: (i, j)),
            compiler_params=pltpu.CompilerParams(
                dimension_semantics=("parallel", "arbitrary")),
        )(x)
        y = jax.block_until_ready(y)
        return bool(jnp.allclose(y, jnp.tile(2.0 * x, (2, 2))))
    except Exception:
        return False


# ------------------------------ Pallas kernels --------------------------------

def qkv_rope_kernel(x_ref, gamma_ref, wqkv_ref, sin_ref, cos_ref,
                    q_ref, k_ref, v_ref, *, num_heads, d_k):
    """RMSNorm + fused QKV projection + full-width RoPE for one (batch, row-tile).

    Q/K are written in a per-head-contiguous [x1 || x2] layout so the attention
    kernel can do a single depth-d_k score contraction per head."""
    x = x_ref[0].astype(jnp.float32)              # (ts, D)
    D = x.shape[-1]
    Dh = D // 2
    half = d_k // 2

    xn = _rmsnorm_f32(x, gamma_ref[...]).astype(BF16)
    qkv = _mm_t(xn, wqkv_ref[...])                # (ts, 3D) f32
    q, k, v = qkv[:, :D], qkv[:, D:2 * D], qkv[:, 2 * D:]

    # Full-width rotate-half RoPE: Wq/Wk rows were permuted so columns [0, D/2)
    # hold every head's even ("x1") dims and [D/2, D) the odd ("x2") dims;
    # sin/cos are head-tiled (ts, D/2) tables.  1/sqrt(d_k) folded into Wq.
    sin = sin_ref[...]
    cos = cos_ref[...]
    qa, qb = q[:, :Dh], q[:, Dh:]
    ka, kb = k[:, :Dh], k[:, Dh:]
    qra = qa * cos - qb * sin
    qrb = qa * sin + qb * cos
    kra = ka * cos - kb * sin
    krb = ka * sin + kb * cos

    # One-time relayout: head h occupies columns [h*d_k, (h+1)*d_k) as [x1||x2].
    q_parts, k_parts = [], []
    for h in range(num_heads):
        hs = slice(h * half, (h + 1) * half)
        q_parts += [qra[:, hs], qrb[:, hs]]
        k_parts += [kra[:, hs], krb[:, hs]]
    q_ref[0] = jnp.concatenate(q_parts, axis=-1).astype(BF16)
    k_ref[0] = jnp.concatenate(k_parts, axis=-1).astype(BF16)
    v_ref[0] = v.astype(BF16)


def attn_kernel(qr_ref, kr_ref, v_ref, x_ref, wo_ref, y_ref,
                acc_ref, m_ref, l_ref, *, num_heads, d_k):
    """Flash-style causal attention + fused output projection + residual.

    grid = (B, n_q_tiles, n_kv_tiles), kv innermost ("arbitrary").  KV tiles that
    lie entirely above the causal diagonal are skipped (no MXU/softmax work)."""
    i = pl.program_id(1)
    j = pl.program_id(2)

    @pl.when(j == 0)
    def _init():
        m_ref[...] = jnp.full(m_ref.shape, -jnp.inf, jnp.float32)
        l_ref[...] = jnp.zeros(l_ref.shape, jnp.float32)
        acc_ref[...] = jnp.zeros(acc_ref.shape, jnp.float32)

    @pl.when(j <= i)                      # causal skip (kv tile size == q tile size)
    def _compute():
        qr = qr_ref[0]                    # (tq, D) bf16
        kr = kr_ref[0]                    # (tk, D) bf16
        v = v_ref[0]                      # (tk, D) bf16
        tq = qr.shape[0]
        tk = kr.shape[0]
        row = lax.broadcasted_iota(jnp.int32, (tq, tk), 0) + i * tq
        col = lax.broadcasted_iota(jnp.int32, (tq, tk), 1) + j * tk
        mask = row >= col
        for h in range(num_heads):
            hs = slice(h * d_k, (h + 1) * d_k)
            s = _mm_t(qr[:, hs], kr[:, hs])       # ONE depth-d_k contraction / head
            s = jnp.where(mask, s, -1e30)         # finite mask value (no NaN risk)
            m_prev = m_ref[h]                     # (tq, 1)
            l_prev = l_ref[h]
            m_new = jnp.maximum(m_prev, jnp.max(s, axis=-1, keepdims=True))
            alpha = jnp.exp(m_prev - m_new)
            p = jnp.exp(s - m_new)
            l_ref[h] = alpha * l_prev + jnp.sum(p, axis=-1, keepdims=True)
            m_ref[h] = m_new
            pv = jnp.dot(p.astype(BF16), v[:, hs],
                         preferred_element_type=jnp.float32)
            acc_ref[:, hs] = alpha * acc_ref[:, hs] + pv

    @pl.when(j == i)                      # diagonal tile is the last needed one
    def _finalize():
        for h in range(num_heads):
            hs = slice(h * d_k, (h + 1) * d_k)
            inv = pl.reciprocal(l_ref[h], approx=True)    # EUP, not VPU divide
            acc_ref[:, hs] = acc_ref[:, hs] * inv
        merged = acc_ref[...].astype(BF16)                # (tq, D), no concatenates
        attn = _mm_t(merged, wo_ref[...])                 # fused Wo over all heads
        y_ref[0] = (x_ref[0].astype(jnp.float32) + attn).astype(y_ref.dtype)


def ffn_kernel(y_ref, gamma_ref, w1_ref, w3_ref, w2_ref, o_ref, yn_ref, acc_ref):
    """RMSNorm + SwiGLU FFN + residual, tiled over dff (innermost grid axis)."""
    f = pl.program_id(2)
    nf = pl.num_programs(2)

    @pl.when(f == 0)
    def _init():
        y = y_ref[0].astype(jnp.float32)
        yn_ref[...] = _rmsnorm_f32(y, gamma_ref[...]).astype(BF16)   # cached norm
        acc_ref[...] = jnp.zeros(acc_ref.shape, jnp.float32)

    yn = yn_ref[...]
    h1 = _mm_t(yn, w1_ref[...])                  # (ts, f_tile) f32
    h3 = _mm_t(yn, w3_ref[...])
    # TODO(synk): on v6e/v7x the SwiGLU gate could run in packed bf16; keep f32 (v5e-safe).
    g = (h1 * jax.nn.sigmoid(h1) * h3).astype(BF16)
    acc_ref[...] += _mm_t(g, w2_ref[...])        # accumulate (ts, D) over dff tiles

    @pl.when(f == nf - 1)
    def _finalize():
        o_ref[0] = (y_ref[0].astype(jnp.float32) + acc_ref[...]).astype(o_ref.dtype)


def lm_head_kernel(x_ref, gamma_ref, wout_ref, o_ref, xn_ref):
    """Final RMSNorm (cached per row tile) + vocab-tiled LM head projection."""
    @pl.when(pl.program_id(2) == 0)
    def _norm():
        xn_ref[...] = _rmsnorm_f32(x_ref[0].astype(jnp.float32),
                                   gamma_ref[...]).astype(BF16)
    o_ref[0] = _mm_t(xn_ref[...], wout_ref[...]).astype(o_ref.dtype)


# ------------------------------ wrappers ---------------------------------------

def qkv_call(x, gamma2d, wqkv, sinT, cosT, *, num_heads, d_k, s_tile):
    B, S, D = x.shape
    Dh = D // 2
    ns = S // s_tile
    kernel = functools.partial(qkv_rope_kernel, num_heads=num_heads, d_k=d_k)
    return pl.pallas_call(
        kernel,
        out_shape=tuple(jax.ShapeDtypeStruct((B, S, D), BF16) for _ in range(3)),
        grid=(B, ns),
        in_specs=[
            pl.BlockSpec((1, s_tile, D), lambda b, s: (b, s, 0)),
            _wspec((1, D), lambda b, s: (0, 0)),
            _wspec((3 * D, D), lambda b, s: (0, 0)),
            pl.BlockSpec((s_tile, Dh), lambda b, s: (s, 0)),
            pl.BlockSpec((s_tile, Dh), lambda b, s: (s, 0)),
        ],
        out_specs=tuple(pl.BlockSpec((1, s_tile, D), lambda b, s: (b, s, 0))
                        for _ in range(3)),
        compiler_params=pltpu.CompilerParams(
            dimension_semantics=("parallel", "parallel"),
            vmem_limit_bytes=_VMEM_LIMIT),
    )(x, gamma2d, wqkv, sinT, cosT)


def attn_call(x, qr, kr, v, wo, *, num_heads, d_k, q_tile):
    B, S, D = x.shape
    nq = S // q_tile
    kernel = functools.partial(attn_kernel, num_heads=num_heads, d_k=d_k)
    return pl.pallas_call(
        kernel,
        out_shape=jax.ShapeDtypeStruct((B, S, D), BF16),
        grid=(B, nq, nq),
        in_specs=[
            pl.BlockSpec((1, q_tile, D), lambda b, i, j: (b, i, 0)),   # q (rotated)
            pl.BlockSpec((1, q_tile, D), lambda b, i, j: (b, j, 0)),   # k (rotated)
            pl.BlockSpec((1, q_tile, D), lambda b, i, j: (b, j, 0)),   # v
            pl.BlockSpec((1, q_tile, D), lambda b, i, j: (b, i, 0)),   # residual x
            _wspec((D, D), lambda b, i, j: (0, 0)),                    # Wo
        ],
        out_specs=pl.BlockSpec((1, q_tile, D), lambda b, i, j: (b, i, 0)),
        scratch_shapes=[
            pltpu.VMEM((q_tile, D), jnp.float32),            # attention accumulator
            pltpu.VMEM((num_heads, q_tile, 1), jnp.float32),  # running max
            pltpu.VMEM((num_heads, q_tile, 1), jnp.float32),  # running denom
        ],
        compiler_params=pltpu.CompilerParams(
            dimension_semantics=("parallel", "parallel", "arbitrary"),
            vmem_limit_bytes=_VMEM_LIMIT),
    )(qr, kr, v, x, wo)


def ffn_call(y, gamma2d, w1, w3, w2, *, s_tile, f_tile):
    B, S, D = y.shape
    dff = w1.shape[0]
    ns, nf = S // s_tile, dff // f_tile
    return pl.pallas_call(
        ffn_kernel,
        out_shape=jax.ShapeDtypeStruct((B, S, D), BF16),
        grid=(B, ns, nf),
        in_specs=[
            pl.BlockSpec((1, s_tile, D), lambda b, s, f: (b, s, 0)),
            _wspec((1, D), lambda b, s, f: (0, 0)),
            pl.BlockSpec((f_tile, D), lambda b, s, f: (f, 0)),
            pl.BlockSpec((f_tile, D), lambda b, s, f: (f, 0)),
            pl.BlockSpec((D, f_tile), lambda b, s, f: (0, f)),
        ],
        out_specs=pl.BlockSpec((1, s_tile, D), lambda b, s, f: (b, s, 0)),
        scratch_shapes=[
            pltpu.VMEM((s_tile, D), BF16),          # cached normalized activations
            pltpu.VMEM((s_tile, D), jnp.float32),   # FFN output accumulator
        ],
        compiler_params=pltpu.CompilerParams(
            dimension_semantics=("parallel", "parallel", "arbitrary"),
            vmem_limit_bytes=_VMEM_LIMIT),
    )(y, gamma2d, w1, w3, w2)


def head_call(x, gamma2d, wout, *, s_tile, v_tile):
    B, S, D = x.shape
    V = wout.shape[0]
    ns, nv = S // s_tile, V // v_tile
    return pl.pallas_call(
        lm_head_kernel,
        out_shape=jax.ShapeDtypeStruct((B, S, V), jnp.float32),
        grid=(B, ns, nv),
        in_specs=[
            pl.BlockSpec((1, s_tile, D), lambda b, s, j: (b, s, 0)),
            _wspec((1, D), lambda b, s, j: (0, 0)),
            pl.BlockSpec((v_tile, D), lambda b, s, j: (j, 0)),
        ],
        out_specs=pl.BlockSpec((1, s_tile, v_tile), lambda b, s, j: (b, s, j)),
        scratch_shapes=[pltpu.VMEM((s_tile, D), BF16)],
        compiler_params=pltpu.CompilerParams(
            dimension_semantics=("parallel", "parallel", "arbitrary"),
            vmem_limit_bytes=_VMEM_LIMIT),
    )(x, gamma2d, wout)


def transformer_lm_forward(ids, packed, sinT, cosT, *, num_heads, d_k,
                           q_tile, s_tile, f_tile, v_tile):
    # TODO(synk): token-id embedding gather stays in plain JAX (jnp.take).
    x = jnp.take(packed["emb"], ids, axis=0).astype(BF16)        # (B, S, D)
    # TODO(synk): cross-pallas_call prefetch of the next layer's weights would hide
    #             weight DMA at decode-style shapes; not implemented here.
    for L in packed["layers"]:
        qr, kr, v = qkv_call(x, L["gamma2d"], L["wqkv"], sinT, cosT,
                             num_heads=num_heads, d_k=d_k, s_tile=s_tile)
        y = attn_call(x, qr, kr, v, L["wo"],
                      num_heads=num_heads, d_k=d_k, q_tile=q_tile)
        x = ffn_call(y, L["gamma2d"], L["w1"], L["w3"], L["w2"],
                     s_tile=s_tile, f_tile=f_tile)
    return head_call(x, packed["gamma_f2d"], packed["wout"],
                     s_tile=s_tile, v_tile=v_tile)


# --------------------------- params / packing ----------------------------------

def trunc_normal(key, shape, fan_in, fan_out):
    std = math.sqrt(2.0 / (fan_in + fan_out))
    return std * jax.random.truncated_normal(key, -3.0, 3.0, shape, dtype=jnp.float32)


def make_params(key, vocab, num_layers, d_model, dff, num_heads, d_k):
    keys = jax.random.split(key, 2 + 7 * num_layers)
    emb = trunc_normal(keys[0], (vocab, d_model), vocab, d_model)
    wout = trunc_normal(keys[1], (vocab, d_model), d_model, vocab)
    layers = []
    for i in range(num_layers):
        k = keys[2 + 7 * i: 2 + 7 * (i + 1)]
        layers.append(dict(
            wq=trunc_normal(k[0], (d_model, d_model), d_model, d_model),
            wk=trunc_normal(k[1], (d_model, d_model), d_model, d_model),
            wv=trunc_normal(k[2], (d_model, d_model), d_model, d_model),
            wo=trunc_normal(k[3], (d_model, d_model), d_model, d_model),
            w1=trunc_normal(k[4], (dff, d_model), d_model, dff),
            w2=trunc_normal(k[5], (d_model, dff), dff, d_model),
            w3=trunc_normal(k[6], (dff, d_model), d_model, dff),
            gamma=jnp.ones((d_model,), jnp.float32),
        ))
    return dict(emb=emb, wout=wout, layers=layers,
                gamma_f=jnp.ones((d_model,), jnp.float32))


def pack_params(raw, *, num_heads, d_k):
    """Permute / stack / scale / bf16-cast weights for the kernels."""
    evens = np.concatenate([h * d_k + np.arange(0, d_k, 2) for h in range(num_heads)])
    odds = np.concatenate([h * d_k + np.arange(1, d_k, 2) for h in range(num_heads)])
    perm = np.concatenate([evens, odds])         # global rotate-half layout for Q/K
    scale = 1.0 / math.sqrt(d_k)                 # folded into Wq

    layers = []
    for L in raw["layers"]:
        wqkv = jnp.concatenate([scale * L["wq"][perm], L["wk"][perm], L["wv"]], axis=0)
        layers.append(dict(
            wqkv=wqkv.astype(BF16),
            wo=L["wo"].astype(BF16),
            w1=L["w1"].astype(BF16),
            w3=L["w3"].astype(BF16),
            w2=L["w2"].astype(BF16),
            gamma2d=L["gamma"].reshape(1, -1),
        ))
    return dict(emb=raw["emb"], layers=layers,
                gamma_f2d=raw["gamma_f"].reshape(1, -1),
                wout=raw["wout"].astype(BF16))


def make_rope_tables(d_k, theta, max_seq_len):
    pos_k = jnp.arange(d_k // 2, dtype=jnp.float32)
    pos_i = jnp.arange(max_seq_len, dtype=jnp.float32)
    theta_k = theta ** (-2.0 * pos_k / d_k)
    angles = pos_i[:, None] * theta_k[None, :]
    return jnp.sin(angles), jnp.cos(angles)


def _pick_tile(n, target, multiple):
    if n <= target:
        return n
    t = (target // multiple) * multiple
    while t >= multiple:
        if n % t == 0:
            return t
        t -= multiple
    return n


# ------------------------------ reference --------------------------------------
# Plain-JAX reference with the same arithmetic contract as the kernels:
# bf16 matmul inputs, f32 accumulation, bf16 inter-kernel activations.

def ref_rmsnorm(x_f32, gamma, eps=1e-5):
    ms = jnp.mean(x_f32 * x_f32, axis=-1, keepdims=True)
    return x_f32 / jnp.sqrt(ms + eps) * gamma


def ref_rope_interleaved(x, sin, cos):
    x1 = x[..., 0::2]
    x2 = x[..., 1::2]
    r1 = x1 * cos - x2 * sin
    r2 = x1 * sin + x2 * cos
    return jnp.stack([r1, r2], axis=-1).reshape(x.shape)


def ref_forward(ids, raw, sin, cos, *, num_heads, d_k):
    f32 = jnp.float32
    scale = 1.0 / math.sqrt(d_k)
    x = raw["emb"][ids].astype(BF16)
    B, S, D = x.shape
    mask = jnp.tril(jnp.ones((S, S), bool))
    for L in raw["layers"]:
        xf = x.astype(f32)
        xn = ref_rmsnorm(xf, L["gamma"]).astype(BF16)
        wq = (scale * L["wq"]).astype(BF16)
        Q = jnp.einsum('bsd,od->bso', xn, wq, preferred_element_type=f32)
        K = jnp.einsum('bsd,od->bso', xn, L["wk"].astype(BF16), preferred_element_type=f32)
        V = jnp.einsum('bsd,od->bso', xn, L["wv"].astype(BF16), preferred_element_type=f32)
        split = lambda t: t.reshape(B, S, num_heads, d_k).transpose(0, 2, 1, 3)
        q, k, v = split(Q), split(K), split(V)
        q = ref_rope_interleaved(q, sin, cos).astype(BF16)
        k = ref_rope_interleaved(k, sin, cos).astype(BF16)
        v = v.astype(BF16)
        scores = jnp.einsum('bhqd,bhkd->bhqk', q, k, preferred_element_type=f32)
        scores = jnp.where(mask, scores, -1e30)
        probs = jax.nn.softmax(scores, axis=-1)
        heads = jnp.einsum('bhqk,bhkd->bhqd', probs.astype(BF16), v,
                           preferred_element_type=f32)
        merged = heads.transpose(0, 2, 1, 3).reshape(B, S, D).astype(BF16)
        attn = jnp.einsum('bsd,od->bso', merged, L["wo"].astype(BF16),
                          preferred_element_type=f32)
        y = (xf + attn).astype(BF16)          # kernel stores y in bf16 between kernels
        yf = y.astype(f32)
        yn = ref_rmsnorm(yf, L["gamma"]).astype(BF16)
        h1 = jnp.einsum('bsd,fd->bsf', yn, L["w1"].astype(BF16), preferred_element_type=f32)
        h3 = jnp.einsum('bsd,fd->bsf', yn, L["w3"].astype(BF16), preferred_element_type=f32)
        g = (h1 * jax.nn.sigmoid(h1) * h3).astype(BF16)
        ffn = jnp.einsum('bsf,df->bsd', g, L["w2"].astype(BF16), preferred_element_type=f32)
        x = (yf + ffn).astype(BF16)
    xn = ref_rmsnorm(x.astype(f32), raw["gamma_f"]).astype(BF16)
    return jnp.einsum('bsd,vd->bsv', xn, raw["wout"].astype(BF16),
                      preferred_element_type=f32)


# ----------------------------------- main ---------------------------------------

if __name__ == "__main__":
    vocab_len = 256
    num_layers = 2
    d_model = 32
    dff = 256
    num_heads = 4
    d_k = d_model // num_heads
    theta = 10000.0
    max_seq_len = 16
    batch = 2
    seq = 16

    _BUFFERED1[0] = _detect_buffered1()

    root = jax.random.PRNGKey(0)
    k_ids, k_params = jax.random.split(root)
    ids = jax.random.randint(k_ids, (batch, seq), 0, vocab_len, dtype=jnp.int32)

    raw = make_params(k_params, vocab_len, num_layers, d_model, dff, num_heads, d_k)
    packed = pack_params(raw, num_heads=num_heads, d_k=d_k)

    sin_full, cos_full = make_rope_tables(d_k, theta, max_seq_len)
    sin, cos = sin_full[:seq], cos_full[:seq]
    sinT = jnp.tile(sin, (1, num_heads))          # head-tiled (S, D/2) RoPE tables
    cosT = jnp.tile(cos, (1, num_heads))

    # Deliberately small tiles so the multi-tile grid paths (causal KV skip,
    # online softmax across kv tiles, dff accumulation, vocab-tile norm cache)
    # are exercised at these toy shapes; at production shapes pick the largest
    # tiles that fit VMEM.
    q_tile = _pick_tile(seq, 8, 8)
    s_tile = _pick_tile(seq, 8, 8)
    f_tile = _pick_tile(dff, 128, 128)
    v_tile = _pick_tile(vocab_len, 128, 128)

    fwd = jax.jit(functools.partial(
        transformer_lm_forward, num_heads=num_heads, d_k=d_k,
        q_tile=q_tile, s_tile=s_tile, f_tile=f_tile, v_tile=v_tile))
    logits = jax.block_until_ready(fwd(ids, packed, sinT, cosT))

    ref = jax.block_until_ready(
        ref_forward(ids, raw, sin, cos, num_heads=num_heads, d_k=d_k))

    assert logits.shape == (batch, seq, vocab_len)
    np.testing.assert_allclose(np.asarray(logits, dtype=np.float32),
                               np.asarray(ref, dtype=np.float32),
                               rtol=2e-2, atol=2e-2)
    print("KERNEL_OK")
</pallas_src>

<mosaic_0001>
module attributes {stable_mosaic.version = 11 : i64} {
  func.func @_k(%arg0: i32, %arg1: i32, %arg2: memref<8x128xf32, #tpu.memory_space<vmem>>, %arg3: memref<8x128xf32, #tpu.memory_space<vmem>>) attributes {dimension_semantics = [#tpu.dimension_semantics<parallel>, #tpu.dimension_semantics<arbitrary>], iteration_bounds = array<i64: 2, 2>, scalar_prefetch = 0 : i64, scratch_operands = 0 : i64, tpu.core_type = #tpu.core_type<tc>, window_params = [{pipeline_mode = #tpu.pipeline_mode<synchronous>, transform_indices = @transform_0, window_bounds = array<i64: 8, 128>}, {transform_indices = @transform_1, window_bounds = array<i64: 8, 128>}]} {
    %c0 = arith.constant 0 : index
    %c0_0 = arith.constant 0 : index
    %0 = vector.load %arg2[%c0, %c0_0] : memref<8x128xf32, #tpu.memory_space<vmem>>, vector<8x128xf32>
    %cst = arith.constant 2.000000e+00 : f32
    %1 = vector.broadcast %cst : f32 to vector<8x128xf32>
    %2 = arith.mulf %0, %1 : vector<8x128xf32>
    %c0_1 = arith.constant 0 : index
    %c0_2 = arith.constant 0 : index
    %3 = vector.load %arg3[%c0_1, %c0_2] : memref<8x128xf32, #tpu.memory_space<vmem>>, vector<8x128xf32>
    tpu.vector_store %arg3[%c0_1, %c0_2], %2 {strides = array<i32>} : memref<8x128xf32, #tpu.memory_space<vmem>>, vector<8x128xf32>,
    return
  }
  func.func @transform_0(%arg0: i32, %arg1: i32) -> (i32, i32) {
    %c0_i32 = arith.constant 0 : i32
    %c0_i32_0 = arith.constant 0 : i32
    %c0_i32_1 = arith.constant 0 : i32
    return %c0_i32, %c0_i32_0 : i32, i32
  }
  func.func @transform_1(%arg0: i32, %arg1: i32) -> (i32, i32) {
    %c0_i32 = arith.constant 0 : i32
    return %arg0, %arg1 : i32, i32
  }
}

module attributes {stable_mosaic.version = 11 : i64} {
  func.func @qkv_rope_kernel(%arg0: i32, %arg1: i32, %arg2: memref<1x8x32xbf16, #tpu.memory_space<vmem>>, %arg3: memref<1x32xf32, #tpu.memory_space<vmem>>, %arg4: memref<96x32xbf16, #tpu.memory_space<vmem>>, %arg5: memref<8x16xf32, #tpu.memory_space<vmem>>, %arg6: memref<8x16xf32, #tpu.memory_space<vmem>>, %arg7: memref<1x8x32xbf16, #tpu.memory_space<vmem>>, %arg8: memref<1x8x32xbf16, #tpu.memory_space<vmem>>, %arg9: memref<1x8x32xbf16, #tpu.memory_space<vmem>>) attributes {dimension_semantics = [#tpu.dimension_semantics<parallel>, #tpu.dimension_semantics<parallel>], iteration_bounds = array<i64: 2, 2>, scalar_prefetch = 0 : i64, scratch_operands = 0 : i64, tpu.core_type = #tpu.core_type<tc>, window_params = [{transform_indices = @transform_0, window_bounds = array<i64: 1, 8, 32>}, {pipeline_mode = #tpu.pipeline_mode<synchronous>, transform_indices = @transform_1, window_bounds = array<i64: 1, 32>}, {pipeline_mode = #tpu.pipeline_mode<synchronous>, transform_indices = @transform_2, window_bounds = array<i64: 96, 32>}, {transform_indices = @transform_3, window_bounds = array<i64: 8, 16>}, {transform_indices = @transform_4, window_bounds = array<i64: 8, 16>}, {transform_indices = @transform_5, window_bounds = array<i64: 1, 8, 32>}, {transform_indices = @transform_6, window_bounds = array<i64: 1, 8, 32>}, {transform_indices = @transform_7, window_bounds = array<i64: 1, 8, 32>}]} {
    %c0 = arith.constant 0 : index
    %c0_0 = arith.constant 0 : index
    %c0_1 = arith.constant 0 : index
    %0 = vector.load %arg2[%c0, %c0_0, %c0_1] : memref<1x8x32xbf16, #tpu.memory_space<vmem>>, vector<1x8x32xbf16>
    %1 = vector.shape_cast %0 : vector<1x8x32xbf16> to vector<8x32xbf16>
    %2 = arith.extf %1 : vector<8x32xbf16> to vector<8x32xf32>
    %c0_2 = arith.constant 0 : index
    %c0_3 = arith.constant 0 : index
    %3 = vector.load %arg3[%c0_2, %c0_3] : memref<1x32xf32, #tpu.memory_space<vmem>>, vector<1x32xf32>
    %4 = arith.mulf %2, %2 : vector<8x32xf32>
    %cst = arith.constant dense<0.000000e+00> : vector<8xf32>
    %5 = vector.multi_reduction <add>, %4, %cst [1] : vector<8x32xf32> to vector<8xf32>
    %6 = vector.shape_cast %5 : vector<8xf32> to vector<8x1xf32>
    %cst_4 = arith.constant 3.200000e+01 : f32
    %7 = vector.broadcast %cst_4 : f32 to vector<8x1xf32>
    %8 = arith.divf %6, %7 : vector<8x1xf32>
    %cst_5 = arith.constant 9.99999974E-6 : f32
    %9 = vector.broadcast %cst_5 : f32 to vector<8x1xf32>
    %10 = arith.addf %8, %9 : vector<8x1xf32>
    %11 = math.rsqrt %10 : vector<8x1xf32>
    %12 = vector.broadcast %11 : vector<8x1xf32> to vector<8x32xf32>
    %13 = arith.mulf %2, %12 : vector<8x32xf32>
    %14 = vector.broadcast %3 : vector<1x32xf32> to vector<8x32xf32>
    %15 = arith.mulf %13, %14 : vector<8x32xf32>
    %16 = arith.truncf %15 : vector<8x32xf32> to vector<8x32xbf16>
    %c0_6 = arith.constant 0 : index
    %c0_7 = arith.constant 0 : index
    %17 = vector.load %arg4[%c0_6, %c0_7] : memref<96x32xbf16, #tpu.memory_space<vmem>>, vector<96x32xbf16>
    %cst_8 = arith.constant dense<0.000000e+00> : vector<8x96xf32>
    %18 = tpu.matmul %16, %17, %cst_8 {dimension_numbers = #tpu.dot_dimension_numbers<[1], [1], [0], [0], [0, 0, 1, 0], [], []>} : vector<8x32xbf16>, vector<96x32xbf16>, vector<8x96xf32> -> vector<8x96xf32>
    %19 = vector.extract_strided_slice %18 {offsets = [0, 0], sizes = [8, 32], strides = [1, 1]} : vector<8x96xf32> to vector<8x32xf32>
    %20 = vector.extract_strided_slice %18 {offsets = [0, 32], sizes = [8, 32], strides = [1, 1]} : vector<8x96xf32> to vector<8x32xf32>
    %21 = vector.extract_strided_slice %18 {offsets = [0, 64], sizes = [8, 32], strides = [1, 1]} : vector<8x96xf32> to vector<8x32xf32>
    %c0_9 = arith.constant 0 : index
    %c0_10 = arith.constant 0 : index
    %22 = vector.load %arg5[%c0_9, %c0_10] : memref<8x16xf32, #tpu.memory_space<vmem>>, vector<8x16xf32>
    %c0_11 = arith.constant 0 : index
    %c0_12 = arith.constant 0 : index
    %23 = vector.load %arg6[%c0_11, %c0_12] : memref<8x16xf32, #tpu.memory_space<vmem>>, vector<8x16xf32>
    %24 = vector.extract_strided_slice %19 {offsets = [0, 0], sizes = [8, 16], strides = [1, 1]} : vector<8x32xf32> to vector<8x16xf32>
    %25 = vector.extract_strided_slice %19 {offsets = [0, 16], sizes = [8, 16], strides = [1, 1]} : vector<8x32xf32> to vector<8x16xf32>
    %26 = vector.extract_strided_slice %20 {offsets = [0, 0], sizes = [8, 16], strides = [1, 1]} : vector<8x32xf32> to vector<8x16xf32>
    %27 = vector.extract_strided_slice %20 {offsets = [0, 16], sizes = [8, 16], strides = [1, 1]} : vector<8x32xf32> to vector<8x16xf32>
    %28 = arith.mulf %24, %23 : vector<8x16xf32>
    %29 = arith.mulf %25, %22 : vector<8x16xf32>
    %30 = arith.subf %28, %29 : vector<8x16xf32>
    %31 = arith.mulf %24, %22 : vector<8x16xf32>
    %32 = arith.mulf %25, %23 : vector<8x16xf32>
    %33 = arith.addf %31, %32 : vector<8x16xf32>
    %34 = arith.mulf %26, %23 : vector<8x16xf32>
    %35 = arith.mulf %27, %22 : vector<8x16xf32>
    %36 = arith.subf %34, %35 : vector<8x16xf32>
    %37 = arith.mulf %26, %22 : vector<8x16xf32>
    %38 = arith.mulf %27, %23 : vector<8x16xf32>
    %39 = arith.addf %37, %38 : vector<8x16xf32>
    %40 = vector.extract_strided_slice %30 {offsets = [0, 0], sizes = [8, 4], strides = [1, 1]} : vector<8x16xf32> to vector<8x4xf32>
    %41 = vector.extract_strided_slice %33 {offsets = [0, 0], sizes = [8, 4], strides = [1, 1]} : vector<8x16xf32> to vector<8x4xf32>
    %42 = vector.extract_strided_slice %36 {offsets = [0, 0], sizes = [8, 4], strides = [1, 1]} : vector<8x16xf32> to vector<8x4xf32>
    %43 = vector.extract_strided_slice %39 {offsets = [0, 0], sizes = [8, 4], strides = [1, 1]} : vector<8x16xf32> to vector<8x4xf32>
    %44 = vector.extract_strided_slice %30 {offsets = [0, 4], sizes = [8, 4], strides = [1, 1]} : vector<8x16xf32> to vector<8x4xf32>
    %45 = vector.extract_strided_slice %33 {offsets = [0, 4], sizes = [8, 4], strides = [1, 1]} : vector<8x16xf32> to vector<8x4xf32>
    %46 = vector.extract_strided_slice %36 {offsets = [0, 4], sizes = [8, 4], strides = [1, 1]} : vector<8x16xf32> to vector<8x4xf32>
    %47 = vector.extract_strided_slice %39 {offsets = [0, 4], sizes = [8, 4], strides = [1, 1]} : vector<8x16xf32> to vector<8x4xf32>
    %48 = vector.extract_strided_slice %30 {offsets = [0, 8], sizes = [8, 4], strides = [1, 1]} : vector<8x16xf32> to vector<8x4xf32>
    %49 = vector.extract_strided_slice %33 {offsets = [0, 8], sizes = [8, 4], strides = [1, 1]} : vector<8x16xf32> to vector<8x4xf32>
    %50 = vector.extract_strided_slice %36 {offsets = [0, 8], sizes = [8, 4], strides = [1, 1]} : vector<8x16xf32> to vector<8x4xf32>
    %51 = vector.extract_strided_slice %39 {offsets = [0, 8], sizes = [8, 4], strides = [1, 1]} : vector<8x16xf32> to vector<8x4xf32>
    %52 = vector.extract_strided_slice %30 {offsets = [0, 12], sizes = [8, 4], strides = [1, 1]} : vector<8x16xf32> to vector<8x4xf32>
    %53 = vector.extract_strided_slice %33 {offsets = [0, 12], sizes = [8, 4], strides = [1, 1]} : vector<8x16xf32> to vector<8x4xf32>
    %54 = vector.extract_strided_slice %36 {offsets = [0, 12], sizes = [8, 4], strides = [1, 1]} : vector<8x16xf32> to vector<8x4xf32>
    %55 = vector.extract_strided_slice %39 {offsets = [0, 12], sizes = [8, 4], strides = [1, 1]} : vector<8x16xf32> to vector<8x4xf32>
    %56 = tpu.concatenate %40, %41, %44, %45, %48, %49, %52, %53 in 1 : vector<8x4xf32>, vector<8x4xf32>, vector<8x4xf32>, vector<8x4xf32>, vector<8x4xf32>, vector<8x4xf32>, vector<8x4xf32>, vector<8x4xf32> -> vector<8x32xf32>
    %57 = arith.truncf %56 : vector<8x32xf32> to vector<8x32xbf16>
    %c0_13 = arith.constant 0 : index
    %c0_14 = arith.constant 0 : index
    %c0_15 = arith.constant 0 : index
    %58 = vector.load %arg7[%c0_13, %c0_14, %c0_15] : memref<1x8x32xbf16, #tpu.memory_space<vmem>>, vector<1x8x32xbf16>
    %59 = vector.shape_cast %58 : vector<1x8x32xbf16> to vector<8x32xbf16>
    %60 = vector.shape_cast %57 : vector<8x32xbf16> to vector<1x8x32xbf16>
    tpu.vector_store %arg7[%c0_13, %c0_14, %c0_15], %60 {strides = array<i32>} : memref<1x8x32xbf16, #tpu.memory_space<vmem>>, vector<1x8x32xbf16>,
    %61 = tpu.concatenate %42, %43, %46, %47, %50, %51, %54, %55 in 1 : vector<8x4xf32>, vector<8x4xf32>, vector<8x4xf32>, vector<8x4xf32>, vector<8x4xf32>, vector<8x4xf32>, vector<8x4xf32>, vector<8x4xf32> -> vector<8x32xf32>
    %62 = arith.truncf %61 : vector<8x32xf32> to vector<8x32xbf16>
    %c0_16 = arith.constant 0 : index
    %c0_17 = arith.constant 0 : index
    %c0_18 = arith.constant 0 : index
    %63 = vector.load %arg8[%c0_16, %c0_17, %c0_18] : memref<1x8x32xbf16, #tpu.memory_space<vmem>>, vector<1x8x32xbf16>
    %64 = vector.shape_cast %63 : vector<1x8x32xbf16> to vector<8x32xbf16>
    %65 = vector.shape_cast %62 : vector<8x32xbf16> to vector<1x8x32xbf16>
    tpu.vector_store %arg8[%c0_16, %c0_17, %c0_18], %65 {strides = array<i32>} : memref<1x8x32xbf16, #tpu.memory_space<vmem>>, vector<1x8x32xbf16>,
    %66 = arith.truncf %21 : vector<8x32xf32> to vector<8x32xbf16>
    %c0_19 = arith.constant 0 : index
    %c0_20 = arith.constant 0 : index
    %c0_21 = arith.constant 0 : index
    %67 = vector.load %arg9[%c0_19, %c0_20, %c0_21] : memref<1x8x32xbf16, #tpu.memory_space<vmem>>, vector<1x8x32xbf16>
    %68 = vector.shape_cast %67 : vector<1x8x32xbf16> to vector<8x32xbf16>
    %69 = vector.shape_cast %66 : vector<8x32xbf16> to vector<1x8x32xbf16>
    tpu.vector_store %arg9[%c0_19, %c0_20, %c0_21], %69 {strides = array<i32>} : memref<1x8x32xbf16, #tpu.memory_space<vmem>>, vector<1x8x32xbf16>,
    return
  }
  func.func @transform_0(%arg0: i32, %arg1: i32) -> (i32, i32, i32) {
    %c0_i32 = arith.constant 0 : i32
    %c0_i32_0 = arith.constant 0 : i32
    return %arg0, %arg1, %c0_i32 : i32, i32, i32
  }
  func.func @transform_1(%arg0: i32, %arg1: i32) -> (i32, i32) {
    %c0_i32 = arith.constant 0 : i32
    %c0_i32_0 = arith.constant 0 : i32
    %c0_i32_1 = arith.constant 0 : i32
    return %c0_i32, %c0_i32_0 : i32, i32
  }
  func.func @transform_2(%arg0: i32, %arg1: i32) -> (i32, i32) {
    %c0_i32 = arith.constant 0 : i32
    %c0_i32_0 = arith.constant 0 : i32
    %c0_i32_1 = arith.constant 0 : i32
    return %c0_i32, %c0_i32_0 : i32, i32
  }
  func.func @transform_3(%arg0: i32, %arg1: i32) -> (i32, i32) {
    %c0_i32 = arith.constant 0 : i32
    %c0_i32_0 = arith.constant 0 : i32
    return %arg1, %c0_i32 : i32, i32
  }
  func.func @transform_4(%arg0: i32, %arg1: i32) -> (i32, i32) {
    %c0_i32 = arith.constant 0 : i32
    %c0_i32_0 = arith.constant 0 : i32
    return %arg1, %c0_i32 : i32, i32
  }
  func.func @transform_5(%arg0: i32, %arg1: i32) -> (i32, i32, i32) {
    %c0_i32 = arith.constant 0 : i32
    %c0_i32_0 = arith.constant 0 : i32
    return %arg0, %arg1, %c0_i32 : i32, i32, i32
  }
  func.func @transform_6(%arg0: i32, %arg1: i32) -> (i32, i32, i32) {
    %c0_i32 = arith.constant 0 : i32
    %c0_i32_0 = arith.constant 0 : i32
    return %arg0, %arg1, %c0_i32 : i32, i32, i32
  }
  func.func @transform_7(%arg0: i32, %arg1: i32) -> (i32, i32, i32) {
    %c0_i32 = arith.constant 0 : i32
    %c0_i32_0 = arith.constant 0 : i32
    return %arg0, %arg1, %c0_i32 : i32, i32, i32
  }
}

module attributes {stable_mosaic.version = 11 : i64} {
  func.func @attn_kernel(%arg0: i32, %arg1: i32, %arg2: i32, %arg3: memref<1x8x32xbf16, #tpu.memory_space<vmem>>, %arg4: memref<1x8x32xbf16, #tpu.memory_space<vmem>>, %arg5: memref<1x8x32xbf16, #tpu.memory_space<vmem>>, %arg6: memref<1x8x32xbf16, #tpu.memory_space<vmem>>, %arg7: memref<32x32xbf16, #tpu.memory_space<vmem>>, %arg8: memref<1x8x32xbf16, #tpu.memory_space<vmem>>, %arg9: memref<8x32xf32, #tpu.memory_space<vmem>>, %arg10: memref<4x8x1xf32, #tpu.memory_space<vmem>>, %arg11: memref<4x8x1xf32, #tpu.memory_space<vmem>>) attributes {dimension_semantics = [#tpu.dimension_semantics<parallel>, #tpu.dimension_semantics<parallel>, #tpu.dimension_semantics<arbitrary>], iteration_bounds = array<i64: 2, 2, 2>, scalar_prefetch = 0 : i64, scratch_operands = 3 : i64, tpu.core_type = #tpu.core_type<tc>, window_params = [{transform_indices = @transform_0, window_bounds = array<i64: 1, 8, 32>}, {transform_indices = @transform_1, window_bounds = array<i64: 1, 8, 32>}, {transform_indices = @transform_2, window_bounds = array<i64: 1, 8, 32>}, {transform_indices = @transform_3, window_bounds = array<i64: 1, 8, 32>}, {pipeline_mode = #tpu.pipeline_mode<synchronous>, transform_indices = @transform_4, window_bounds = array<i64: 32, 32>}, {transform_indices = @transform_5, window_bounds = array<i64: 1, 8, 32>}]} {
    %c0_i32 = arith.constant 0 : i32
    %0 = arith.cmpi eq, %arg2, %c0_i32 : i32
    %1 = arith.extui %0 : i1 to i32
    %c0_i32_0 = arith.constant 0 : i32
    %2 = arith.cmpi ne, %1, %c0_i32_0 : i32
    scf.if %2 {
      %cst = arith.constant 0xFF800000 : f32
      %9 = vector.broadcast %cst : f32 to vector<4x8x1xf32>
      %c0 = arith.constant 0 : index
      %c0_3 = arith.constant 0 : index
      %c0_4 = arith.constant 0 : index
      %10 = vector.load %arg10[%c0, %c0_3, %c0_4] : memref<4x8x1xf32, #tpu.memory_space<vmem>>, vector<4x8x1xf32>
      tpu.vector_store %arg10[%c0, %c0_3, %c0_4], %9 {strides = array<i32>} : memref<4x8x1xf32, #tpu.memory_space<vmem>>, vector<4x8x1xf32>,
      %cst_5 = arith.constant 0.000000e+00 : f32
      %11 = vector.broadcast %cst_5 : f32 to vector<4x8x1xf32>
      %c0_6 = arith.constant 0 : index
      %c0_7 = arith.constant 0 : index
      %c0_8 = arith.constant 0 : index
      %12 = vector.load %arg11[%c0_6, %c0_7, %c0_8] : memref<4x8x1xf32, #tpu.memory_space<vmem>>, vector<4x8x1xf32>
      tpu.vector_store %arg11[%c0_6, %c0_7, %c0_8], %11 {strides = array<i32>} : memref<4x8x1xf32, #tpu.memory_space<vmem>>, vector<4x8x1xf32>,
      %cst_9 = arith.constant 0.000000e+00 : f32
      %13 = vector.broadcast %cst_9 : f32 to vector<8x32xf32>
      %c0_10 = arith.constant 0 : index
      %c0_11 = arith.constant 0 : index
      %14 = vector.load %arg9[%c0_10, %c0_11] : memref<8x32xf32, #tpu.memory_space<vmem>>, vector<8x32xf32>
      tpu.vector_store %arg9[%c0_10, %c0_11], %13 {strides = array<i32>} : memref<8x32xf32, #tpu.memory_space<vmem>>, vector<8x32xf32>,
    } else {
    }
    %3 = arith.cmpi sle, %arg2, %arg1 : i32
    %4 = arith.extui %3 : i1 to i32
    %c0_i32_1 = arith.constant 0 : i32
    %5 = arith.cmpi ne, %4, %c0_i32_1 : i32
    scf.if %5 {
      %c0 = arith.constant 0 : index
      %c0_3 = arith.constant 0 : index
      %c0_4 = arith.constant 0 : index
      %9 = vector.load %arg3[%c0, %c0_3, %c0_4] : memref<1x8x32xbf16, #tpu.memory_space<vmem>>, vector<1x8x32xbf16>
      %10 = vector.shape_cast %9 : vector<1x8x32xbf16> to vector<8x32xbf16>
      %c0_5 = arith.constant 0 : index
      %c0_6 = arith.constant 0 : index
      %c0_7 = arith.constant 0 : index
      %11 = vector.load %arg4[%c0_5, %c0_6, %c0_7] : memref<1x8x32xbf16, #tpu.memory_space<vmem>>, vector<1x8x32xbf16>
      %12 = vector.shape_cast %11 : vector<1x8x32xbf16> to vector<8x32xbf16>
      %c0_8 = arith.constant 0 : index
      %c0_9 = arith.constant 0 : index
      %c0_10 = arith.constant 0 : index
      %13 = vector.load %arg5[%c0_8, %c0_9, %c0_10] : memref<1x8x32xbf16, #tpu.memory_space<vmem>>, vector<1x8x32xbf16>
      %14 = vector.shape_cast %13 : vector<1x8x32xbf16> to vector<8x32xbf16>
      %15 = tpu.iota {dimensions = array<i32: 0>} : vector<8x8xi32>
      %c8_i32 = arith.constant 8 : i32
      %16 = arith.muli %arg1, %c8_i32 : i32
      %17 = vector.broadcast %16 : i32 to vector<8x8xi32>
      %18 = arith.addi %15, %17 : vector<8x8xi32>
      %19 = tpu.iota {dimensions = array<i32: 1>} : vector<8x8xi32>
      %c8_i32_11 = arith.constant 8 : i32
      %20 = arith.muli %arg2, %c8_i32_11 : i32
      %21 = vector.broadcast %20 : i32 to vector<8x8xi32>
      %22 = arith.addi %19, %21 : vector<8x8xi32>
      %23 = arith.cmpi sge, %18, %22 : vector<8x8xi32>
      %24 = vector.extract_strided_slice %10 {offsets = [0, 0], sizes = [8, 8], strides = [1, 1]} : vector<8x32xbf16> to vector<8x8xbf16>
      %25 = vector.extract_strided_slice %12 {offsets = [0, 0], sizes = [8, 8], strides = [1, 1]} : vector<8x32xbf16> to vector<8x8xbf16>
      %cst = arith.constant dense<0.000000e+00> : vector<8x8xf32>
      %26 = tpu.matmul %24, %25, %cst {dimension_numbers = #tpu.dot_dimension_numbers<[1], [1], [0], [0], [0, 0, 1, 0], [], []>} : vector<8x8xbf16>, vector<8x8xbf16>, vector<8x8xf32> -> vector<8x8xf32>
      %cst_12 = arith.constant -1.000000e+30 : f32
      %27 = vector.broadcast %cst_12 : f32 to vector<8x8xf32>
      %28 = arith.select %23, %26, %27 : vector<8x8xi1>, vector<8x8xf32>
      %c0_13 = arith.constant 0 : index
      %c0_14 = arith.constant 0 : index
      %c0_15 = arith.constant 0 : index
      %29 = vector.load %arg10[%c0_13, %c0_14, %c0_15] : memref<4x8x1xf32, #tpu.memory_space<vmem>>, vector<1x8x1xf32>
      %30 = vector.shape_cast %29 : vector<1x8x1xf32> to vector<8x1xf32>
      %c0_16 = arith.constant 0 : index
      %c0_17 = arith.constant 0 : index
      %c0_18 = arith.constant 0 : index
      %31 = vector.load %arg11[%c0_16, %c0_17, %c0_18] : memref<4x8x1xf32, #tpu.memory_space<vmem>>, vector<1x8x1xf32>
      %32 = vector.shape_cast %31 : vector<1x8x1xf32> to vector<8x1xf32>
      %cst_19 = arith.constant dense<0xFF800000> : vector<8xf32>
      %33 = vector.multi_reduction <maximumf>, %28, %cst_19 [1] : vector<8x8xf32> to vector<8xf32>
      %34 = vector.shape_cast %33 : vector<8xf32> to vector<8x1xf32>
      %35 = arith.maximumf %30, %34 : vector<8x1xf32>
      %36 = arith.subf %30, %35 : vector<8x1xf32>
      %37 = math.exp %36 : vector<8x1xf32>
      %38 = vector.broadcast %35 : vector<8x1xf32> to vector<8x8xf32>
      %39 = arith.subf %28, %38 : vector<8x8xf32>
      %40 = math.exp %39 : vector<8x8xf32>
      %41 = arith.mulf %37, %32 : vector<8x1xf32>
      %cst_20 = arith.constant dense<0.000000e+00> : vector<8xf32>
      %42 = vector.multi_reduction <add>, %40, %cst_20 [1] : vector<8x8xf32> to vector<8xf32>
      %43 = vector.shape_cast %42 : vector<8xf32> to vector<8x1xf32>
      %44 = arith.addf %41, %43 : vector<8x1xf32>
      %c0_21 = arith.constant 0 : index
      %c0_22 = arith.constant 0 : index
      %c0_23 = arith.constant 0 : index
      %45 = vector.load %arg11[%c0_21, %c0_22, %c0_23] : memref<4x8x1xf32, #tpu.memory_space<vmem>>, vector<1x8x1xf32>
      %46 = vector.shape_cast %45 : vector<1x8x1xf32> to vector<8x1xf32>
      %47 = vector.shape_cast %44 : vector<8x1xf32> to vector<1x8x1xf32>
      tpu.vector_store %arg11[%c0_21, %c0_22, %c0_23], %47 {strides = array<i32>} : memref<4x8x1xf32, #tpu.memory_space<vmem>>, vector<1x8x1xf32>,
      %c0_24 = arith.constant 0 : index
      %c0_25 = arith.constant 0 : index
      %c0_26 = arith.constant 0 : index
      %48 = vector.load %arg10[%c0_24, %c0_25, %c0_26] : memref<4x8x1xf32, #tpu.memory_space<vmem>>, vector<1x8x1xf32>
      %49 = vector.shape_cast %48 : vector<1x8x1xf32> to vector<8x1xf32>
      %50 = vector.shape_cast %35 : vector<8x1xf32> to vector<1x8x1xf32>
      tpu.vector_store %arg10[%c0_24, %c0_25, %c0_26], %50 {strides = array<i32>} : memref<4x8x1xf32, #tpu.memory_space<vmem>>, vector<1x8x1xf32>,
      %51 = arith.truncf %40 : vector<8x8xf32> to vector<8x8xbf16>
      %52 = vector.extract_strided_slice %14 {offsets = [0, 0], sizes = [8, 8], strides = [1, 1]} : vector<8x32xbf16> to vector<8x8xbf16>
      %cst_27 = arith.constant dense<0.000000e+00> : vector<8x8xf32>
      %53 = tpu.matmul %51, %52, %cst_27 {dimension_numbers = #tpu.dot_dimension_numbers<[1], [0], [0], [1], [0, 0, 1, 1], [], []>} : vector<8x8xbf16>, vector<8x8xbf16>, vector<8x8xf32> -> vector<8x8xf32>
      %c0_28 = arith.constant 0 : index
      %c0_29 = arith.constant 0 : index
      %54 = vector.load %arg9[%c0_28, %c0_29] : memref<8x32xf32, #tpu.memory_space<vmem>>, vector<8x8xf32>
      %55 = vector.broadcast %37 : vector<8x1xf32> to vector<8x8xf32>
      %56 = arith.mulf %55, %54 : vector<8x8xf32>
      %57 = arith.addf %56, %53 : vector<8x8xf32>
      %c0_30 = arith.constant 0 : index
      %c0_31 = arith.constant 0 : index
      %58 = vector.load %arg9[%c0_30, %c0_31] : memref<8x32xf32, #tpu.memory_space<vmem>>, vector<8x8xf32>
      tpu.vector_store %arg9[%c0_30, %c0_31], %57 {strides = array<i32>} : memref<8x32xf32, #tpu.memory_space<vmem>>, vector<8x8xf32>,
      %59 = vector.extract_strided_slice %10 {offsets = [0, 8], sizes = [8, 8], strides = [1, 1]} : vector<8x32xbf16> to vector<8x8xbf16>
      %60 = vector.extract_strided_slice %12 {offsets = [0, 8], sizes = [8, 8], strides = [1, 1]} : vector<8x32xbf16> to vector<8x8xbf16>
      %cst_32 = arith.constant dense<0.000000e+00> : vector<8x8xf32>
      %61 = tpu.matmul %59, %60, %cst_32 {dimension_numbers = #tpu.dot_dimension_numbers<[1], [1], [0], [0], [0, 0, 1, 0], [], []>} : vector<8x8xbf16>, vector<8x8xbf16>, vector<8x8xf32> -> vector<8x8xf32>
      %cst_33 = arith.constant -1.000000e+30 : f32
      %62 = vector.broadcast %cst_33 : f32 to vector<8x8xf32>
      %63 = arith.select %23, %61, %62 : vector<8x8xi1>, vector<8x8xf32>
      %c1 = arith.constant 1 : index
      %c0_34 = arith.constant 0 : index
      %c0_35 = arith.constant 0 : index
      %64 = vector.load %arg10[%c1, %c0_34, %c0_35] : memref<4x8x1xf32, #tpu.memory_space<vmem>>, vector<1x8x1xf32>
      %65 = vector.shape_cast %64 : vector<1x8x1xf32> to vector<8x1xf32>
      %c1_36 = arith.constant 1 : index
      %c0_37 = arith.constant 0 : index
      %c0_38 = arith.constant 0 : index
      %66 = vector.load %arg11[%c1_36, %c0_37, %c0_38] : memref<4x8x1xf32, #tpu.memory_space<vmem>>, vector<1x8x1xf32>
      %67 = vector.shape_cast %66 : vector<1x8x1xf32> to vector<8x1xf32>
      %cst_39 = arith.constant dense<0xFF800000> : vector<8xf32>
      %68 = vector.multi_reduction <maximumf>, %63, %cst_39 [1] : vector<8x8xf32> to vector<8xf32>
      %69 = vector.shape_cast %68 : vector<8xf32> to vector<8x1xf32>
      %70 = arith.maximumf %65, %69 : vector<8x1xf32>
      %71 = arith.subf %65, %70 : vector<8x1xf32>
      %72 = math.exp %71 : vector<8x1xf32>
      %73 = vector.broadcast %70 : vector<8x1xf32> to vector<8x8xf32>
      %74 = arith.subf %63, %73 : vector<8x8xf32>
      %75 = math.exp %74 : vector<8x8xf32>
      %76 = arith.mulf %72, %67 : vector<8x1xf32>
      %cst_40 = arith.constant dense<0.000000e+00> : vector<8xf32>
      %77 = vector.multi_reduction <add>, %75, %cst_40 [1] : vector<8x8xf32> to vector<8xf32>
      %78 = vector.shape_cast %77 : vector<8xf32> to vector<8x1xf32>
      %79 = arith.addf %76, %78 : vector<8x1xf32>
      %c1_41 = arith.constant 1 : index
      %c0_42 = arith.constant 0 : index
      %c0_43 = arith.constant 0 : index
      %80 = vector.load %arg11[%c1_41, %c0_42, %c0_43] : memref<4x8x1xf32, #tpu.memory_space<vmem>>, vector<1x8x1xf32>
      %81 = vector.shape_cast %80 : vector<1x8x1xf32> to vector<8x1xf32>
      %82 = vector.shape_cast %79 : vector<8x1xf32> to vector<1x8x1xf32>
      tpu.vector_store %arg11[%c1_41, %c0_42, %c0_43], %82 {strides = array<i32>} : memref<4x8x1xf32, #tpu.memory_space<vmem>>, vector<1x8x1xf32>,
      %c1_44 = arith.constant 1 : index
      %c0_45 = arith.constant 0 : index
      %c0_46 = arith.constant 0 : index
      %83 = vector.load %arg10[%c1_44, %c0_45, %c0_46] : memref<4x8x1xf32, #tpu.memory_space<vmem>>, vector<1x8x1xf32>
      %84 = vector.shape_cast %83 : vector<1x8x1xf32> to vector<8x1xf32>
      %85 = vector.shape_cast %70 : vector<8x1xf32> to vector<1x8x1xf32>
      tpu.vector_store %arg10[%c1_44, %c0_45, %c0_46], %85 {strides = array<i32>} : memref<4x8x1xf32, #tpu.memory_space<vmem>>, vector<1x8x1xf32>,
      %86 = arith.truncf %75 : vector<8x8xf32> to vector<8x8xbf16>
      %87 = vector.extract_strided_slice %14 {offsets = [0, 8], sizes = [8, 8], strides = [1, 1]} : vector<8x32xbf16> to vector<8x8xbf16>
      %cst_47 = arith.constant dense<0.000000e+00> : vector<8x8xf32>
      %88 = tpu.matmul %86, %87, %cst_47 {dimension_numbers = #tpu.dot_dimension_numbers<[1], [0], [0], [1], [0, 0, 1, 1], [], []>} : vector<8x8xbf16>, vector<8x8xbf16>, vector<8x8xf32> -> vector<8x8xf32>
      %c0_48 = arith.constant 0 : index
      %c8 = arith.constant 8 : index
      %89 = vector.load %arg9[%c0_48, %c8] : memref<8x32xf32, #tpu.memory_space<vmem>>, vector<8x8xf32>
      %90 = vector.broadcast %72 : vector<8x1xf32> to vector<8x8xf32>
      %91 = arith.mulf %90, %89 : vector<8x8xf32>
      %92 = arith.addf %91, %88 : vector<8x8xf32>
      %c0_49 = arith.constant 0 : index
      %c8_50 = arith.constant 8 : index
      %93 = vector.load %arg9[%c0_49, %c8_50] : memref<8x32xf32, #tpu.memory_space<vmem>>, vector<8x8xf32>
      tpu.vector_store %arg9[%c0_49, %c8_50], %92 {strides = array<i32>} : memref<8x32xf32, #tpu.memory_space<vmem>>, vector<8x8xf32>,
      %94 = vector.extract_strided_slice %10 {offsets = [0, 16], sizes = [8, 8], strides = [1, 1]} : vector<8x32xbf16> to vector<8x8xbf16>
      %95 = vector.extract_strided_slice %12 {offsets = [0, 16], sizes = [8, 8], strides = [1, 1]} : vector<8x32xbf16> to vector<8x8xbf16>
      %cst_51 = arith.constant dense<0.000000e+00> : vector<8x8xf32>
      %96 = tpu.matmul %94, %95, %cst_51 {dimension_numbers = #tpu.dot_dimension_numbers<[1], [1], [0], [0], [0, 0, 1, 0], [], []>} : vector<8x8xbf16>, vector<8x8xbf16>, vector<8x8xf32> -> vector<8x8xf32>
      %cst_52 = arith.constant -1.000000e+30 : f32
      %97 = vector.broadcast %cst_52 : f32 to vector<8x8xf32>
      %98 = arith.select %23, %96, %97 : vector<8x8xi1>, vector<8x8xf32>
      %c2 = arith.constant 2 : index
      %c0_53 = arith.constant 0 : index
      %c0_54 = arith.constant 0 : index
      %99 = vector.load %arg10[%c2, %c0_53, %c0_54] : memref<4x8x1xf32, #tpu.memory_space<vmem>>, vector<1x8x1xf32>
      %100 = vector.shape_cast %99 : vector<1x8x1xf32> to vector<8x1xf32>
      %c2_55 = arith.constant 2 : index
      %c0_56 = arith.constant 0 : index
      %c0_57 = arith.constant 0 : index
      %101 = vector.load %arg11[%c2_55, %c0_56, %c0_57] : memref<4x8x1xf32, #tpu.memory_space<vmem>>, vector<1x8x1xf32>
      %102 = vector.shape_cast %101 : vector<1x8x1xf32> to vector<8x1xf32>
      %cst_58 = arith.constant dense<0xFF800000> : vector<8xf32>
      %103 = vector.multi_reduction <maximumf>, %98, %cst_58 [1] : vector<8x8xf32> to vector<8xf32>
      %104 = vector.shape_cast %103 : vector<8xf32> to vector<8x1xf32>
      %105 = arith.maximumf %100, %104 : vector<8x1xf32>
      %106 = arith.subf %100, %105 : vector<8x1xf32>
      %107 = math.exp %106 : vector<8x1xf32>
      %108 = vector.broadcast %105 : vector<8x1xf32> to vector<8x8xf32>
      %109 = arith.subf %98, %108 : vector<8x8xf32>
      %110 = math.exp %109 : vector<8x8xf32>
      %111 = arith.mulf %107, %102 : vector<8x1xf32>
      %cst_59 = arith.constant dense<0.000000e+00> : vector<8xf32>
      %112 = vector.multi_reduction <add>, %110, %cst_59 [1] : vector<8x8xf32> to vector<8xf32>
      %113 = vector.shape_cast %112 : vector<8xf32> to vector<8x1xf32>
      %114 = arith.addf %111, %113 : vector<8x1xf32>
      %c2_60 = arith.constant 2 : index
      %c0_61 = arith.constant 0 : index
      %c0_62 = arith.constant 0 : index
      %115 = vector.load %arg11[%c2_60, %c0_61, %c0_62] : memref<4x8x1xf32, #tpu.memory_space<vmem>>, vector<1x8x1xf32>
      %116 = vector.shape_cast %115 : vector<1x8x1xf32> to vector<8x1xf32>
      %117 = vector.shape_cast %114 : vector<8x1xf32> to vector<1x8x1xf32>
      tpu.vector_store %arg11[%c2_60, %c0_61, %c0_62], %117 {strides = array<i32>} : memref<4x8x1xf32, #tpu.memory_space<vmem>>, vector<1x8x1xf32>,
      %c2_63 = arith.constant 2 : index
      %c0_64 = arith.constant 0 : index
      %c0_65 = arith.constant 0 : index
      %118 = vector.load %arg10[%c2_63, %c0_64, %c0_65] : memref<4x8x1xf32, #tpu.memory_space<vmem>>, vector<1x8x1xf32>
      %119 = vector.shape_cast %118 : vector<1x8x1xf32> to vector<8x1xf32>
      %120 = vector.shape_cast %105 : vector<8x1xf32> to vector<1x8x1xf32>
      tpu.vector_store %arg10[%c2_63, %c0_64, %c0_65], %120 {strides = array<i32>} : memref<4x8x1xf32, #tpu.memory_space<vmem>>, vector<1x8x1xf32>,
      %121 = arith.truncf %110 : vector<8x8xf32> to vector<8x8xbf16>
      %122 = vector.extract_strided_slice %14 {offsets = [0, 16], sizes = [8, 8], strides = [1, 1]} : vector<8x32xbf16> to vector<8x8xbf16>
      %cst_66 = arith.constant dense<0.000000e+00> : vector<8x8xf32>
      %123 = tpu.matmul %121, %122, %cst_66 {dimension_numbers = #tpu.dot_dimension_numbers<[1], [0], [0], [1], [0, 0, 1, 1], [], []>} : vector<8x8xbf16>, vector<8x8xbf16>, vector<8x8xf32> -> vector<8x8xf32>
      %c0_67 = arith.constant 0 : index
      %c16 = arith.constant 16 : index
      %124 = vector.load %arg9[%c0_67, %c16] : memref<8x32xf32, #tpu.memory_space<vmem>>, vector<8x8xf32>
      %125 = vector.broadcast %107 : vector<8x1xf32> to vector<8x8xf32>
      %126 = arith.mulf %125, %124 : vector<8x8xf32>
      %127 = arith.addf %126, %123 : vector<8x8xf32>
      %c0_68 = arith.constant 0 : index
      %c16_69 = arith.constant 16 : index
      %128 = vector.load %arg9[%c0_68, %c16_69] : memref<8x32xf32, #tpu.memory_space<vmem>>, vector<8x8xf32>
      tpu.vector_store %arg9[%c0_68, %c16_69], %127 {strides = array<i32>} : memref<8x32xf32, #tpu.memory_space<vmem>>, vector<8x8xf32>,
      %129 = vector.extract_strided_slice %10 {offsets = [0, 24], sizes = [8, 8], strides = [1, 1]} : vector<8x32xbf16> to vector<8x8xbf16>
      %130 = vector.extract_strided_slice %12 {offsets = [0, 24], sizes = [8, 8], strides = [1, 1]} : vector<8x32xbf16> to vector<8x8xbf16>
      %cst_70 = arith.constant dense<0.000000e+00> : vector<8x8xf32>
      %131 = tpu.matmul %129, %130, %cst_70 {dimension_numbers = #tpu.dot_dimension_numbers<[1], [1], [0], [0], [0, 0, 1, 0], [], []>} : vector<8x8xbf16>, vector<8x8xbf16>, vector<8x8xf32> -> vector<8x8xf32>
      %cst_71 = arith.constant -1.000000e+30 : f32
      %132 = vector.broadcast %cst_71 : f32 to vector<8x8xf32>
      %133 = arith.select %23, %131, %132 : vector<8x8xi1>, vector<8x8xf32>
      %c3 = arith.constant 3 : index
      %c0_72 = arith.constant 0 : index
      %c0_73 = arith.constant 0 : index
      %134 = vector.load %arg10[%c3, %c0_72, %c0_73] : memref<4x8x1xf32, #tpu.memory_space<vmem>>, vector<1x8x1xf32>
      %135 = vector.shape_cast %134 : vector<1x8x1xf32> to vector<8x1xf32>
      %c3_74 = arith.constant 3 : index
      %c0_75 = arith.constant 0 : index
      %c0_76 = arith.constant 0 : index
      %136 = vector.load %arg11[%c3_74, %c0_75, %c0_76] : memref<4x8x1xf32, #tpu.memory_space<vmem>>, vector<1x8x1xf32>
      %137 = vector.shape_cast %136 : vector<1x8x1xf32> to vector<8x1xf32>
      %cst_77 = arith.constant dense<0xFF800000> : vector<8xf32>
      %138 = vector.multi_reduction <maximumf>, %133, %cst_77 [1] : vector<8x8xf32> to vector<8xf32>
      %139 = vector.shape_cast %138 : vector<8xf32> to vector<8x1xf32>
      %140 = arith.maximumf %135, %139 : vector<8x1xf32>
      %141 = arith.subf %135, %140 : vector<8x1xf32>
      %142 = math.exp %141 : vector<8x1xf32>
      %143 = vector.broadcast %140 : vector<8x1xf32> to vector<8x8xf32>
      %144 = arith.subf %133, %143 : vector<8x8xf32>
      %145 = math.exp %144 : vector<8x8xf32>
      %146 = arith.mulf %142, %137 : vector<8x1xf32>
      %cst_78 = arith.constant dense<0.000000e+00> : vector<8xf32>
      %147 = vector.multi_reduction <add>, %145, %cst_78 [1] : vector<8x8xf32> to vector<8xf32>
      %148 = vector.shape_cast %147 : vector<8xf32> to vector<8x1xf32>
      %149 = arith.addf %146, %148 : vector<8x1xf32>
      %c3_79 = arith.constant 3 : index
      %c0_80 = arith.constant 0 : index
      %c0_81 = arith.constant 0 : index
      %150 = vector.load %arg11[%c3_79, %c0_80, %c0_81] : memref<4x8x1xf32, #tpu.memory_space<vmem>>, vector<1x8x1xf32>
      %151 = vector.shape_cast %150 : vector<1x8x1xf32> to vector<8x1xf32>
      %152 = vector.shape_cast %149 : vector<8x1xf32> to vector<1x8x1xf32>
      tpu.vector_store %arg11[%c3_79, %c0_80, %c0_81], %152 {strides = array<i32>} : memref<4x8x1xf32, #tpu.memory_space<vmem>>, vector<1x8x1xf32>,
      %c3_82 = arith.constant 3 : index
      %c0_83 = arith.constant 0 : index
      %c0_84 = arith.constant 0 : index
      %153 = vector.load %arg10[%c3_82, %c0_83, %c0_84] : memref<4x8x1xf32, #tpu.memory_space<vmem>>, vector<1x8x1xf32>
      %154 = vector.shape_cast %153 : vector<1x8x1xf32> to vector<8x1xf32>
      %155 = vector.shape_cast %140 : vector<8x1xf32> to vector<1x8x1xf32>
      tpu.vector_store %arg10[%c3_82, %c0_83, %c0_84], %155 {strides = array<i32>} : memref<4x8x1xf32, #tpu.memory_space<vmem>>, vector<1x8x1xf32>,
      %156 = arith.truncf %145 : vector<8x8xf32> to vector<8x8xbf16>
      %157 = vector.extract_strided_slice %14 {offsets = [0, 24], sizes = [8, 8], strides = [1, 1]} : vector<8x32xbf16> to vector<8x8xbf16>
      %cst_85 = arith.constant dense<0.000000e+00> : vector<8x8xf32>
      %158 = tpu.matmul %156, %157, %cst_85 {dimension_numbers = #tpu.dot_dimension_numbers<[1], [0], [0], [1], [0, 0, 1, 1], [], []>} : vector<8x8xbf16>, vector<8x8xbf16>, vector<8x8xf32> -> vector<8x8xf32>
      %c0_86 = arith.constant 0 : index
      %c24 = arith.constant 24 : index
      %159 = vector.load %arg9[%c0_86, %c24] : memref<8x32xf32, #tpu.memory_space<vmem>>, vector<8x8xf32>
      %160 = vector.broadcast %142 : vector<8x1xf32> to vector<8x8xf32>
      %161 = arith.mulf %160, %159 : vector<8x8xf32>
      %162 = arith.addf %161, %158 : vector<8x8xf32>
      %c0_87 = arith.constant 0 : index
      %c24_88 = arith.constant 24 : index
      %163 = vector.load %arg9[%c0_87, %c24_88] : memref<8x32xf32, #tpu.memory_space<vmem>>, vector<8x8xf32>
      tpu.vector_store %arg9[%c0_87, %c24_88], %162 {strides = array<i32>} : memref<8x32xf32, #tpu.memory_space<vmem>>, vector<8x8xf32>,
    } else {
    }
    %6 = arith.cmpi eq, %arg2, %arg1 : i32
    %7 = arith.extui %6 : i1 to i32
    %c0_i32_2 = arith.constant 0 : i32
    %8 = arith.cmpi ne, %7, %c0_i32_2 : i32
    scf.if %8 {
      %c0 = arith.constant 0 : index
      %c0_3 = arith.constant 0 : index
      %c0_4 = arith.constant 0 : index
      %9 = vector.load %arg11[%c0, %c0_3, %c0_4] : memref<4x8x1xf32, #tpu.memory_space<vmem>>, vector<1x8x1xf32>
      %10 = vector.shape_cast %9 : vector<1x8x1xf32> to vector<8x1xf32>
      %11 = tpu.reciprocal %10 {approx = true} : vector<8x1xf32> -> vector<8x1xf32>
      %c0_5 = arith.constant 0 : index
      %c0_6 = arith.constant 0 : index
      %12 = vector.load %arg9[%c0_5, %c0_6] : memref<8x32xf32, #tpu.memory_space<vmem>>, vector<8x8xf32>
      %13 = vector.broadcast %11 : vector<8x1xf32> to vector<8x8xf32>
      %14 = arith.mulf %12, %13 : vector<8x8xf32>
      %c0_7 = arith.constant 0 : index
      %c0_8 = arith.constant 0 : index
      %15 = vector.load %arg9[%c0_7, %c0_8] : memref<8x32xf32, #tpu.memory_space<vmem>>, vector<8x8xf32>
      tpu.vector_store %arg9[%c0_7, %c0_8], %14 {strides = array<i32>} : memref<8x32xf32, #tpu.memory_space<vmem>>, vector<8x8xf32>,
      %c1 = arith.constant 1 : index
      %c0_9 = arith.constant 0 : index
      %c0_10 = arith.constant 0 : index
      %16 = vector.load %arg11[%c1, %c0_9, %c0_10] : memref<4x8x1xf32, #tpu.memory_space<vmem>>, vector<1x8x1xf32>
      %17 = vector.shape_cast %16 : vector<1x8x1xf32> to vector<8x1xf32>
      %18 = tpu.reciprocal %17 {approx = true} : vector<8x1xf32> -> vector<8x1xf32>
      %c0_11 = arith.constant 0 : index
      %c8 = arith.constant 8 : index
      %19 = vector.load %arg9[%c0_11, %c8] : memref<8x32xf32, #tpu.memory_space<vmem>>, vector<8x8xf32>
      %20 = vector.broadcast %18 : vector<8x1xf32> to vector<8x8xf32>
      %21 = arith.mulf %19, %20 : vector<8x8xf32>
      %c0_12 = arith.constant 0 : index
      %c8_13 = arith.constant 8 : index
      %22 = vector.load %arg9[%c0_12, %c8_13] : memref<8x32xf32, #tpu.memory_space<vmem>>, vector<8x8xf32>
      tpu.vector_store %arg9[%c0_12, %c8_13], %21 {strides = array<i32>} : memref<8x32xf32, #tpu.memory_space<vmem>>, vector<8x8xf32>,
      %c2 = arith.constant 2 : index
      %c0_14 = arith.constant 0 : index
      %c0_15 = arith.constant 0 : index
      %23 = vector.load %arg11[%c2, %c0_14, %c0_15] : memref<4x8x1xf32, #tpu.memory_space<vmem>>, vector<1x8x1xf32>
      %24 = vector.shape_cast %23 : vector<1x8x1xf32> to vector<8x1xf32>
      %25 = tpu.reciprocal %24 {approx = true} : vector<8x1xf32> -> vector<8x1xf32>
      %c0_16 = arith.constant 0 : index
      %c16 = arith.constant 16 : index
      %26 = vector.load %arg9[%c0_16, %c16] : memref<8x32xf32, #tpu.memory_space<vmem>>, vector<8x8xf32>
      %27 = vector.broadcast %25 : vector<8x1xf32> to vector<8x8xf32>
      %28 = arith.mulf %26, %27 : vector<8x8xf32>
      %c0_17 = arith.constant 0 : index
      %c16_18 = arith.constant 16 : index
      %29 = vector.load %arg9[%c0_17, %c16_18] : memref<8x32xf32, #tpu.memory_space<vmem>>, vector<8x8xf32>
      tpu.vector_store %arg9[%c0_17, %c16_18], %28 {strides = array<i32>} : memref<8x32xf32, #tpu.memory_space<vmem>>, vector<8x8xf32>,
      %c3 = arith.constant 3 : index
      %c0_19 = arith.constant 0 : index
      %c0_20 = arith.constant 0 : index
      %30 = vector.load %arg11[%c3, %c0_19, %c0_20] : memref<4x8x1xf32, #tpu.memory_space<vmem>>, vector<1x8x1xf32>
      %31 = vector.shape_cast %30 : vector<1x8x1xf32> to vector<8x1xf32>
      %32 = tpu.reciprocal %31 {approx = true} : vector<8x1xf32> -> vector<8x1xf32>
      %c0_21 = arith.constant 0 : index
      %c24 = arith.constant 24 : index
      %33 = vector.load %arg9[%c0_21, %c24] : memref<8x32xf32, #tpu.memory_space<vmem>>, vector<8x8xf32>
      %34 = vector.broadcast %32 : vector<8x1xf32> to vector<8x8xf32>
      %35 = arith.mulf %33, %34 : vector<8x8xf32>
      %c0_22 = arith.constant 0 : index
      %c24_23 = arith.constant 24 : index
      %36 = vector.load %arg9[%c0_22, %c24_23] : memref<8x32xf32, #tpu.memory_space<vmem>>, vector<8x8xf32>
      tpu.vector_store %arg9[%c0_22, %c24_23], %35 {strides = array<i32>} : memref<8x32xf32, #tpu.memory_space<vmem>>, vector<8x8xf32>,
      %c0_24 = arith.constant 0 : index
      %c0_25 = arith.constant 0 : index
      %37 = vector.load %arg9[%c0_24, %c0_25] : memref<8x32xf32, #tpu.memory_space<vmem>>, vector<8x32xf32>
      %38 = arith.truncf %37 : vector<8x32xf32> to vector<8x32xbf16>
      %c0_26 = arith.constant 0 : index
      %c0_27 = arith.constant 0 : index
      %39 = vector.load %arg7[%c0_26, %c0_27] : memref<32x32xbf16, #tpu.memory_space<vmem>>, vector<32x32xbf16>
      %cst = arith.constant dense<0.000000e+00> : vector<8x32xf32>
      %40 = tpu.matmul %38, %39, %cst {dimension_numbers = #tpu.dot_dimension_numbers<[1], [1], [0], [0], [0, 0, 1, 0], [], []>} : vector<8x32xbf16>, vector<32x32xbf16>, vector<8x32xf32> -> vector<8x32xf32>
      %c0_28 = arith.constant 0 : index
      %c0_29 = arith.constant 0 : index
      %c0_30 = arith.constant 0 : index
      %41 = vector.load %arg6[%c0_28, %c0_29, %c0_30] : memref<1x8x32xbf16, #tpu.memory_space<vmem>>, vector<1x8x32xbf16>
      %42 = vector.shape_cast %41 : vector<1x8x32xbf16> to vector<8x32xbf16>
      %43 = arith.extf %42 : vector<8x32xbf16> to vector<8x32xf32>
      %44 = arith.addf %43, %40 : vector<8x32xf32>
      %45 = arith.truncf %44 : vector<8x32xf32> to vector<8x32xbf16>
      %c0_31 = arith.constant 0 : index
      %c0_32 = arith.constant 0 : index
      %c0_33 = arith.constant 0 : index
      %46 = vector.load %arg8[%c0_31, %c0_32, %c0_33] : memref<1x8x32xbf16, #tpu.memory_space<vmem>>, vector<1x8x32xbf16>
      %47 = vector.shape_cast %46 : vector<1x8x32xbf16> to vector<8x32xbf16>
      %48 = vector.shape_cast %45 : vector<8x32xbf16> to vector<1x8x32xbf16>
      tpu.vector_store %arg8[%c0_31, %c0_32, %c0_33], %48 {strides = array<i32>} : memref<1x8x32xbf16, #tpu.memory_space<vmem>>, vector<1x8x32xbf16>,
    } else {
    }
    return
  }
  func.func @transform_0(%arg0: i32, %arg1: i32, %arg2: i32) -> (i32, i32, i32) {
    %c0_i32 = arith.constant 0 : i32
    %c0_i32_0 = arith.constant 0 : i32
    return %arg0, %arg1, %c0_i32 : i32, i32, i32
  }
  func.func @transform_1(%arg0: i32, %arg1: i32, %arg2: i32) -> (i32, i32, i32) {
    %c0_i32 = arith.constant 0 : i32
    %c0_i32_0 = arith.constant 0 : i32
    return %arg0, %arg2, %c0_i32 : i32, i32, i32
  }
  func.func @transform_2(%arg0: i32, %arg1: i32, %arg2: i32) -> (i32, i32, i32) {
    %c0_i32 = arith.constant 0 : i32
    %c0_i32_0 = arith.constant 0 : i32
    return %arg0, %arg2, %c0_i32 : i32, i32, i32
  }
  func.func @transform_3(%arg0: i32, %arg1: i32, %arg2: i32) -> (i32, i32, i32) {
    %c0_i32 = arith.constant 0 : i32
    %c0_i32_0 = arith.constant 0 : i32
    return %arg0, %arg1, %c0_i32 : i32, i32, i32
  }
  func.func @transform_4(%arg0: i32, %arg1: i32, %arg2: i32) -> (i32, i32) {
    %c0_i32 = arith.constant 0 : i32
    %c0_i32_0 = arith.constant 0 : i32
    %c0_i32_1 = arith.constant 0 : i32
    return %c0_i32, %c0_i32_0 : i32, i32
  }
  func.func @transform_5(%arg0: i32, %arg1: i32, %arg2: i32) -> (i32, i32, i32) {
    %c0_i32 = arith.constant 0 : i32
    %c0_i32_0 = arith.constant 0 : i32
    return %arg0, %arg1, %c0_i32 : i32, i32, i32
  }
}

module attributes {stable_mosaic.version = 11 : i64} {
  func.func @ffn_kernel(%arg0: i32, %arg1: i32, %arg2: i32, %arg3: memref<1x8x32xbf16, #tpu.memory_space<vmem>>, %arg4: memref<1x32xf32, #tpu.memory_space<vmem>>, %arg5: memref<128x32xbf16, #tpu.memory_space<vmem>>, %arg6: memref<128x32xbf16, #tpu.memory_space<vmem>>, %arg7: memref<32x128xbf16, #tpu.memory_space<vmem>>, %arg8: memref<1x8x32xbf16, #tpu.memory_space<vmem>>, %arg9: memref<8x32xbf16, #tpu.memory_space<vmem>>, %arg10: memref<8x32xf32, #tpu.memory_space<vmem>>) attributes {dimension_semantics = [#tpu.dimension_semantics<parallel>, #tpu.dimension_semantics<parallel>, #tpu.dimension_semantics<arbitrary>], iteration_bounds = array<i64: 2, 2, 2>, scalar_prefetch = 0 : i64, scratch_operands = 2 : i64, tpu.core_type = #tpu.core_type<tc>, window_params = [{transform_indices = @transform_0, window_bounds = array<i64: 1, 8, 32>}, {pipeline_mode = #tpu.pipeline_mode<synchronous>, transform_indices = @transform_1, window_bounds = array<i64: 1, 32>}, {transform_indices = @transform_2, window_bounds = array<i64: 128, 32>}, {transform_indices = @transform_3, window_bounds = array<i64: 128, 32>}, {transform_indices = @transform_4, window_bounds = array<i64: 32, 128>}, {transform_indices = @transform_5, window_bounds = array<i64: 1, 8, 32>}]} {
    %c0_i32 = arith.constant 0 : i32
    %0 = arith.cmpi eq, %arg2, %c0_i32 : i32
    %1 = arith.extui %0 : i1 to i32
    %c0_i32_0 = arith.constant 0 : i32
    %2 = arith.cmpi ne, %1, %c0_i32_0 : i32
    scf.if %2 {
      %c0_16 = arith.constant 0 : index
      %c0_17 = arith.constant 0 : index
      %c0_18 = arith.constant 0 : index
      %24 = vector.load %arg3[%c0_16, %c0_17, %c0_18] : memref<1x8x32xbf16, #tpu.memory_space<vmem>>, vector<1x8x32xbf16>
      %25 = vector.shape_cast %24 : vector<1x8x32xbf16> to vector<8x32xbf16>
      %26 = arith.extf %25 : vector<8x32xbf16> to vector<8x32xf32>
      %c0_19 = arith.constant 0 : index
      %c0_20 = arith.constant 0 : index
      %27 = vector.load %arg4[%c0_19, %c0_20] : memref<1x32xf32, #tpu.memory_space<vmem>>, vector<1x32xf32>
      %28 = arith.mulf %26, %26 : vector<8x32xf32>
      %cst_21 = arith.constant dense<0.000000e+00> : vector<8xf32>
      %29 = vector.multi_reduction <add>, %28, %cst_21 [1] : vector<8x32xf32> to vector<8xf32>
      %30 = vector.shape_cast %29 : vector<8xf32> to vector<8x1xf32>
      %cst_22 = arith.constant 3.200000e+01 : f32
      %31 = vector.broadcast %cst_22 : f32 to vector<8x1xf32>
      %32 = arith.divf %30, %31 : vector<8x1xf32>
      %cst_23 = arith.constant 9.99999974E-6 : f32
      %33 = vector.broadcast %cst_23 : f32 to vector<8x1xf32>
      %34 = arith.addf %32, %33 : vector<8x1xf32>
      %35 = math.rsqrt %34 : vector<8x1xf32>
      %36 = vector.broadcast %35 : vector<8x1xf32> to vector<8x32xf32>
      %37 = arith.mulf %26, %36 : vector<8x32xf32>
      %38 = vector.broadcast %27 : vector<1x32xf32> to vector<8x32xf32>
      %39 = arith.mulf %37, %38 : vector<8x32xf32>
      %40 = arith.truncf %39 : vector<8x32xf32> to vector<8x32xbf16>
      %c0_24 = arith.constant 0 : index
      %c0_25 = arith.constant 0 : index
      %41 = vector.load %arg9[%c0_24, %c0_25] : memref<8x32xbf16, #tpu.memory_space<vmem>>, vector<8x32xbf16>
      tpu.vector_store %arg9[%c0_24, %c0_25], %40 {strides = array<i32>} : memref<8x32xbf16, #tpu.memory_space<vmem>>, vector<8x32xbf16>,
      %cst_26 = arith.constant 0.000000e+00 : f32
      %42 = vector.broadcast %cst_26 : f32 to vector<8x32xf32>
      %c0_27 = arith.constant 0 : index
      %c0_28 = arith.constant 0 : index
      %43 = vector.load %arg10[%c0_27, %c0_28] : memref<8x32xf32, #tpu.memory_space<vmem>>, vector<8x32xf32>
      tpu.vector_store %arg10[%c0_27, %c0_28], %42 {strides = array<i32>} : memref<8x32xf32, #tpu.memory_space<vmem>>, vector<8x32xf32>,
    } else {
    }
    %c0 = arith.constant 0 : index
    %c0_1 = arith.constant 0 : index
    %3 = vector.load %arg9[%c0, %c0_1] : memref<8x32xbf16, #tpu.memory_space<vmem>>, vector<8x32xbf16>
    %c0_2 = arith.constant 0 : index
    %c0_3 = arith.constant 0 : index
    %4 = vector.load %arg5[%c0_2, %c0_3] : memref<128x32xbf16, #tpu.memory_space<vmem>>, vector<128x32xbf16>
    %cst = arith.constant dense<0.000000e+00> : vector<8x128xf32>
    %5 = tpu.matmul %3, %4, %cst {dimension_numbers = #tpu.dot_dimension_numbers<[1], [1], [0], [0], [0, 0, 1, 0], [], []>} : vector<8x32xbf16>, vector<128x32xbf16>, vector<8x128xf32> -> vector<8x128xf32>
    %c0_4 = arith.constant 0 : index
    %c0_5 = arith.constant 0 : index
    %6 = vector.load %arg6[%c0_4, %c0_5] : memref<128x32xbf16, #tpu.memory_space<vmem>>, vector<128x32xbf16>
    %cst_6 = arith.constant dense<0.000000e+00> : vector<8x128xf32>
    %7 = tpu.matmul %3, %6, %cst_6 {dimension_numbers = #tpu.dot_dimension_numbers<[1], [1], [0], [0], [0, 0, 1, 0], [], []>} : vector<8x32xbf16>, vector<128x32xbf16>, vector<8x128xf32> -> vector<8x128xf32>
    %8 = arith.negf %5 : vector<8x128xf32>
    %9 = math.exp %8 : vector<8x128xf32>
    %cst_7 = arith.constant 1.000000e+00 : f32
    %10 = vector.broadcast %cst_7 : f32 to vector<8x128xf32>
    %11 = arith.addf %10, %9 : vector<8x128xf32>
    %12 = arith.divf %10, %11 : vector<8x128xf32>
    %13 = arith.mulf %5, %12 : vector<8x128xf32>
    %14 = arith.mulf %13, %7 : vector<8x128xf32>
    %15 = arith.truncf %14 : vector<8x128xf32> to vector<8x128xbf16>
    %c0_8 = arith.constant 0 : index
    %c0_9 = arith.constant 0 : index
    %16 = vector.load %arg10[%c0_8, %c0_9] : memref<8x32xf32, #tpu.memory_space<vmem>>, vector<8x32xf32>
    %c0_10 = arith.constant 0 : index
    %c0_11 = arith.constant 0 : index
    %17 = vector.load %arg7[%c0_10, %c0_11] : memref<32x128xbf16, #tpu.memory_space<vmem>>, vector<32x128xbf16>
    %cst_12 = arith.constant dense<0.000000e+00> : vector<8x32xf32>
    %18 = tpu.matmul %15, %17, %cst_12 {dimension_numbers = #tpu.dot_dimension_numbers<[1], [1], [0], [0], [0, 0, 1, 0], [], []>} : vector<8x128xbf16>, vector<32x128xbf16>, vector<8x32xf32> -> vector<8x32xf32>
    %19 = arith.addf %16, %18 : vector<8x32xf32>
    %c0_13 = arith.constant 0 : index
    %c0_14 = arith.constant 0 : index
    %20 = vector.load %arg10[%c0_13, %c0_14] : memref<8x32xf32, #tpu.memory_space<vmem>>, vector<8x32xf32>
    tpu.vector_store %arg10[%c0_13, %c0_14], %19 {strides = array<i32>} : memref<8x32xf32, #tpu.memory_space<vmem>>, vector<8x32xf32>,
    %c1_i32 = arith.constant 1 : i32
    %21 = arith.cmpi eq, %arg2, %c1_i32 : i32
    %22 = arith.extui %21 : i1 to i32
    %c0_i32_15 = arith.constant 0 : i32
    %23 = arith.cmpi ne, %22, %c0_i32_15 : i32
    scf.if %23 {
      %c0_16 = arith.constant 0 : index
      %c0_17 = arith.constant 0 : index
      %c0_18 = arith.constant 0 : index
      %24 = vector.load %arg3[%c0_16, %c0_17, %c0_18] : memref<1x8x32xbf16, #tpu.memory_space<vmem>>, vector<1x8x32xbf16>
      %25 = vector.shape_cast %24 : vector<1x8x32xbf16> to vector<8x32xbf16>
      %26 = arith.extf %25 : vector<8x32xbf16> to vector<8x32xf32>
      %c0_19 = arith.constant 0 : index
      %c0_20 = arith.constant 0 : index
      %27 = vector.load %arg10[%c0_19, %c0_20] : memref<8x32xf32, #tpu.memory_space<vmem>>, vector<8x32xf32>
      %28 = arith.addf %26, %27 : vector<8x32xf32>
      %29 = arith.truncf %28 : vector<8x32xf32> to vector<8x32xbf16>
      %c0_21 = arith.constant 0 : index
      %c0_22 = arith.constant 0 : index
      %c0_23 = arith.constant 0 : index
      %30 = vector.load %arg8[%c0_21, %c0_22, %c0_23] : memref<1x8x32xbf16, #tpu.memory_space<vmem>>, vector<1x8x32xbf16>
      %31 = vector.shape_cast %30 : vector<1x8x32xbf16> to vector<8x32xbf16>
      %32 = vector.shape_cast %29 : vector<8x32xbf16> to vector<1x8x32xbf16>
      tpu.vector_store %arg8[%c0_21, %c0_22, %c0_23], %32 {strides = array<i32>} : memref<1x8x32xbf16, #tpu.memory_space<vmem>>, vector<1x8x32xbf16>,
    } else {
    }
    return
  }
  func.func @transform_0(%arg0: i32, %arg1: i32, %arg2: i32) -> (i32, i32, i32) {
    %c0_i32 = arith.constant 0 : i32
    %c0_i32_0 = arith.constant 0 : i32
    return %arg0, %arg1, %c0_i32 : i32, i32, i32
  }
  func.func @transform_1(%arg0: i32, %arg1: i32, %arg2: i32) -> (i32, i32) {
    %c0_i32 = arith.constant 0 : i32
    %c0_i32_0 = arith.constant 0 : i32
    %c0_i32_1 = arith.constant 0 : i32
    return %c0_i32, %c0_i32_0 : i32, i32
  }
  func.func @transform_2(%arg0: i32, %arg1: i32, %arg2: i32) -> (i32, i32) {
    %c0_i32 = arith.constant 0 : i32
    %c0_i32_0 = arith.constant 0 : i32
    return %arg2, %c0_i32 : i32, i32
  }
  func.func @transform_3(%arg0: i32, %arg1: i32, %arg2: i32) -> (i32, i32) {
    %c0_i32 = arith.constant 0 : i32
    %c0_i32_0 = arith.constant 0 : i32
    return %arg2, %c0_i32 : i32, i32
  }
  func.func @transform_4(%arg0: i32, %arg1: i32, %arg2: i32) -> (i32, i32) {
    %c0_i32 = arith.constant 0 : i32
    %c0_i32_0 = arith.constant 0 : i32
    return %c0_i32, %arg2 : i32, i32
  }
  func.func @transform_5(%arg0: i32, %arg1: i32, %arg2: i32) -> (i32, i32, i32) {
    %c0_i32 = arith.constant 0 : i32
    %c0_i32_0 = arith.constant 0 : i32
    return %arg0, %arg1, %c0_i32 : i32, i32, i32
  }
}

module attributes {stable_mosaic.version = 11 : i64} {
  func.func @lm_head_kernel(%arg0: i32, %arg1: i32, %arg2: i32, %arg3: memref<1x8x32xbf16, #tpu.memory_space<vmem>>, %arg4: memref<1x32xf32, #tpu.memory_space<vmem>>, %arg5: memref<128x32xbf16, #tpu.memory_space<vmem>>, %arg6: memref<1x8x128xf32, #tpu.memory_space<vmem>>, %arg7: memref<8x32xbf16, #tpu.memory_space<vmem>>) attributes {dimension_semantics = [#tpu.dimension_semantics<parallel>, #tpu.dimension_semantics<parallel>, #tpu.dimension_semantics<arbitrary>], iteration_bounds = array<i64: 2, 2, 2>, scalar_prefetch = 0 : i64, scratch_operands = 1 : i64, tpu.core_type = #tpu.core_type<tc>, window_params = [{transform_indices = @transform_0, window_bounds = array<i64: 1, 8, 32>}, {pipeline_mode = #tpu.pipeline_mode<synchronous>, transform_indices = @transform_1, window_bounds = array<i64: 1, 32>}, {transform_indices = @transform_2, window_bounds = array<i64: 128, 32>}, {transform_indices = @transform_3, window_bounds = array<i64: 1, 8, 128>}]} {
    %c0_i32 = arith.constant 0 : i32
    %0 = arith.cmpi eq, %arg2, %c0_i32 : i32
    %1 = arith.extui %0 : i1 to i32
    %c0_i32_0 = arith.constant 0 : i32
    %2 = arith.cmpi ne, %1, %c0_i32_0 : i32
    scf.if %2 {
      %c0_7 = arith.constant 0 : index
      %c0_8 = arith.constant 0 : index
      %c0_9 = arith.constant 0 : index
      %9 = vector.load %arg3[%c0_7, %c0_8, %c0_9] : memref<1x8x32xbf16, #tpu.memory_space<vmem>>, vector<1x8x32xbf16>
      %10 = vector.shape_cast %9 : vector<1x8x32xbf16> to vector<8x32xbf16>
      %11 = arith.extf %10 : vector<8x32xbf16> to vector<8x32xf32>
      %c0_10 = arith.constant 0 : index
      %c0_11 = arith.constant 0 : index
      %12 = vector.load %arg4[%c0_10, %c0_11] : memref<1x32xf32, #tpu.memory_space<vmem>>, vector<1x32xf32>
      %13 = arith.mulf %11, %11 : vector<8x32xf32>
      %cst_12 = arith.constant dense<0.000000e+00> : vector<8xf32>
      %14 = vector.multi_reduction <add>, %13, %cst_12 [1] : vector<8x32xf32> to vector<8xf32>
      %15 = vector.shape_cast %14 : vector<8xf32> to vector<8x1xf32>
      %cst_13 = arith.constant 3.200000e+01 : f32
      %16 = vector.broadcast %cst_13 : f32 to vector<8x1xf32>
      %17 = arith.divf %15, %16 : vector<8x1xf32>
      %cst_14 = arith.constant 9.99999974E-6 : f32
      %18 = vector.broadcast %cst_14 : f32 to vector<8x1xf32>
      %19 = arith.addf %17, %18 : vector<8x1xf32>
      %20 = math.rsqrt %19 : vector<8x1xf32>
      %21 = vector.broadcast %20 : vector<8x1xf32> to vector<8x32xf32>
      %22 = arith.mulf %11, %21 : vector<8x32xf32>
      %23 = vector.broadcast %12 : vector<1x32xf32> to vector<8x32xf32>
      %24 = arith.mulf %22, %23 : vector<8x32xf32>
      %25 = arith.truncf %24 : vector<8x32xf32> to vector<8x32xbf16>
      %c0_15 = arith.constant 0 : index
      %c0_16 = arith.constant 0 : index
      %26 = vector.load %arg7[%c0_15, %c0_16] : memref<8x32xbf16, #tpu.memory_space<vmem>>, vector<8x32xbf16>
      tpu.vector_store %arg7[%c0_15, %c0_16], %25 {strides = array<i32>} : memref<8x32xbf16, #tpu.memory_space<vmem>>, vector<8x32xbf16>,
    } else {
    }
    %c0 = arith.constant 0 : index
    %c0_1 = arith.constant 0 : index
    %3 = vector.load %arg7[%c0, %c0_1] : memref<8x32xbf16, #tpu.memory_space<vmem>>, vector<8x32xbf16>
    %c0_2 = arith.constant 0 : index
    %c0_3 = arith.constant 0 : index
    %4 = vector.load %arg5[%c0_2, %c0_3] : memref<128x32xbf16, #tpu.memory_space<vmem>>, vector<128x32xbf16>
    %cst = arith.constant dense<0.000000e+00> : vector<8x128xf32>
    %5 = tpu.matmul %3, %4, %cst {dimension_numbers = #tpu.dot_dimension_numbers<[1], [1], [0], [0], [0, 0, 1, 0], [], []>} : vector<8x32xbf16>, vector<128x32xbf16>, vector<8x128xf32> -> vector<8x128xf32>
    %c0_4 = arith.constant 0 : index
    %c0_5 = arith.constant 0 : index
    %c0_6 = arith.constant 0 : index
    %6 = vector.load %arg6[%c0_4, %c0_5, %c0_6] : memref<1x8x128xf32, #tpu.memory_space<vmem>>, vector<1x8x128xf32>
    %7 = vector.shape_cast %6 : vector<1x8x128xf32> to vector<8x128xf32>
    %8 = vector.shape_cast %5 : vector<8x128xf32> to vector<1x8x128xf32>
    tpu.vector_store %arg6[%c0_4, %c0_5, %c0_6], %8 {strides = array<i32>} : memref<1x8x128xf32, #tpu.memory_space<vmem>>, vector<1x8x128xf32>,
    return
  }
  func.func @transform_0(%arg0: i32, %arg1: i32, %arg2: i32) -> (i32, i32, i32) {
    %c0_i32 = arith.constant 0 : i32
    %c0_i32_0 = arith.constant 0 : i32
    return %arg0, %arg1, %c0_i32 : i32, i32, i32
  }
  func.func @transform_1(%arg0: i32, %arg1: i32, %arg2: i32) -> (i32, i32) {
    %c0_i32 = arith.constant 0 : i32
    %c0_i32_0 = arith.constant 0 : i32
    %c0_i32_1 = arith.constant 0 : i32
    return %c0_i32, %c0_i32_0 : i32, i32
  }
  func.func @transform_2(%arg0: i32, %arg1: i32, %arg2: i32) -> (i32, i32) {
    %c0_i32 = arith.constant 0 : i32
    %c0_i32_0 = arith.constant 0 : i32
    return %arg2, %c0_i32 : i32, i32
  }
  func.func @transform_3(%arg0: i32, %arg1: i32, %arg2: i32) -> (i32, i32, i32) {
    %c0_i32 = arith.constant 0 : i32
    return %arg0, %arg1, %arg2 : i32, i32, i32
  }
}

</mosaic_0001>

<bundles_post_ra>
// kernel: tpu_custom_call.1
= control target key start
LH: loop header
LB: loop body
LE: loop exit
PB: predicated region body
PF: predicated region fallthrough
CT: control target
= control target key end

     0   :  { %6 = vsyncpa [#allocation3], 0  ;;  %s615_s0 = inlined_call_operand.hbm [shape: f32[8,128], index: 0, kind: input, shape index: {}]   ;;  %s616_s1 = inlined_call_operand.hbm [shape: f32[16,256], index: 1, kind: output, shape index: {}]  }
   0x1   :  { %7 = vsyncpa [#allocation4], 0 }
   0x2   :  { %9 = vsyncpa [#allocation4 + $0x1], 0  ;;  %s447_s6 = smov 0   ;;  %s449_s7 = smov 0  }
   0x3   :  { %s451_s8 = smov 0   ;;  %s453_s9 = smov 0  }
   0x4   :  { %s455_s10 = smov 0   ;;  %s457_s11 = smov 0  }
   0x5   :  { %s459_s12 = smov 0   ;;  %s461_s13 = smov 0  }
   0x6 LB: > { %s213_s14 = sadd.s32 4294967295, %s433_s13   ;;  %s214_s15 = sadd.s32 4294967294, %s433_s13   ;;  %s433_s13 = sphi %s461_s13, %s15_s13   ;;  %s429_s12 = sphi %s459_s12, %s636_s12   ;;  %s425_s11 = sphi %s457_s11, %s635_s11   ;;  %s421_s10 = sphi %s455_s10, %s634_s10   ;;  %s417_s9 = sphi %s453_s9, %s633_s9   ;;  %s413_s8 = sphi %s451_s8, %s632_s8   ;;  %s409_s7 = sphi %s449_s7, %s631_s7   ;;  %s405_s6 = sphi %s447_s6, %s630_s6  }
   0x7   : > { %s24_s16 = sadd.s32 1, %s425_s11  ;;  %s27_s17 = sadd.s32 1, %s429_s12 }
   0x8   : > { %p25_p0 = scmp.ge.s32.totalorder %s24_s16, 2  ;;  %s57_s18 = sadd.s32 1, %s413_s8 }
   0x9   : > { %p67_p1 = scmp.ne.s32.totalorder %s413_s8, %s409_s7  ;;  %p68_p2 = scmp.eq.s32.totalorder %s213_s14, 3 }
   0xa   : > { %s638_s16 = smov (%p25_p0, %s24_s16), 0  ;;  %s640_s17 = smov (!%p25_p0, %s27_s17), %s429_s12 }
   0xb   : > { %s53_s19 = ssub.s32 %s425_s11, %s638_s16  ;;  %p499_p3 = por %p68_p2, %p67_p1 }
   0xc   : > { %p29_p4 = scmp.ge.s32.totalorder %s640_s17, 2  ;;  %p73_p5 = scmp.ne.s32.totalorder %s409_s7, %s405_s6 }
   0xd   : > { %s621_s20 = scalar_select %p499_p3, 1, 0 }
   0xe   : > { %p74_p6 = scmp.eq.s32.totalorder %s214_s15, 3  ;;  %p215_p7 = scmp.ge.s32.totalorder %s433_s13, 1 }
   0xf   : > { %s642_s17 = smov (%p29_p4, %s640_s17), 0  ;;  %p81_p9 = scmp.lt.s32.totalorder %s433_s13, 5 }
  0x10   : > { %p508_p8 = por %p74_p6, %p73_p5  ;;  %s52_s22 = ssub.s32 %s429_s12, %s642_s17 }
  0x11   : > { %s54_s23 = sor.u32 %s53_s19, %s52_s22  ;;  %p515_p10 = pnand %p215_p7, %p81_p9 }
  0x12   : > { %s622_s21 = scalar_select %p508_p8, 1, 0 }
  0x13   : > { %s623_s24 = scalar_select %p515_p10, 1, 0 }
  0x14   : > { %p55_p11 = scmp.eq.s32.totalorder %s54_s23, 0  ;;  %p519_p12 = scmp.eq.s32.totalorder %s213_s14, 0 }
  0x15   : > { %p231_p13 = pneg %p515_p10  ;;  %s435_s27 = smov [#allocation2]  }
  0x16   : > { %s624_s25 = scalar_select %p519_p12, 1, 0 }
  0x17   : > { %s526_s26 = scalar_select %p55_p11, %s413_s8, %s57_s18  }
  0x18   : > { %s94_s28 = sshll.u32 %s435_s27, 4  ;;  %p530_p0 = pnand %p519_p12, %p231_p13  ;;  %s95_s28 = int_to_ptr.vmem [resolvable:$true] %s94_s28 }
  0x19   : > { %s307_s3 = scalar_lea.hbm %s615_s0, 128 }
  0x1a   : > { %p308_p1 = scmp.ne.s32.totalorder %s615_s0, %s307_s3  ;;  %p309_p2 = pneg %p530_p0 }
  0x1b   : > { %p314_p6 = scmp.lt.u32.totalorder %s307_s3, %s615_s0 }
  0x1c   : > { %p310_p4 = pnand %p309_p2, %p308_p1 }
  0x1e   : > { %p311_p5 = pneg %p310_p4 }
  0x20   : > { %p316_p7 = pnand %p314_p6, %p311_p5 }
  0x22   : > { %319 = shalt.err (!%p316_p7)
}
  0x23   : > { %s320_s18 = scalar_lea.vmem %s95_s28, 128  ;;  %p328_p8 = scmp.lt.s32.totalorder %s95_s28, %s95_s28 }
  0x24   : > { %p321_p9 = scmp.ne.s32.totalorder %s95_s28, %s320_s18  ;;  %p329_p3 = scmp.lt.s32.totalorder %s320_s18, %s320_s18 }
  0x26   : > { %p323_p11 = pnand %p321_p9, %p309_p2  ;;  %p330_p12 = por %p329_p3, %p328_p8 }
  0x28   : > { %p324_p13 = pneg %p323_p11 }
  0x2a   : > { %p331_p10 = pnand %p330_p12, %p324_p13 }
  0x2c   : > { %334 = shalt.err (!%p331_p10)
}
  0x2d   : > { %234 = dma.hbm_to_vmem [thread:$0]  (!%p530_p0), %s615_s0, 128, %s95_s28, [#allocation3]  }
  0x2e   : > { %p626_p1 = scmp.ne.s32.totalorder %s623_s24, 0 }
  0x2f   : > { %p627_p4 = scmp.ne.s32.totalorder (!%p626_p1), %s624_s25, 0 }
  0x30   : > { %107 = sbr.rel (%p626_p1) target bundleno = 84 (0x54), region = 24 }
  0x37   : > { %396 = dma.done.wait (%p627_p4), [#allocation3], 128  }
  0x38   : > { %398 = vsyncadd (%p627_p4), [#allocation3], 4294967168  ;;  %s119_s23 = sand.u32 1, %s409_s7   ;;  %s221_s27 = sshll.u32 %s421_s10, 1  ;;  %v122_v0 = vld [vmem:[#allocation2] sm:$0xff] }
  0x39   : > { %s219_s29 = sshll.u32 %s119_s23, 3  ;;  %s137_s30 = sadd.s32 %s417_s9, %s221_s27  ;;  %v123_v1 = vmul.f32 2.0, %v122_v0 }
  0x3a   : > { %s121_s2 = scalar_lea.vmem [#allocation5], %s219_s29  ;;  %s222_s28 = sshll.u32 %s137_s30, 7 }
  0x3b   : > { %s141_s3 = sshll.u32 %s121_s2, 4  ;;  %s564_s25 = scalar_lea.hbm %s616_s1, %s222_s28  ;;  %124 = vst [vmem:[%s121_s2] sm:$0xff] %v123_v1  ;;  %s559_s3 = int_to_ptr.vmem [resolvable:$true] %s141_s3 }
  0x3c   : > { %s126_s5 = scalar_lea.sflag [#allocation4], %s119_s23  ;;  %s335_s10 = scalar_lea.vmem %s559_s3, 128 }
  0x3d   : > { %p336_p3 = scmp.ne.s32.totalorder %s559_s3, %s335_s10  ;;  %p628_p8 = scmp.ne.s32.totalorder %s621_s20, 0 }
  0x3e   : > { %s436_s9 = smov [#allocation5]  }
  0x3f   : > { %p337_p10 = pnand %p336_p3, %p628_p8  ;;  %s339_s14 = sshll.u32 %s436_s9, 4  ;;  %s340_s14 = int_to_ptr.vmem [resolvable:$false] %s339_s14 }
  0x40   : > { %s341_s15 = scalar_lea.vmem %s340_s14, 256  ;;  %p342_p0 = scmp.lt.s32.totalorder %s559_s3, %s340_s14 }
  0x41   : > { %p338_p12 = pneg %p337_p10  ;;  %p343_p2 = scmp.lt.s32.totalorder %s341_s15, %s335_s10 }
  0x43   : > { %p344_p5 = por %p343_p2, %p342_p0 }
  0x45   : > { %p345_p6 = pnand %p344_p5, %p338_p12 }
  0x47   : > { %348 = shalt.err (!%p345_p6)
}
  0x48   : > { %s349_s18 = scalar_lea.hbm %s564_s25, 128  ;;  %s353_s23 = scalar_lea.hbm %s616_s1, 512 }
  0x49   : > { %p350_p7 = scmp.ne.s32.totalorder %s564_s25, %s349_s18  ;;  %p354_p13 = scmp.lt.u32.totalorder %s564_s25, %s616_s1 }
  0x4a   : > { %p355_p1 = scmp.lt.u32.totalorder %s353_s23, %s349_s18  ;;  %p357_p3 = scmp.lt.u32.totalorder %s349_s18, %s564_s25 }
  0x4b   : > { %p351_p9 = pnand %p350_p7, %p628_p8 }
  0x4c   : > { %p356_p4 = por %p355_p1, %p354_p13 }
  0x4d   : > { %p352_p11 = pneg %p351_p9 }
  0x4e   : > { %p358_p10 = por %p357_p3, %p356_p4 }
  0x50   : > { %p359_p12 = pnand %p358_p10, %p352_p11 }
  0x52   : > { %362 = shalt.err (!%p359_p12)
}
  0x53   : > { %229 = dma.vmem_to_hbm [thread:$0]  (%p628_p8), %s559_s3, 128, %s564_s25, %s126_s5  }
  0x54 PF: > { %p241_p0 = scmp.ge.s32.totalorder %s433_s13, 2  ;;  %s153_s30 = sand.u32 1, %s405_s6  }
  0x55   : > { %p629_p2 = scmp.ne.s32.totalorder %s622_s21, 0  ;;  %s154_s2 = scalar_lea.sflag [#allocation4], %s153_s30 }
  0x57   : > { %p236_p5 = pnand %p241_p0, %p629_p2 }
  0x59   : > { %400 = dma.done.wait (!%p236_p5), %s154_s2, 128  }
  0x5a   : > { %402 = vsyncadd (!%p236_p5), %s154_s2, 4294967168  ;;  %s15_s13 = sadd.s32 1, %s433_s13   ;;  %s630_s6 = smov %s409_s7 }
  0x5b   : > { %p12_p6 = scmp.ge.s32.totalorder %s15_s13, 6   ;;  %s631_s7 = smov %s413_s8 }
  0x5c   : > { %s632_s8 = smov %s526_s26  ;;  %s633_s9 = smov %s425_s11 }
  0x5d   : > { %s634_s10 = smov %s429_s12  ;;  %s635_s11 = smov %s638_s16 }
  0x5e   : > { %s636_s12 = smov %s642_s17  ;;  %14 = sbr.rel (!%p12_p6) target bundleno = 6 (0x6), region = 61 }
  0x65   :  { %159 = vsyncpa [#allocation3], 1 }
  0x66   :  { %161 = vsyncpa [#allocation3 + $0x1], 1 }
  0x67   :  { %162 = vsyncpa [#allocation4], 1 }
  0x68   :  { %164 = vsyncpa [#allocation4 + $0x1], 1 }

// kernel: transformer_lm_forward.7
= control target key start
LH: loop header
LB: loop body
LE: loop exit
PB: predicated region body
PF: predicated region fallthrough
CT: control target
= control target key end

     0   :  { %s1083_s24 = smov 0   ;;  %s1085_s25 = smov 0   ;;  %s1210_s0 = inlined_call_operand.vmem [shape: bf16[2,16,32], index: 0, kind: input, shape index: {}]   ;;  %s1211_s1 = inlined_call_operand.vmem [shape: f32[1,32], index: 1, kind: input, shape index: {}]   ;;  %s1212_s2 = inlined_call_operand.vmem [shape: bf16[96,32], index: 2, kind: input, shape index: {}]   ;;  %s1213_s3 = inlined_call_operand.vmem [shape: f32[16,16], index: 3, kind: input, shape index: {}]   ;;  %s1214_s4 = inlined_call_operand.vmem [shape: f32[16,16], index: 4, kind: input, shape index: {}]   ;;  %s1215_s5 = inlined_call_operand.vmem [shape: bf16[2,16,32], index: 5, kind: output, shape index: {0}]   ;;  %s1216_s6 = inlined_call_operand.vmem [shape: bf16[2,16,32], index: 6, kind: output, shape index: {1}]   ;;  %s1217_s7 = inlined_call_operand.vmem [shape: bf16[2,16,32], index: 7, kind: output, shape index: {2}]  }
   0x1   :  { %s1087_s26 = smov 0   ;;  %s1089_s27 = smov 0  }
   0x2   :  { %s1091_s28 = smov 0  }
   0x3 LB: > { %s27_s29 = sadd.s32 1, %s1019_s26  ;;  %s30_s30 = sadd.s32 1, %s1023_s27  ;;  %s1027_s28 = sphi %s1091_s28, %s18_s28   ;;  %s1023_s27 = sphi %s1089_s27, %s1221_s27   ;;  %s1019_s26 = sphi %s1087_s26, %s1220_s26   ;;  %s1015_s25 = sphi %s1085_s25, %s1219_s25   ;;  %s1011_s24 = sphi %s1083_s24, %s1218_s24  }
   0x4   : > { %p28_p0 = scmp.ge.s32.totalorder %s27_s29, 2  ;;  %p851_p1 = scmp.ge.s32.totalorder %s1027_s28, 1 }
   0x5   : > { %p283_p2 = scmp.lt.s32.totalorder %s1027_s28, 5 }
   0x6   : > { %s1223_s29 = smov (%p28_p0, %s27_s29), 0  ;;  %s1225_s30 = smov (!%p28_p0, %s30_s30), %s1023_s27 }
   0x7   : > { %p284_p3 = pnand %p851_p1, %p283_p2  ;;  %p32_p4 = scmp.ge.s32.totalorder %s1225_s30, 2 }
   0x8   : > { %p345_p5 = scmp.lt.s32.totalorder (!%p284_p3), %s1015_s25, 1  ;;  %p347_p6 = scmp.lt.s32.totalorder (!%p284_p3), %s1011_s24, 1  ;;  %v1029_v0 = vmov (!%p284_p3), 0.0   ;;  %v981_v1 = vld [vmem:[%s1212_s2] sm:$0xff] (!%p284_p3)   ;;  %vm390_vm0 = vcmask (!%p284_p3), 261120   ;;  %v982_v3 = vld [vmem:[%s1212_s2 + $0x8] sm:$0xff] (!%p284_p3)  }
   0x9   : > { %s1227_s30 = smov (%p32_p4, %s1225_s30), 0  ;;  %287 = sbr.rel (%p284_p3) target bundleno = 666 (0x29a), region = 40 }
   0xa   : > { %881 = vmatprep.subr.bf16.mxu0 (!%p284_p3), %v1029_v0  ;;  %v453_v2 = vsel (!%p284_p3), %vm390_vm0, %v981_v1, 0  ;;  %v456_v6 = vsel (!%p284_p3), %vm390_vm0, %v982_v3, 0  ;;  %v983_v9 = vld [vmem:[%s1212_s2 + $0x10] sm:$0xff] (!%p284_p3)   ;;  %v984_v11 = vld [vmem:[%s1212_s2 + $0x18] sm:$0xff] (!%p284_p3)   ;;  %v985_v13 = vld [vmem:[%s1212_s2 + $0x20] sm:$0xff] (!%p284_p3)   ;;  %vm1030_vm1 = vmmov (!%p284_p3), 0  }
   0xb   : > { %882 = vmatpush3.bf16.xpose.msra.mxu0 (!%p284_p3), %v453_v2  ;;  %v459_v10 = vsel (!%p284_p3), %vm390_vm0, %v983_v9, 0  ;;  %v462_v12 = vsel (!%p284_p3), %vm390_vm0, %v984_v11, 0  ;;  %v465_v14 = vsel (!%p284_p3), %vm390_vm0, %v985_v13, 0  ;;  %893 = vmatprep.mubr.msk.bf16.mxu0 (!%p284_p3), %vm1030_vm1, %v1029_v0  ;;  %v986_v15 = vld [vmem:[%s1212_s2 + $0x28] sm:$0xff] (!%p284_p3)   ;;  %s1032_s18 = smov (!%p284_p3), 16   ;;  %s1033_s19 = smov (!%p284_p3), 32  }
   0xc   : > { %883 = vmatprep.subr.bf16.mxu0 (!%p284_p3), %v1029_v0  ;;  %v468_v16 = vsel (!%p284_p3), %vm390_vm0, %v986_v15, 0  ;;  %v862_v23 = vld [vmem:[%s1211_s1] ss:$0 sm:$0xff] (!%p284_p3)  ;;  %s1034_s21 = smov (!%p284_p3), 112   ;;  %s1035_s22 = smov (!%p284_p3), 96   ;;  %vm583_vm2 = vcmask (!%p284_p3), 31744  }
   0xd   : > { %s1036_s23 = smov (!%p284_p3), 8   ;;  %s1038_s8 = smov (!%p284_p3), 12   ;;  %vm585_vm3 = vcmask (!%p284_p3), 64512   ;;  %vm587_vm4 = vcmask (!%p284_p3), 97280   ;;  %vm589_vm5 = vcmask (!%p284_p3), 130048   ;;  %vm591_vm6 = vcmask (!%p284_p3), 162816  }
   0xe   : > { %vm593_vm7 = vcmask (!%p284_p3), 195584   ;;  %vm595_vm8 = vcmask (!%p284_p3), 228352   ;;  %vm598_vm9 = vcmask (!%p284_p3), 257024  }
  0x10   : > { %s1229_s25 = smov (!%p345_p5, %s1015_s25), 1  ;;  %s1231_s24 = smov (!%p347_p6, %s1011_s24), 1 }
  0x11   : > { %s852_s10 = sshll.u32 %s1229_s25, 1  ;;  %s854_s9 = sshll.u32 %s1231_s24, 3 }
  0x12   : > { %s350_s11 = sadd.s32 %s852_s10, %s1231_s24  ;;  %s356_s12 = scalar_lea.vmem %s1213_s3, %s854_s9 }
  0x13   : > { %s1123_s14 = sshll.u32 %s350_s11, 2  ;;  %884 = vmatpush3.bf16.xpose.msra.mxu0 %v456_v6  ;;  %s360_s16 = scalar_lea.vmem %s1214_s4, %s854_s9  ;;  %v510_v17 = vld [vmem:[%s356_s12] sm:$0xff] }
  0x14   : > { %s352_s17 = scalar_lea.vmem %s1210_s0, %s1123_s14  ;;  %885 = vmatprep.subr.bf16.mxu0 %v1029_v0  ;;  %v511_v18 = vld [vmem:[%s360_s16] sm:$0xff]  ;;  %s1037_s25 = smov 4  }
  0x15   : > { %v386_v4 = vld [vmem:[%s352_s17] sm:$0xf]  ;;  %s1031_s17 = smov 48   ;;  %s1039_s9 = smov 100  }
  0x16   : > { %v387_v5 = vunpack.c.l.bf16 %v386_v4  ;;  %538 = vrot.lane.b32.xlu1 %v510_v17, %s1031_s17  ;;  %s1040_s10 = smov 104   ;;  %s1041_s11 = smov 64  }
  0x17   : > { %s1042_s12 = smov 108   ;;  %s368_s16 = scalar_lea.vmem %s1215_s5, %s1123_s14 }
  0x18   : > { %v389_v7 = vmul.f32 %v387_v5, %v387_v5 }
  0x1a   : > { %v391_v8 = vsel %vm390_vm0, %v389_v7, 0.0  ;;  %551 = vrot.lane.b32.xlu1 %v511_v18, %s1031_s17 }
  0x1b   : > { %392 = vadd.xlane.f32.xlu0 %v391_v8  ;;  %886 = vmatpush3.bf16.xpose.msra.mxu0 %v459_v10 }
  0x1c   : > { %887 = vmatprep.subr.bf16.mxu0 %v1029_v0 }
  0x1e   : > { %514 = vrot.lane.b32.xlu1 %v510_v17, %s1032_s18 }
  0x22   : > { %534 = vrot.lane.b32.xlu1 %v511_v18, %s1033_s19 }
  0x23   : > { %888 = vmatpush3.bf16.xpose.msra.mxu0 %v462_v12 }
  0x24   : > { %889 = vmatprep.subr.bf16.mxu0 %v1029_v0 }
  0x26   : > { %547 = vrot.lane.b32.xlu1 %v510_v17, %s1033_s19  ;;  %s384_s19 = scalar_lea.vmem %s1217_s7, %s1123_s14 }
  0x2b   : > { %890 = vmatpush3.bf16.xpose.msra.mxu0 %v465_v14 }
  0x2c   : > { %891 = vmatprep.subr.bf16.mxu0 %v1029_v0 }
  0x31   : > { %525 = vrot.lane.b32.xlu0 %v511_v18, %s1032_s18 }
  0x33   : > { %892 = vmatpush3.bf16.xpose.msra.mxu0 %v468_v16 }
  0x88   : > { %v539_v27 = vpop.permute.xlu1 %538 }
  0x8c   : > { %v552_v29 = vpop.permute.xlu1 %551 }
  0x90   : > { %v515_v37 = vpop.permute.xlu1 %514 }
  0x94   : > { %v535_v39 = vpop.permute.xlu1 %534 }
  0x98   : > { %v548_v40 = vpop.permute.xlu1 %547 }
  0xa8   : > { %v393_v19 = vpop.xlane.xlu0 %392 }
  0xa9   : > { %v395_v20 = vmul.f32 0.03125, %v393_v19 }
  0xab   : > { %v396_v21 = vadd.f32 1e-05, %v395_v20 }
  0xac   : > { %v526_v28 = vpop.permute.xlu0 %525 }
  0xad   : > { %987 = vrsqrt.f32 %v396_v21 }
  0xb7   : > { %v988_v22 = vpop.eup %987 }
  0xb8   : > { %v398_v24 = vmul.f32 %v988_v22, %v387_v5 }
  0xba   : > { %v405_v25 = vmul.f32 %v862_v23, %v398_v24 }
  0xbc   : > { %v406_v26 = vpack.c.bf16 %v405_v25, %v405_v25 }
  0xbe   : > { %894 = vmatmul.mubr.msk.bf16.vlgmr.msra.gmra.mrb[0].mxu0 %vm390_vm0, %v406_v26 }
 0x191   : > { %v504_v30 = vpop.f32.mrb[0].mxu0 }
 0x192   : > { %v528_v31 = vmul.f32 %v526_v28, %v504_v30  ;;  %v895_v32 = vpop.f32.mrb[1].mxu0  ;;  %v554_v33 = vmul.f32 %v552_v29, %v504_v30  ;;  %v541_v36 = vmul.f32 %v539_v27, %v504_v30  ;;  %v517_v38 = vmul.f32 %v515_v37, %v504_v30 }
 0x193   : > { %v507_v34 = vpop.f32.mrb[2].mxu0  ;;  %v537_v42 = vmul.f32 %v535_v39, %v504_v30  ;;  %v523_v45 = vmul.f32 %v510_v17, %v504_v30  ;;  %v512_v46 = vmul.f32 %v511_v18, %v504_v30  ;;  %v550_v51 = vmul.f32 %v548_v40, %v504_v30 }
 0x194   : > { %556 = vrot.lane.b32.xlu0 %v554_v33, %s1034_s21  ;;  %v896_v35 = vpop.f32.mrb[3].mxu0  ;;  %530 = vrot.lane.b32.xlu1 %v528_v31, %s1034_s21  ;;  %v873_v55 = vpack.c.bf16 %v504_v30, %v504_v30 }
 0x198   : > { %543 = vrot.lane.b32.xlu1 %v541_v36, %s1034_s21 }
 0x19c   : > { %519 = vrot.lane.b32.xlu1 %v517_v38, %s1034_s21 }
 0x206   : > { %v531_v41 = vpop.permute.xlu1 %530  ;;  %v557_v50 = vpop.permute.xlu0 %556 }
 0x207   : > { %v533_v48 = vadd.f32 %v531_v41, %v523_v45  ;;  %v559_v53 = vadd.f32 %v557_v50, %v550_v51 }
 0x20a   : > { %v544_v43 = vpop.permute.xlu1 %543 }
 0x20b   : > { %v546_v44 = vsub.f32 %v537_v42, %v544_v43 }
 0x20d   : > { %601 = vrot.lane.b32.xlu1 %v546_v44, %s1035_s22  ;;  %v956_v54 = vpack.i.bf16 %v546_v44, %v559_v53 }
 0x20e   : > { %v520_v47 = vpop.permute.xlu1 %519 }
 0x20f   : > { %v522_v49 = vsub.f32 %v512_v46, %v520_v47 }
 0x211   : > { %v961_v52 = vpack.i.bf16 %v522_v49, %v533_v48 }
 0x213   : > { %962 = vrot.lane.b32.xlu1 %v961_v52, %s1036_s23  ;;  %952 = vrot.lane.b32.xlu0 %v961_v52, %s1037_s25 }
 0x217   : > { %972 = vrot.lane.b32.xlu1 %v961_v52, %s1038_s8  ;;  %957 = vrot.lane.b32.xlu0 %v956_v54, %s1039_s9 }
 0x21b   : > { %580 = vrot.lane.b32.xlu1 %v533_v48, %s1032_s18  ;;  %967 = vrot.lane.b32.xlu0 %v956_v54, %s1040_s10 }
 0x21f   : > { %639 = vrot.lane.b32.xlu1 %v873_v55, %s1041_s11  ;;  %977 = vrot.lane.b32.xlu0 %v956_v54, %s1042_s12 }
 0x223   : > { %623 = vrot.lane.b32.xlu0 %v559_v53, %s1034_s21  ;;  %s376_s21 = scalar_lea.vmem %s1216_s6, %s1123_s14 }
 0x27f   : > { %v602_v56 = vpop.permute.xlu1 %601 }
 0x285   : > { %v963_v57 = vpop.permute.xlu1 %962  ;;  %v953_v58 = vpop.permute.xlu0 %952 }
 0x286   : > { %v955_v59 = vunpack.i.h.bf16 %v953_v58  ;;  %v954_v60 = vunpack.i.l.bf16 %v953_v58  ;;  %v964_v61 = vunpack.i.l.bf16 %v963_v57  ;;  %v965_v63 = vunpack.i.h.bf16 %v963_v57 }
 0x288   : > { %v584_v62 = vsel %vm583_vm2, %v522_v49, %v954_v60 }
 0x289   : > { %v586_v0 = vsel %vm585_vm3, %v584_v62, %v955_v59  ;;  %v973_v1 = vpop.permute.xlu1 %972  ;;  %v958_v2 = vpop.permute.xlu0 %957 }
 0x28a   : > { %v588_v3 = vsel %vm587_vm4, %v586_v0, %v964_v61  ;;  %v975_v4 = vunpack.i.h.bf16 %v973_v1  ;;  %v974_v5 = vunpack.i.l.bf16 %v973_v1  ;;  %v960_v6 = vunpack.i.h.bf16 %v958_v2 }
 0x28b   : > { %v959_v7 = vunpack.i.l.bf16 %v958_v2  ;;  %v590_v8 = vsel %vm589_vm5, %v588_v3, %v965_v63 }
 0x28c   : > { %v592_v9 = vsel %vm591_vm6, %v590_v8, %v974_v5 }
 0x28d   : > { %v626_v10 = vsel %vm583_vm2, %v602_v56, %v959_v7  ;;  %v581_v11 = vpop.permute.xlu1 %580  ;;  %v594_v12 = vsel %vm593_vm7, %v592_v9, %v975_v4  ;;  %v968_v13 = vpop.permute.xlu0 %967 }
 0x28e   : > { %v596_v14 = vsel %vm595_vm8, %v594_v12, %v581_v11  ;;  %v969_v15 = vunpack.i.l.bf16 %v968_v13  ;;  %v627_v16 = vsel %vm585_vm3, %v626_v10, %v960_v6  ;;  %v970_v18 = vunpack.i.h.bf16 %v968_v13 }
 0x28f   : > { %v597_v17 = vpack.c.bf16 %v596_v14, %v596_v14 }
 0x290   : > { %v628_v19 = vsel %vm587_vm4, %v627_v16, %v969_v15 }
 0x291   : > { %v640_v20 = vpop.permute.xlu1 %639  ;;  %599 = vst.msk [vmem:[%s368_s16] sm:$0xf] %vm598_vm9, %v597_v17  ;;  %v978_v21 = vpop.permute.xlu0 %977  ;;  %v629_v24 = vsel %vm589_vm5, %v628_v19, %v970_v18 }
 0x292   : > { %642 = vst.msk [vmem:[%s384_s19] sm:$0xf] %vm598_vm9, %v640_v20  ;;  %v980_v22 = vunpack.i.h.bf16 %v978_v21  ;;  %v979_v23 = vunpack.i.l.bf16 %v978_v21 }
 0x294   : > { %v630_v25 = vsel %vm591_vm6, %v629_v24, %v979_v23 }
 0x295   : > { %v624_v26 = vpop.permute.xlu0 %623  ;;  %v631_v27 = vsel %vm593_vm7, %v630_v25, %v980_v22 }
 0x296   : > { %v632_v28 = vsel %vm595_vm8, %v631_v27, %v624_v26 }
 0x297   : > { %v633_v29 = vpack.c.bf16 %v632_v28, %v632_v28 }
 0x299   : > { %634 = vst.msk [vmem:[%s376_s21] sm:$0xf] %vm598_vm9, %v633_v29 }
 0x29a PF: > { %s18_s28 = sadd.s32 1, %s1027_s28   ;;  %s1218_s24 = smov %s1019_s26 }
 0x29b   : > { %p15_p7 = scmp.ge.s32.totalorder %s18_s28, 6   ;;  %s1219_s25 = smov %s1023_s27 }
 0x29c   : > { %s1220_s26 = smov %s1223_s29  ;;  %s1221_s27 = smov %s1227_s30 }
 0x29d   :  { %17 = sbr.rel (!%p15_p7) target bundleno = 3 (0x3), region = 100 }

// kernel: transformer_lm_forward.13
= control target key start
LH: loop header
LB: loop body
LE: loop exit
PB: predicated region body
PF: predicated region fallthrough
CT: control target
= control target key end

     0   :  { %8 = vsyncpa [#allocation4], 0  ;;  %s983_s0 = inlined_call_operand.vmem [shape: bf16[2,16,32], index: 0, kind: input, shape index: {}]   ;;  %s984_s1 = inlined_call_operand.vmem [shape: f32[1,32], index: 1, kind: input, shape index: {}]   ;;  %s985_s2 = inlined_call_operand.vmem [shape: bf16[256,32], index: 2, kind: input, shape index: {}]   ;;  %s986_s3 = inlined_call_operand.hbm [shape: f32[2,16,256], index: 3, kind: output, shape index: {}]  }
   0x1   :  { %10 = vsyncpa [#allocation4 + $0x1], 0  ;;  %s785_s12 = smov 0   ;;  %s787_s13 = smov 0  }
   0x2   :  { %s789_s14 = smov 0   ;;  %s791_s15 = smov 0  }
   0x3   :  { %s793_s16 = smov 0   ;;  %s795_s17 = smov 0  }
   0x4   :  { %s797_s18 = smov 0   ;;  %s799_s19 = smov 0  }
   0x5   :  { %s801_s20 = smov 0   ;;  %s803_s21 = smov 0  }
   0x6 LB: > { %992 = sst [smem:[#allocation6_spill]] %s756_s20  ;;  %s495_s22 = sadd.s32 4294967295, %s760_s21   ;;  %s760_s21 = sphi %s803_s21, %s16_s21   ;;  %s756_s20 = sphi %s801_s20, %s1002_s20   ;;  %s752_s19 = sphi %s799_s19, %s1009_s19   ;;  %s748_s18 = sphi %s797_s18, %s1008_s18   ;;  %s744_s17 = sphi %s795_s17, %s999_s17   ;;  %s740_s16 = sphi %s793_s16, %s1007_s16   ;;  %s736_s15 = sphi %s791_s15, %s1006_s15   ;;  %s732_s14 = sphi %s789_s14, %s1005_s14   ;;  %s728_s13 = sphi %s787_s13, %s1004_s13   ;;  %s724_s12 = sphi %s785_s12, %s1003_s12  }
   0x7   : > { %s28_s23 = sadd.s32 1, %s748_s18  ;;  %s31_s24 = sadd.s32 1, %s752_s19 }
   0x8   : > { %p29_p0 = scmp.ge.s32.totalorder %s28_s23, 2  ;;  %s496_s25 = sadd.s32 4294967294, %s760_s21  }
   0x9   : > { %p131_p1 = scmp.ne.s32.totalorder %s732_s14, %s728_s13  ;;  %s35_s26 = sadd.s32 1, %s756_s20 }
   0xa   : > { %s1011_s23 = smov (%p29_p0, %s28_s23), 0  ;;  %s1013_s24 = smov (!%p29_p0, %s31_s24), %s752_s19 }
   0xb   : > { %993 = sst [smem:[#allocation7_spill]] %s1011_s23  ;;  %p132_p2 = scmp.eq.s32.totalorder %s495_s22, 7 }
   0xc   : > { %p33_p3 = scmp.ge.s32.totalorder %s1013_s24, 2  ;;  %p137_p4 = scmp.ne.s32.totalorder %s728_s13, %s724_s12 }
   0xd   : > { %p847_p5 = por %p132_p2, %p131_p1  ;;  %p138_p6 = scmp.eq.s32.totalorder %s496_s25, 7 }
   0xe   : > { %s1015_s24 = smov (%p33_p3, %s1013_s24), 0  ;;  %s1017_s26 = smov (!%p33_p3, %s35_s26), %s756_s20 }
   0xf   : > { %995 = sst [smem:[#allocation8_spill]] %s1015_s24  ;;  %p854_p7 = por %p138_p6, %p137_p4 }
  0x10   : > { %p37_p8 = scmp.ge.s32.totalorder %s1017_s26, 2  ;;  %p499_p9 = scmp.ge.s32.totalorder %s760_s21, 1 }
  0x11   : > { %s115_s29 = ssub.s32 %s752_s19, %s1015_s24  ;;  %p179_p10 = scmp.lt.s32.totalorder %s760_s21, 9 }
  0x12   : > { %s1019_s26 = smov (%p37_p8, %s1017_s26), 0  ;;  %s117_s30 = ssub.s32 %s748_s18, %s1011_s23 }
  0x13   : > { %997 = sst [smem:[#allocation9_spill]] %s1019_s26  ;;  %p180_p11 = pnand %p499_p9, %p179_p10 }
  0x14   : > { %s114_s4 = ssub.s32 %s756_s20, %s1019_s26  ;;  %s121_s7 = sadd.s32 1, %s732_s14 }
  0x15   : > { %s116_s5 = sor.u32 %s115_s29, %s114_s4  ;;  %183 = sbr.rel (%p180_p11) target bundleno = 496 (0x1f0), region = 32 }
  0x16   : > { %s118_s6 = sor.u32 %s117_s30, %s116_s5  ;;  %s990_s9 = sand.u32 (!%p180_p11), 1, %s728_s13  }
  0x17   : > { %p119_p12 = scmp.eq.s32.totalorder %s118_s6, 0  ;;  %p211_p13 = scmp.lt.s32.totalorder (!%p180_p11), %s744_s17, 1 }
  0x18   : > { %s876_s10 = sshll.u32 (!%p180_p11), %s990_s9, 3  ;;  %p213_p0 = scmp.lt.s32.totalorder (!%p180_p11), %s740_s16, 1 }
  0x19   : > { %s870_s8 = scalar_select %p119_p12, %s732_s14, %s121_s7  }
  0x1a   : > { %s503_s11 = sshll.u32 (!%p180_p11), %s736_s15, 4  ;;  %s210_s20 = scalar_lea.vmem (!%p180_p11), [#allocation3], %s876_s10 }
  0x1b   : > { %p220_p1 = scmp.lt.s32.totalorder (!%p180_p11), %s503_s11, 31  ;;  %p505_p2 = scmp.ne.s32.totalorder (!%p180_p11), %s736_s15, 0 }
  0x1c   : > { %s212_s22 = scalar_select %p211_p13, %s744_s17, 1 }
  0x1d   : > { %s214_s25 = scalar_select %p213_p0, %s740_s16, 1 }
  0x1e   : > { %s501_s29 = sshll.u32 %s212_s22, 1  ;;  %s1021_s11 = smov (!%p220_p1, %s503_s11), 31  ;;  %vm234_vm0 = vcmask (!%p505_p2), 261120   ;;  %v506_v8 = vld [vmem:[%s984_s1] ss:$0 sm:$0xff] (!%p505_p2)  ;;  %vm251_vm1 = vcmask (!%p505_p2), 257024  }
  0x1f   : > { %s216_s30 = sadd.s32 %s501_s29, %s214_s25  ;;  %s504_s26 = sshll.u32 %s1021_s11, 2 }
  0x20   : > { %s502_s4 = sshll.u32 %s216_s30, 2  ;;  %s888_s9 = scalar_lea.vmem %s985_s2, %s504_s26 }
  0x21   : > { %s218_s7 = scalar_lea.vmem %s983_s0, %s502_s4  ;;  %229 = sbr.rel (%p505_p2) target bundleno = 204 (0xcc), region = 36 }
  0x22   : > { %v230_v0 = vld [vmem:[%s218_s7] sm:$0xf] (!%p505_p2) }
  0x23   : > { %v231_v1 = vunpack.c.l.bf16 (!%p505_p2), %v230_v0 }
  0x25   : > { %v233_v2 = vmul.f32 (!%p505_p2), %v231_v1, %v231_v1 }
  0x27   : > { %v235_v3 = vsel (!%p505_p2), %vm234_vm0, %v233_v2, 0.0 }
  0x28   : > { %236 = vadd.xlane.f32.xlu0 %v235_v3 }
  0xb5   : > { %v237_v4 = vpop.xlane.xlu0 %236 }
  0xb6   : > { %v239_v5 = vmul.f32 0.03125, %v237_v4 }
  0xb8   : > { %v240_v6 = vadd.f32 1e-05, %v239_v5 }
  0xba   : > { %640 = vrsqrt.f32 %v240_v6 }
  0xc4   : > { %v641_v7 = vpop.eup %640 }
  0xc5   : > { %v242_v9 = vmul.f32 %v641_v7, %v231_v1 }
  0xc7   : > { %v249_v10 = vmul.f32 %v506_v8, %v242_v9 }
  0xc9   : > { %v250_v11 = vpack.c.bf16 %v249_v10, %v249_v10 }
  0xcb   : > { %252 = vst.msk [vmem:[#allocation2] sm:$0xf] %vm251_vm1, %v250_v11 }
  0xcc PF: > { %v642_v12 = vld [vmem:[%s888_s9] sm:$0xff]   ;;  %v762_v13 = vmov 0.0   ;;  %vm310_vm2 = vcmask 261120   ;;  %v643_v15 = vld [vmem:[%s888_s9 + $0x8] sm:$0xff]   ;;  %vm763_vm3 = vmmov 0   ;;  %v644_v17 = vld [vmem:[%s888_s9 + $0x10] sm:$0xff]  }
  0xcd   : > { %531 = vmatprep.subr.bf16.mxu0 %v762_v13  ;;  %v315_v14 = vsel %vm310_vm2, %v642_v12, 0  ;;  %v318_v16 = vsel %vm310_vm2, %v643_v15, 0  ;;  %547 = vmatprep.mubr.msk.bf16.mxu0 %vm763_vm3, %v762_v13  ;;  %v321_v18 = vsel %vm310_vm2, %v644_v17, 0  ;;  %v645_v19 = vld [vmem:[%s888_s9 + $0x18] sm:$0xff]   ;;  %v646_v21 = vld [vmem:[%s888_s9 + $0x20] sm:$0xff]   ;;  %v647_v23 = vld [vmem:[%s888_s9 + $0x28] sm:$0xff]  }
  0xce   : > { %532 = vmatpush3.bf16.xpose.msra.mxu0 %v315_v14  ;;  %v324_v20 = vsel %vm310_vm2, %v645_v19, 0  ;;  %v327_v22 = vsel %vm310_vm2, %v646_v21, 0  ;;  %v330_v24 = vsel %vm310_vm2, %v647_v23, 0  ;;  %v648_v25 = vld [vmem:[%s888_s9 + $0x30] sm:$0xff]   ;;  %v649_v27 = vld [vmem:[%s888_s9 + $0x38] sm:$0xff]   ;;  %s517_s23 = sshll.u32 %s740_s16, 1 }
  0xcf   : > { %533 = vmatprep.subr.bf16.mxu0 %v762_v13  ;;  %v333_v26 = vsel %vm310_vm2, %v648_v25, 0  ;;  %v336_v28 = vsel %vm310_vm2, %v649_v27, 0  ;;  %s391_s24 = sadd.s32 %s736_s15, %s517_s23  ;;  %s518_s26 = sshll.u32 %s744_s17, 2 }
  0xd0   : > { %s393_s25 = sadd.s32 %s518_s26, %s391_s24  ;;  %s397_s30 = sshll.u32 %s210_s20, 4  ;;  %s922_s30 = int_to_ptr.vmem [resolvable:$true] %s397_s30 }
  0xd1   : > { %s519_s29 = sshll.u32 %s393_s25, 7  ;;  %s998_s15 = sand.u32 1, %s728_s13  }
  0xd2   : > { %v253_v29 = vld [vmem:[#allocation2] sm:$0xf]  ;;  %s920_s6 = scalar_lea.hbm %s986_s3, %s519_s29  ;;  %s380_s16 = scalar_lea.sflag [#allocation4], %s998_s15 }
  0xd3   : > { %s650_s17 = scalar_lea.vmem %s922_s30, 128  ;;  %s764_s9 = smov [#allocation3]  }
  0xd4   : > { %p651_p3 = scmp.ne.s32.totalorder %s922_s30, %s650_s17  ;;  %s654_s7 = sshll.u32 %s764_s9, 4  ;;  %s655_s7 = int_to_ptr.vmem [resolvable:$false] %s654_s7 }
  0xd5   : > { %s656_s11 = scalar_lea.vmem %s655_s7, 256  ;;  %p657_p8 = scmp.lt.s32.totalorder %s922_s30, %s655_s7 }
  0xd6   : > { %534 = vmatpush3.bf16.xpose.msra.mxu0 %v318_v16  ;;  %p652_p4 = pnand %p651_p3, %p847_p5  ;;  %p658_p9 = scmp.lt.s32.totalorder %s656_s11, %s650_s17 }
  0xd7   : > { %535 = vmatprep.subr.bf16.mxu0 %v762_v13 }
  0xd8   : > { %p653_p6 = pneg %p652_p4  ;;  %p659_p10 = por %p658_p9, %p657_p8 }
  0xda   : > { %p660_p11 = pnand %p659_p10, %p653_p6 }
  0xde   : > { %536 = vmatpush3.bf16.xpose.msra.mxu0 %v321_v18 }
  0xdf   : > { %537 = vmatprep.subr.bf16.mxu0 %v762_v13 }
  0xe6   : > { %538 = vmatpush3.bf16.xpose.msra.mxu0 %v324_v20 }
  0xe7   : > { %539 = vmatprep.subr.bf16.mxu0 %v762_v13 }
  0xee   : > { %540 = vmatpush3.bf16.xpose.msra.mxu0 %v327_v22 }
  0xef   : > { %541 = vmatprep.subr.bf16.mxu0 %v762_v13 }
  0xf6   : > { %542 = vmatpush3.bf16.xpose.msra.mxu0 %v330_v24 }
  0xf7   : > { %543 = vmatprep.subr.bf16.mxu0 %v762_v13 }
  0xfe   : > { %544 = vmatpush3.bf16.xpose.msra.mxu0 %v333_v26 }
  0xff   : > { %545 = vmatprep.subr.bf16.mxu0 %v762_v13 }
 0x106   : > { %546 = vmatpush3.bf16.xpose.msra.mxu0 %v336_v28 }
 0x10d   : > { %548 = vmatmul.mubr.msk.bf16.vlgmr.msra.gmra.mrb[0].mxu0 %vm310_vm2, %v253_v29 }
 0x1e0   : > { %v372_v30 = vpop.f32.mrb[0].mxu0 }
 0x1e1   : > { %378 = vst [vmem:[%s210_s20] sm:$0xff] %v372_v30  ;;  %v549_v31 = vpop.f32.mrb[1].mxu0 }
 0x1e2   : > { %v375_v32 = vpop.f32.mrb[2].mxu0 }
 0x1e3   : > { %663 = shalt.err (!%p660_p11)
}
 0x1e4   : > { %s664_s20 = scalar_lea.hbm %s920_s6, 128  ;;  %s668_s23 = scalar_lea.hbm %s986_s3, 1024 }
 0x1e5   : > { %p665_p12 = scmp.ne.s32.totalorder %s920_s6, %s664_s20  ;;  %p669_p1 = scmp.lt.u32.totalorder %s920_s6, %s986_s3 }
 0x1e6   : > { %p670_p2 = scmp.lt.u32.totalorder %s668_s23, %s664_s20  ;;  %p672_p4 = scmp.lt.u32.totalorder %s664_s20, %s920_s6 }
 0x1e7   : > { %p666_p13 = pnand %p665_p12, %p847_p5 }
 0x1e8   : > { %p671_p3 = por %p670_p2, %p669_p1 }
 0x1e9   : > { %p667_p0 = pneg %p666_p13 }
 0x1ea   : > { %p673_p6 = por %p672_p4, %p671_p3 }
 0x1ec   : > { %p674_p8 = pnand %p673_p6, %p667_p0 }
 0x1ee   : > { %677 = shalt.err (!%p674_p8)
}
 0x1ef   : > { %551 = dma.vmem_to_hbm [thread:$0]  (%p847_p5), %s922_s30, 128, %s920_s6, %s380_s16   ;;  %v550_v33 = vpop.f32.mrb[3].mxu0 }
 0x1f0 PF: > { %p557_p9 = scmp.ge.s32.totalorder %s760_s21, 2  ;;  %s409_s25 = sand.u32 1, %s724_s12  }
 0x1f1   : > { %s410_s29 = scalar_lea.sflag [#allocation4], %s409_s25 }
 0x1f2   : > { %p554_p10 = pnand %p557_p9, %p854_p7 }
 0x1f4   : > { %719 = dma.done.wait (!%p554_p10), %s410_s29, 128  }
 0x1f5   : > { %721 = vsyncadd (!%p554_p10), %s410_s29, 4294967168  ;;  %s16_s21 = sadd.s32 1, %s760_s21   ;;  %s999_s17 = sld [smem:[#allocation6_spill]] }
 0x1f6   : > { %p13_p11 = scmp.ge.s32.totalorder %s16_s21, 10   ;;  %s1000_s27 = sld [smem:[#allocation7_spill]] }
 0x1f7   : > { %s1001_s30 = sld [smem:[#allocation8_spill]]  ;;  %s1002_s20 = sld [smem:[#allocation9_spill]] }
 0x1f8   : > { %s1003_s12 = smov %s728_s13  ;;  %s1004_s13 = smov %s732_s14 }
 0x1f9   : > { %s1005_s14 = smov %s870_s8  ;;  %s1006_s15 = smov %s748_s18 }
 0x1fa   : > { %s1007_s16 = smov %s752_s19  ;;  %15 = sbr.rel (!%p13_p11) target bundleno = 6 (0x6), region = 74 }
 0x1fc   : > { %s1008_s18 = smov %s1000_s27 }
 0x1fd   : > { %s1009_s19 = smov %s1001_s30 }
 0x201   :  { %415 = vsyncpa [#allocation4], 1 }
 0x202   :  { %417 = vsyncpa [#allocation4 + $0x1], 1 }

// kernel: transformer_lm_forward.9
= control target key start
LH: loop header
LB: loop body
LE: loop exit
PB: predicated region body
PF: predicated region fallthrough
CT: control target
= control target key end

     0   :  { %s1382_s0 = inlined_call_operand.vmem [shape: bf16[2,16,32], index: 0, kind: input, shape index: {}]   ;;  %s1383_s1 = inlined_call_operand.vmem [shape: f32[1,32], index: 1, kind: input, shape index: {}]   ;;  %s1384_s2 = inlined_call_operand.vmem [shape: bf16[256,32], index: 2, kind: input, shape index: {}]   ;;  %s1385_s3 = inlined_call_operand.vmem [shape: bf16[256,32], index: 3, kind: input, shape index: {}]   ;;  %s1386_s4 = inlined_call_operand.vmem [shape: bf16[32,256], index: 4, kind: input, shape index: {}]   ;;  %s1387_s5 = inlined_call_operand.vmem [shape: bf16[2,16,32], index: 5, kind: output, shape index: {}]  }
   0x1   :  { %1388 = sst [smem:[#allocation6_spill]] %s1386_s4 }
   0x2   :  { %s1182_s18 = smov 0   ;;  %s1184_s19 = smov 0  }
   0x3   :  { %s1186_s20 = smov 0   ;;  %s1188_s21 = smov 0  }
   0x4   :  { %s1190_s22 = smov 0   ;;  %s1192_s23 = smov 0  }
   0x5   :  { %s1194_s24 = smov 0   ;;  %s1196_s25 = smov 0  }
   0x6   :  { %s1198_s26 = smov 0  }
   0x7 LB: > { %s27_s27 = sadd.s32 1, %s1135_s23  ;;  %s30_s28 = sadd.s32 1, %s1139_s24  ;;  %s1147_s26 = sphi %s1198_s26, %s15_s26   ;;  %s1143_s25 = sphi %s1196_s25, %s1399_s25   ;;  %s1139_s24 = sphi %s1194_s24, %s1398_s24   ;;  %s1135_s23 = sphi %s1192_s23, %s1397_s23   ;;  %s1131_s22 = sphi %s1190_s22, %s1396_s22   ;;  %s1127_s21 = sphi %s1188_s21, %s1395_s21   ;;  %s1123_s20 = sphi %s1186_s20, %s1394_s20   ;;  %s1119_s19 = sphi %s1184_s19, %s1393_s19   ;;  %s1115_s18 = sphi %s1182_s18, %s1392_s18  }
   0x8   : > { %p28_p0 = scmp.ge.s32.totalorder %s27_s27, 2  ;;  %s34_s29 = sadd.s32 1, %s1143_s25 }
   0x9   : > { %p149_p1 = scmp.ne.s32.totalorder %s1119_s19, %s1115_s18  ;;  %p150_p2 = scmp.eq.s32.totalorder %s1147_s26, 0 }
   0xa   : > { %s1401_s27 = smov (%p28_p0, %s27_s27), 0  ;;  %s1403_s28 = smov (!%p28_p0, %s30_s28), %s1139_s24 }
   0xb   : > { %s139_s30 = ssub.s32 %s1135_s23, %s1401_s27  ;;  %p32_p3 = scmp.ge.s32.totalorder %s1403_s28, 2 }
   0xc   : > { %p140_p4 = scmp.eq.s32.totalorder %s139_s30, 0  ;;  %s142_s6 = sadd.s32 1, %s1119_s19 }
   0xd   : > { %p151_p5 = por %p150_p2, %p149_p1  ;;  %s1405_s28 = smov (%p32_p3, %s1403_s28), 0 }
   0xe   : > { %s1407_s29 = smov (!%p32_p3, %s34_s29), %s1143_s25  ;;  %p870_p7 = scmp.ge.s32.totalorder %s1147_s26, 8 }
   0xf   : > { %s1243_s7 = scalar_select %p140_p4, %s1119_s19, %s142_s6  }
  0x10   : > { %p36_p6 = scmp.ge.s32.totalorder %s1407_s29, 2  ;;  %206 = sbr.rel (%p870_p7) target bundleno = 35 (0x23), region = 20 }
  0x12   : > { %s1409_s29 = smov (%p36_p6, %s1407_s29), 0 }
  0x13   : > { %1389 = sst [smem:[#allocation5_spill]] %s1409_s29 }
  0x17   : > { %238 = sbr.rel (!%p151_p5) target bundleno = 35 (0x23), region = 36  ;;  %s240_s8 = sand.u32 (%p151_p5), 1, %s1119_s19  }
  0x18   : > { %s872_s9 = sshll.u32 (%p151_p5), %s1135_s23, 2  ;;  %s871_s10 = sshll.u32 (%p151_p5), %s240_s8, 4 }
  0x19   : > { %s1390_s4 = sld [smem:[#allocation6_spill]] (%p151_p5)  ;;  %s242_s14 = scalar_lea.vmem (%p151_p5), [#allocation4], %s871_s10 }
  0x1f   : > { %s244_s13 = scalar_lea.vmem %s1390_s4, %s872_s9 }
  0x20   : > { %v260_v0 = vld [vmem:[%s244_s13] sm:$0xf]  ;;  %v262_v1 = vld [vmem:[%s244_s13 + $0x8] sm:$0xf]  ;;  %v264_v2 = vld [vmem:[%s244_s13 + $0x10] sm:$0xf] }
  0x21   : > { %261 = vst [vmem:[%s242_s14] sm:$0xf] %v260_v0  ;;  %263 = vst [vmem:[%s242_s14 + $0x4] sm:$0xf] %v262_v1  ;;  %v266_v3 = vld [vmem:[%s244_s13 + $0x18] sm:$0xf] }
  0x22   : > { %265 = vst [vmem:[%s242_s14 + $0x8] sm:$0xf] %v264_v2  ;;  %267 = vst [vmem:[%s242_s14 + $0xc] sm:$0xf] %v266_v3 }
  0x23 PF: > { %p873_p8 = scmp.ge.s32.totalorder %s1147_s26, 1  ;;  %p297_p9 = scmp.lt.s32.totalorder %s1147_s26, 9 }
  0x25   : > { %p298_p10 = pnand %p873_p8, %p297_p9 }
  0x26   : > { %s304_s15 = sand.u32 (!%p298_p10), 1, %s1115_s18   ;;  %p352_p11 = scmp.lt.s32.totalorder (!%p298_p10), %s1131_s22, 1 }
  0x27   : > { %301 = sbr.rel (%p298_p10) target bundleno = 757 (0x2f5), region = 77  ;;  %s1257_s16 = sshll.u32 (!%p298_p10), %s304_s15, 4 }
  0x28   : > { %p354_p12 = scmp.lt.s32.totalorder (!%p298_p10), %s1127_s21, 1  ;;  %s877_s17 = sshll.u32 (!%p298_p10), %s1123_s20, 4 }
  0x29   : > { %p361_p13 = scmp.lt.s32.totalorder (!%p298_p10), %s877_s17, 31  ;;  %p883_p0 = scmp.ne.s32.totalorder (!%p298_p10), %s1123_s20, 0 }
  0x2e   : > { %s1411_s22 = smov (!%p352_p11, %s1131_s22), 1  ;;  %s1413_s21 = smov (!%p354_p12, %s1127_s21), 1 }
  0x2f   : > { %s875_s30 = sshll.u32 %s1411_s22, 1  ;;  %s1415_s17 = smov (!%p361_p13, %s877_s17), 31  ;;  %vm389_vm0 = vcmask (!%p883_p0), 261120   ;;  %v1149_v6 = vmov (!%p883_p0), 0.0   ;;  %v884_v13 = vld [vmem:[%s1383_s1] ss:$0 sm:$0xff] (!%p883_p0) }
  0x30   : > { %s357_s6 = sadd.s32 %s875_s30, %s1413_s21  ;;  %s878_s14 = sshll.u32 %s1415_s17, 2  ;;  %408 = vst.msk [vmem:[#allocation3] sm:$0xff] (!%p883_p0), %vm389_vm0, %v1149_v6  ;;  %vm406_vm1 = vcmask (!%p883_p0), 257024  }
  0x31   : > { %s876_s8 = sshll.u32 %s357_s6, 2  ;;  %s1276_s29 = scalar_lea.vmem %s1384_s2, %s878_s14 }
  0x32   : > { %s1266_s11 = scalar_lea.vmem %s1382_s0, %s876_s8  ;;  %s1271_s18 = scalar_lea.vmem %s1387_s5, %s876_s8 }
  0x33   : > { %s1281_s30 = scalar_lea.vmem %s1385_s3, %s878_s14  ;;  %s306_s6 = scalar_lea.vmem [#allocation4], %s1257_s16  ;;  %v385_v4 = vld [vmem:[%s1266_s11] sm:$0xf] (!%p883_p0) }
  0x34   : > { %384 = sbr.rel (%p883_p0) target bundleno = 221 (0xdd), region = 85  ;;  %v386_v5 = vunpack.c.l.bf16 (!%p883_p0), %v385_v4 }
  0x36   : > { %v388_v7 = vmul.f32 (!%p883_p0), %v386_v5, %v386_v5 }
  0x38   : > { %v390_v8 = vsel (!%p883_p0), %vm389_vm0, %v388_v7, 0.0 }
  0x39   : > { %391 = vadd.xlane.f32.xlu0 (!%p883_p0), %v390_v8 }
  0xc6   : > { %v392_v9 = vpop.xlane.xlu0 %391 }
  0xc7   : > { %v394_v10 = vmul.f32 0.03125, %v392_v9 }
  0xc9   : > { %v395_v11 = vadd.f32 1e-05, %v394_v10 }
  0xcb   : > { %1053 = vrsqrt.f32 %v395_v11 }
  0xd5   : > { %v1054_v12 = vpop.eup %1053 }
  0xd6   : > { %v397_v14 = vmul.f32 %v1054_v12, %v386_v5 }
  0xd8   : > { %v404_v15 = vmul.f32 %v884_v13, %v397_v14 }
  0xda   : > { %v405_v16 = vpack.c.bf16 %v404_v15, %v404_v15 }
  0xdc   : > { %407 = vst.msk [vmem:[#allocation2] sm:$0xf] %vm406_vm1, %v405_v16 }
  0xdd PF: > { %v1055_v17 = vld [vmem:[%s1276_s29] sm:$0xff]   ;;  %v1150_v18 = vmov 0.0   ;;  %vm466_vm2 = vcmask 261120   ;;  %v1056_v20 = vld [vmem:[%s1276_s29 + $0x8] sm:$0xff]   ;;  %v1057_v25 = vld [vmem:[%s1276_s29 + $0x10] sm:$0xff]   ;;  %vm1151_vm3 = vmmov 0  }
  0xde   : > { %930 = vmatprep.subr.bf16.mxu0 %v1150_v18  ;;  %950 = vmatprep.subr.bf16.mxu1 %v1150_v18  ;;  %v471_v19 = vsel %vm466_vm2, %v1055_v17, 0  ;;  %v1059_v21 = vld [vmem:[%s1281_s30] sm:$0xff]   ;;  %v474_v23 = vsel %vm466_vm2, %v1056_v20, 0  ;;  %v1061_v24 = vld [vmem:[%s1281_s30 + $0x8] sm:$0xff]   ;;  %v477_v27 = vsel %vm466_vm2, %v1057_v25, 0  ;;  %v1063_v28 = vld [vmem:[%s1281_s30 + $0x10] sm:$0xff]  }
  0xdf   : > { %931 = vmatpush3.bf16.xpose.msra.mxu0 %v471_v19  ;;  %v591_v22 = vsel %vm466_vm2, %v1059_v21, 0  ;;  %v594_v26 = vsel %vm466_vm2, %v1061_v24, 0  ;;  %946 = vmatprep.mubr.msk.bf16.mxu0 %vm1151_vm3, %v1150_v18  ;;  %v1058_v29 = vld [vmem:[%s1276_s29 + $0x18] sm:$0xff]   ;;  %v597_v30 = vsel %vm466_vm2, %v1063_v28, 0  ;;  %v1060_v33 = vld [vmem:[%s1276_s29 + $0x20] sm:$0xff]   ;;  %v1062_v37 = vld [vmem:[%s1276_s29 + $0x28] sm:$0xff]  }
  0xe0   : > { %932 = vmatprep.subr.bf16.mxu0 %v1150_v18  ;;  %951 = vmatpush3.bf16.xpose.msra.mxu1 %v591_v22  ;;  %v480_v31 = vsel %vm466_vm2, %v1058_v29, 0  ;;  %v1065_v32 = vld [vmem:[%s1281_s30 + $0x18] sm:$0xff]   ;;  %v483_v35 = vsel %vm466_vm2, %v1060_v33, 0  ;;  %v1067_v36 = vld [vmem:[%s1281_s30 + $0x20] sm:$0xff]   ;;  %v486_v39 = vsel %vm466_vm2, %v1062_v37, 0  ;;  %v1068_v40 = vld [vmem:[%s1281_s30 + $0x28] sm:$0xff]  }
  0xe1   : > { %952 = vmatprep.subr.bf16.mxu1 %v1150_v18  ;;  %966 = vmatprep.mubr.msk.bf16.mxu1 %vm1151_vm3, %v1150_v18  ;;  %v600_v34 = vsel %vm466_vm2, %v1065_v32, 0  ;;  %v603_v38 = vsel %vm466_vm2, %v1067_v36, 0  ;;  %v1064_v41 = vld [vmem:[%s1276_s29 + $0x30] sm:$0xff]   ;;  %v606_v42 = vsel %vm466_vm2, %v1068_v40, 0  ;;  %v1066_v45 = vld [vmem:[%s1276_s29 + $0x38] sm:$0xff]   ;;  %v663_v4 = vld [vmem:[#allocation3] sm:$0xff] }
  0xe2   : > { %v489_v43 = vsel %vm466_vm2, %v1064_v41, 0  ;;  %v1069_v44 = vld [vmem:[%s1281_s30 + $0x30] sm:$0xff]   ;;  %v492_v47 = vsel %vm466_vm2, %v1066_v45, 0  ;;  %v1070_v48 = vld [vmem:[%s1281_s30 + $0x38] sm:$0xff]   ;;  %p906_p1 = scmp.ne.s32.totalorder %s1123_s20, 1 }
  0xe3   : > { %v609_v46 = vsel %vm466_vm2, %v1069_v44, 0  ;;  %v612_v49 = vsel %vm466_vm2, %v1070_v48, 0  ;;  %v409_v50 = vld [vmem:[#allocation2] sm:$0xf]  ;;  %v1072_v52 = vld [vmem:[%s306_s6 + $0x8] sm:$0xff]   ;;  %vm731_vm4 = vcmask (!%p906_p1), 257024  }
  0xe4   : > { %v1071_v51 = vld [vmem:[%s306_s6] sm:$0xff]  }
  0xe5   : > { %v726_v10 = vld [vmem:[%s1266_s11] sm:$0xf] (!%p906_p1) }
  0xe6   : > { %v727_v12 = vunpack.c.l.bf16 (!%p906_p1), %v726_v10 }
  0xe7   : > { %933 = vmatpush3.bf16.xpose.msra.mxu0 %v474_v23 }
  0xe8   : > { %934 = vmatprep.subr.bf16.mxu0 %v1150_v18  ;;  %953 = vmatpush3.bf16.xpose.msra.mxu1 %v594_v26 }
  0xe9   : > { %954 = vmatprep.subr.bf16.mxu1 %v1150_v18 }
  0xef   : > { %935 = vmatpush3.bf16.xpose.msra.mxu0 %v477_v27 }
  0xf0   : > { %936 = vmatprep.subr.bf16.mxu0 %v1150_v18  ;;  %955 = vmatpush3.bf16.xpose.msra.mxu1 %v597_v30 }
  0xf1   : > { %956 = vmatprep.subr.bf16.mxu1 %v1150_v18 }
  0xf7   : > { %937 = vmatpush3.bf16.xpose.msra.mxu0 %v480_v31 }
  0xf8   : > { %938 = vmatprep.subr.bf16.mxu0 %v1150_v18  ;;  %957 = vmatpush3.bf16.xpose.msra.mxu1 %v600_v34 }
  0xf9   : > { %958 = vmatprep.subr.bf16.mxu1 %v1150_v18 }
  0xff   : > { %939 = vmatpush3.bf16.xpose.msra.mxu0 %v483_v35 }
 0x100   : > { %940 = vmatprep.subr.bf16.mxu0 %v1150_v18  ;;  %959 = vmatpush3.bf16.xpose.msra.mxu1 %v603_v38 }
 0x101   : > { %960 = vmatprep.subr.bf16.mxu1 %v1150_v18 }
 0x107   : > { %941 = vmatpush3.bf16.xpose.msra.mxu0 %v486_v39 }
 0x108   : > { %942 = vmatprep.subr.bf16.mxu0 %v1150_v18  ;;  %961 = vmatpush3.bf16.xpose.msra.mxu1 %v606_v42 }
 0x109   : > { %962 = vmatprep.subr.bf16.mxu1 %v1150_v18 }
 0x10f   : > { %943 = vmatpush3.bf16.xpose.msra.mxu0 %v489_v43 }
 0x110   : > { %944 = vmatprep.subr.bf16.mxu0 %v1150_v18  ;;  %963 = vmatpush3.bf16.xpose.msra.mxu1 %v609_v46 }
 0x111   : > { %964 = vmatprep.subr.bf16.mxu1 %v1150_v18 }
 0x117   : > { %945 = vmatpush3.bf16.xpose.msra.mxu0 %v492_v47 }
 0x118   : > { %970 = vmatprep.subr.bf16.mxu0 %v1150_v18  ;;  %965 = vmatpush3.bf16.xpose.msra.mxu1 %v612_v49 }
 0x11e   : > { %947 = vmatmul.mubr.msk.bf16.vlgmr.msra.gmra.mrb[0].mxu0 %vm466_vm2, %v409_v50 }
 0x11f   : > { %974 = vmatprep.mubr.msk.bf16.mxu0 %vm1151_vm3, %v1150_v18  ;;  %967 = vmatmul.mubr.msk.bf16.vlgmr.msra.gmra.mrb[0].mxu1 %vm466_vm2, %v409_v50 }
 0x120   : > { %971 = vmatpush3.bf16.xpose.msra.mxu0 %v1071_v51 }
 0x121   : > { %972 = vmatprep.subr.bf16.mxu0 %v1150_v18 }
 0x128   : > { %973 = vmatpush3.bf16.xpose.msra.mxu0 %v1072_v52 }
 0x1f1   : > { %v528_v53 = vpop.f32.mrb[0].mxu0 }
 0x1f2   : > { %v903_v54 = vmul.f32 -1.442695, %v528_v53  ;;  %v948_v55 = vpop.f32.mrb[1].mxu0  ;;  %v648_v58 = vpop.f32.mrb[0].mxu1 }
 0x1f3   : > { %v531_v56 = vpop.f32.mrb[2].mxu0  ;;  %v968_v59 = vpop.f32.mrb[1].mxu1 }
 0x1f4   : > { %1073 = vpow2.f32 %v903_v54  ;;  %v949_v57 = vpop.f32.mrb[3].mxu0  ;;  %v651_v60 = vpop.f32.mrb[2].mxu1 }
 0x1f5   : > { %v969_v61 = vpop.f32.mrb[3].mxu1 }
 0x1fe   : > { %v1074_v62 = vpop.eup %1073 }
 0x1ff   : > { %v657_v63 = vadd.f32 1.0, %v1074_v62 }
 0x201   : > { %1075 = vrcp.f32 %v657_v63 }
 0x20b   : > { %v1076_v0 = vpop.eup %1075 }
 0x20c   : > { %v660_v1 = vmul.f32 %v1076_v0, %v528_v53 }
 0x20e   : > { %v661_v2 = vmul.f32 %v660_v1, %v648_v58 }
 0x210   : > { %v662_v3 = vpack.c.bf16 %v661_v2, %v661_v2 }
 0x212   : > { %975 = vmatmul.mubr.bf16.vlgmr.msra.gmra.mrb[4].mxu0 %v662_v3 }
 0x2e2   : > { %725 = sbr.rel (%p906_p1) target bundleno = 757 (0x2f5), region = 89 }
 0x2e5   : > { %v714_v5 = vpop.f32.mrb[4].mxu0 }
 0x2e6   : > { %v720_v6 = vadd.f32 %v714_v5, %v663_v4  ;;  %v976_v7 = vpop.f32.mrb[5].mxu0 }
 0x2e7   : > { %v717_v8 = vpop.f32.mrb[6].mxu0 }
 0x2e8   : > { %721 = vst.msk [vmem:[#allocation3] sm:$0xff] %vm466_vm2, %v720_v6  ;;  %v977_v9 = vpop.f32.mrb[7].mxu0 }
 0x2ef   : > { %v728_v11 = vld [vmem:[#allocation3] sm:$0xff] }
 0x2f0   : > { %v729_v13 = vadd.f32 %v728_v11, %v727_v12 }
 0x2f2   : > { %v730_v14 = vpack.c.bf16 %v729_v13, %v729_v13 }
 0x2f4   : > { %732 = vst.msk [vmem:[%s1271_s18] sm:$0xf] %vm731_vm4, %v730_v14 }
 0x2f5 PF: > { %s15_s26 = sadd.s32 1, %s1147_s26   ;;  %s1391_s29 = sld [smem:[#allocation5_spill]] }
 0x2f6   : > { %p12_p2 = scmp.ge.s32.totalorder %s15_s26, 10   ;;  %s1392_s18 = smov %s1119_s19 }
 0x2f7   : > { %s1393_s19 = smov %s1243_s7  ;;  %s1394_s20 = smov %s1135_s23 }
 0x2f8   : > { %s1395_s21 = smov %s1139_s24  ;;  %s1396_s22 = smov %s1143_s25 }
 0x2f9   : > { %s1397_s23 = smov %s1401_s27  ;;  %s1398_s24 = smov %s1405_s28 }
 0x2fa   :  { %14 = sbr.rel (!%p12_p2) target bundleno = 7 (0x7), region = 133 }
 0x2fb   : > { %s1399_s25 = smov %s1391_s29 }

// kernel: transformer_lm_forward.8
= control target key start
LH: loop header
LB: loop body
LE: loop exit
PB: predicated region body
PF: predicated region fallthrough
CT: control target
= control target key end

     0   :  { %s1531_s18 = smov 0   ;;  %s1533_s19 = smov 0   ;;  %s1764_s0 = inlined_call_operand.vmem [shape: bf16[2,16,32], index: 0, kind: input, shape index: {}]   ;;  %s1765_s1 = inlined_call_operand.vmem [shape: bf16[2,16,32], index: 1, kind: input, shape index: {}]   ;;  %s1766_s2 = inlined_call_operand.vmem [shape: bf16[2,16,32], index: 2, kind: input, shape index: {}]   ;;  %s1767_s3 = inlined_call_operand.vmem [shape: bf16[2,16,32], index: 3, kind: input, shape index: {}]   ;;  %s1768_s4 = inlined_call_operand.vmem [shape: bf16[32,32], index: 4, kind: input, shape index: {}]   ;;  %s1769_s5 = inlined_call_operand.vmem [shape: bf16[2,16,32], index: 5, kind: output, shape index: {}]  }
   0x1   :  { %s1535_s20 = smov 0   ;;  %s1537_s21 = smov 0  }
   0x2   :  { %s1539_s22 = smov 0   ;;  %s1541_s23 = smov 0  }
   0x3   :  { %s1543_s24 = smov 0  }
   0x4 LB: > { %s27_s25 = sadd.s32 1, %s1473_s21  ;;  %s30_s26 = sadd.s32 1, %s1477_s22  ;;  %s1485_s24 = sphi %s1543_s24, %s15_s24   ;;  %s1481_s23 = sphi %s1541_s23, %s1779_s23   ;;  %s1477_s22 = sphi %s1539_s22, %s1778_s22   ;;  %s1473_s21 = sphi %s1537_s21, %s1777_s21   ;;  %s1469_s20 = sphi %s1535_s20, %s1776_s20   ;;  %s1465_s19 = sphi %s1533_s19, %s1775_s19   ;;  %s1461_s18 = sphi %s1531_s18, %s1774_s18  }
   0x5   : > { %p28_p0 = scmp.ge.s32.totalorder %s27_s25, 2  ;;  %p1222_p1 = scmp.ge.s32.totalorder %s1485_s24, 1 }
   0x6   : > { %p258_p2 = scmp.lt.s32.totalorder %s1485_s24, 9  ;;  %s34_s27 = sadd.s32 1, %s1481_s23 }
   0x7   : > { %s1781_s25 = smov (%p28_p0, %s27_s25), 0  ;;  %s1783_s26 = smov (!%p28_p0, %s30_s26), %s1477_s22 }
   0x8   : > { %p259_p3 = pnand %p1222_p1, %p258_p2  ;;  %p32_p4 = scmp.ge.s32.totalorder %s1783_s26, 2 }
   0x9   : > { %p316_p6 = scmp.lt.s32.totalorder (!%p259_p3), %s1469_s20, 1  ;;  %p318_p7 = scmp.lt.s32.totalorder (!%p259_p3), %s1465_s19, 1 }
   0xa   : > { %s1785_s26 = smov (%p32_p4, %s1783_s26), 0  ;;  %s1787_s27 = smov (!%p32_p4, %s34_s27), %s1481_s23 }
   0xb   : > { %1770 = sst [smem:[#allocation5_spill]] %s1785_s26  ;;  %p36_p5 = scmp.ge.s32.totalorder %s1787_s27, 2 }
   0xc   : > { %262 = sbr.rel (%p259_p3) target bundleno = 1854 (0x73e), region = 40  ;;  %p326_p8 = scmp.lt.s32.totalorder (!%p259_p3), %s1461_s18, 1 }
   0xd   : > { %s1789_s27 = smov (%p36_p5, %s1787_s27), 0  ;;  %p1233_p9 = scmp.ne.s32.totalorder (!%p259_p3), %s1461_s18, 0 }
   0xe   : > { %1771 = sst [smem:[#allocation6_spill]] %s1789_s27 }
  0x13   : > { %s1791_s20 = smov (!%p316_p6, %s1469_s20), 1  ;;  %vm361_vm0 = vcmask (!%p1233_p9), 7168   ;;  %vm370_vm1 = vcmask (!%p1233_p9), 261120   ;;  %v1487_v0 = vmov (!%p1233_p9), -inf   ;;  %v1488_v1 = vmov (!%p1233_p9), 0.0  }
  0x14   : > { %s319_s28 = scalar_select %p318_p7, %s1465_s19, 1 }
  0x15   : > { %s1223_s29 = sshll.u32 %s1791_s20, 1  ;;  %362 = vst.msk [vmem:[#allocation3] sm:$0xff] (!%p1233_p9), %vm361_vm0, %v1487_v0  ;;  %363 = vst.msk [vmem:[#allocation3 + $0x8] sm:$0xff] (!%p1233_p9), %vm361_vm0, %v1487_v0 }
  0x16   : > { %s321_s30 = sadd.s32 %s1223_s29, %s319_s28  ;;  %364 = vst.msk [vmem:[#allocation3 + $0x10] sm:$0xff] (!%p1233_p9), %vm361_vm0, %v1487_v0  ;;  %365 = vst.msk [vmem:[#allocation3 + $0x18] sm:$0xff] (!%p1233_p9), %vm361_vm0, %v1487_v0 }
  0x17   : > { %s1580_s6 = sshll.u32 %s321_s30, 2  ;;  %360 = sbr.rel (%p1233_p9) target bundleno = 30 (0x1e), region = 44  ;;  %366 = vst.msk [vmem:[#allocation4] sm:$0xff] (!%p1233_p9), %vm361_vm0, %v1488_v1  ;;  %367 = vst.msk [vmem:[#allocation4 + $0x8] sm:$0xff] (!%p1233_p9), %vm361_vm0, %v1488_v1 }
  0x18   : > { %s323_s9 = scalar_lea.vmem %s1764_s0, %s1580_s6  ;;  %s347_s12 = scalar_lea.vmem %s1767_s3, %s1580_s6  ;;  %368 = vst.msk [vmem:[#allocation4 + $0x10] sm:$0xff] (!%p1233_p9), %vm361_vm0, %v1488_v1  ;;  %369 = vst.msk [vmem:[#allocation4 + $0x18] sm:$0xff] (!%p1233_p9), %vm361_vm0, %v1488_v1 }
  0x19   : > { %s327_s13 = scalar_select %p326_p8, %s1461_s18, 1 }
  0x1a   : > { %s355_s16 = scalar_lea.vmem %s1769_s5, %s1580_s6  ;;  %371 = vst.msk [vmem:[#allocation2] sm:$0xff] (!%p1233_p9), %vm370_vm1, %v1488_v1 }
  0x1b   : > { %s329_s17 = sadd.s32 %s1223_s29, %s327_s13 }
  0x1c   : > { %s1226_s20 = sshll.u32 %s329_s17, 2 }
  0x1d   : > { %s331_s27 = scalar_lea.vmem %s1765_s1, %s1226_s20  ;;  %s1601_s8 = scalar_lea.vmem %s1766_s2, %s1226_s20 }
  0x1e PF: > { %p1234_p10 = scmp.gt.s32.totalorder %s1461_s18, %s1465_s19 }
  0x1f   : > { %v377_v2 = vld [vmem:[%s331_s27] sm:$0xf] (!%p1234_p10)  ;;  %vm390_vm2 = vcmask (!%p1234_p10), 64512   ;;  %v1489_v3 = vmov (!%p1234_p10), 0.0   ;;  %vm1490_vm3 = vmmov (!%p1234_p10), 0   ;;  %v379_v6 = vlaneseq (!%p1234_p10)  ;;  %s1235_s29 = sshll.u32 (!%p1234_p10), %s1465_s19, 3 }
  0x20   : > { %375 = sbr.rel (%p1234_p10) target bundleno = 1454 (0x5ae), region = 48  ;;  %1273 = vmatprep.subr.bf16.mxu0 (!%p1234_p10), %v1489_v3  ;;  %v395_v4 = vsel (!%p1234_p10), %vm390_vm2, %v377_v2, 0  ;;  %1275 = vmatprep.mubr.msk.bf16.mxu0 (!%p1234_p10), %vm1490_vm3, %v1489_v3  ;;  %v376_v5 = vld [vmem:[%s323_s9] sm:$0xf] (!%p1234_p10)  ;;  %s1236_s10 = sshll.u32 (!%p1234_p10), %s1461_s18, 3  ;;  %v382_v9 = vstv (!%p1234_p10), %s1235_s29  ;;  %v1491_v19 = vmov (!%p1234_p10), 0   ;;  %v1240_v20 = vcombine.low (!%p1234_p10), %v377_v2, %v377_v2 }
  0x21   : > { %1274 = vmatpush3.bf16.xpose.msra.mxu0 (!%p1234_p10), %v395_v4  ;;  %1279 = vmatprep.subr.bf16.mxu1 (!%p1234_p10), %v1489_v3  ;;  %v380_v7 = vshrl.u32 (!%p1234_p10), %v379_v6, 7  ;;  %v385_v8 = vand.u32 (!%p1234_p10), 127, %v379_v6  ;;  %v387_v10 = vstv (!%p1234_p10), %s1236_s10  ;;  %s1492_s9 = smov (!%p1234_p10), 120   ;;  %v1239_v21 = vcombine.low (!%p1234_p10), %v376_v5, %v376_v5  ;;  %s1493_s11 = smov (!%p1234_p10), 112   ;;  %v1640_v22 = vld [vmem:[#allocation3] sm:$0xff] (!%p1234_p10)  ;;  %v578_v0 = vld [vmem:[#allocation3 + $0x8] sm:$0xff] (!%p1234_p10) }
  0x22   : > { %1281 = vmatprep.mubr.msk.bf16.mxu1 (!%p1234_p10), %vm1490_vm3, %v1489_v3  ;;  %1291 = vmatprep.subr.bf16.mxu0 (!%p1234_p10), %v1489_v3  ;;  %s1494_s13 = smov (!%p1234_p10), 104   ;;  %vm460_vm5 = vcmask (!%p1234_p10), 7168   ;;  %v378_v26 = vld [vmem:[%s1601_s8] sm:$0xf] (!%p1234_p10)  ;;  %vm467_vm6 = vcmask (!%p1234_p10), 1043456   ;;  %v721_v6 = vld [vmem:[#allocation3 + $0x10] sm:$0xff] (!%p1234_p10) }
  0x23   : > { %v1624_v11 = vadd.s32 (!%p1234_p10), %v382_v9, %v380_v7  ;;  %v1626_v12 = vadd.s32 (!%p1234_p10), %v387_v10, %v385_v8  ;;  %1399 = vset.pattern.permute.xlu0 (!%p1234_p10), %v1491_v19  ;;  %1400 = vset.pattern.permute.xlu1 (!%p1234_p10), %v1491_v19  ;;  %v469_v27 = vsel (!%p1234_p10), %vm467_vm6, %v378_v26, 0  ;;  %s1495_s14 = smov (!%p1234_p10), 8   ;;  %s1496_s15 = smov (!%p1234_p10), 16   ;;  %vm667_vm7 = vcmask (!%p1234_p10), 130112  }
  0x24   : > { %528 = vrot.lane.b32.xlu1 (!%p1234_p10), %v1240_v20, %s1492_s9  ;;  %1280 = vmatpush3.bf16.msra.mxu1 (!%p1234_p10), %v469_v27  ;;  %s1497_s17 = smov (!%p1234_p10), 24   ;;  %vm807_vm8 = vcmask (!%p1234_p10), 195712   ;;  %vm947_vm9 = vcmask (!%p1234_p10), 261312  }
  0x25   : > { %vm389_vm4 = vcmp.ge.s32.totalorder (!%p1234_p10), %v1624_v11, %v1626_v12  ;;  %1285 = vmatprep.subr.bf16.mxu1 (!%p1234_p10), %v1489_v3  ;;  %v861_v12 = vld [vmem:[#allocation3 + $0x18] sm:$0xff] (!%p1234_p10) }
  0x28   : > { %1276 = vmatmul.mubr.msk.bf16.vlgmr.msra.gmra.mrb[0].mxu0 %vm390_vm2, %v376_v5  ;;  %523 = vrot.lane.b32.xlu1 %v1239_v21, %s1492_s9  ;;  %v1242_v5 = vcombine.low %v378_v26, %v378_v26 }
  0x29   : > { %1293 = vmatprep.mubr.msk.bf16.mxu0 %vm1490_vm3, %v1489_v3 }
  0x2c   : > { %671 = vrot.lane.b32.xlu1 %v1240_v20, %s1493_s11 }
  0x30   : > { %669 = vrot.lane.b32.xlu1 %v1239_v21, %s1493_s11 }
  0x34   : > { %811 = vrot.lane.b32.xlu1 %v1240_v20, %s1494_s13 }
  0x38   : > { %809 = vrot.lane.b32.xlu1 %v1239_v21, %s1494_s13 }
  0x96   : > { %v529_v31 = vpop.permute.xlu1 %528 }
  0x97   : > { %v534_v34 = vsel %vm390_vm2, %v529_v31, 0 }
  0x9a   : > { %v524_v32 = vpop.permute.xlu1 %523 }
  0x9e   : > { %v672_v36 = vpop.permute.xlu1 %671 }
  0x9f   : > { %v677_v38 = vsel %vm390_vm2, %v672_v36, 0 }
  0xa2   : > { %v670_v37 = vpop.permute.xlu1 %669 }
  0xa6   : > { %v812_v39 = vpop.permute.xlu1 %811 }
  0xa7   : > { %v817_v40 = vsel %vm390_vm2, %v812_v39, 0 }
  0xaa   : > { %v810_v41 = vpop.permute.xlu1 %809 }
  0xfb   : > { %v431_v13 = vpop.f32.mrb[0].mxu0 }
  0xfc   : > { %v437_v14 = vsel %vm389_vm4, %v431_v13, -1e+30  ;;  %v1277_v15 = vpop.f32.mrb[1].mxu0 }
  0xfd   : > { %v434_v16 = vpop.f32.mrb[2].mxu0  ;;  %v440_v17 = vsel %vm390_vm2, %v437_v14, -inf }
  0xfe   : > { %441 = vmax.xlane.f32.xlu0 %v440_v17  ;;  %v1278_v18 = vpop.f32.mrb[3].mxu0 }
 0x18b   : > { %v442_v23 = vpop.xlane.xlu0 %441 }
 0x18c   : > { %v443_v24 = vmax.f32 %v1640_v22, %v442_v23 }
 0x18e   : > { %v444_v25 = vsub.f32 %v1640_v22, %v443_v24  ;;  %462 = vst.msk [vmem:[#allocation3] sm:$0xff] %vm460_vm5, %v443_v24  ;;  %449 = vperm.xlu0 %1399, %v443_v24  }
 0x190   : > { %v445_v1 = vmul.f32 1.442695, %v444_v25 }
 0x20d   : > { %v450_v28 = vpop.permute.xlu0 %449 }
 0x20e   : > { %v452_v29 = vsub.f32 %v437_v14, %v450_v28  ;;  %v511_v28 = vld [vmem:[#allocation2] sm:$0xff] }
 0x210   : > { %v453_v30 = vmul.f32 1.442695, %v452_v29 }
 0x212   : > { %1403 = vpow2.f32 %v453_v30 }
 0x213   : > { %1405 = vpow2.f32 %v445_v1 }
 0x21c   : > { %v1648_v33 = vpop.eup %1403 }
 0x21d   : > { %v463_v35 = vpack.c.bf16 %v1648_v33, %v1648_v33  ;;  %v1687_v11 = vpop.eup %1405  ;;  %v456_v18 = vsel %vm390_vm2, %v1648_v33, 0.0 }
 0x21f   : > { %1282 = vmatmul.mubr.msk.bf16.vlgmr.msra.gmra.mrb[0].mxu1 %vm390_vm2, %v463_v35 }
 0x220   : > { %1286 = vmatpush3.bf16.xpose.msra.mxu1 %v534_v34  ;;  %1287 = vmatprep.mubr.msk.bf16.mxu1 %vm1490_vm3, %v1489_v3 }
 0x221   : > { %1297 = vmatprep.subr.bf16.mxu1 %v1489_v3 }
 0x227   : > { %1288 = vmatmul.mubr.msk.bf16.vlgmr.msra.gmra.mrb[4].mxu1 %vm390_vm2, %v524_v32 }
 0x228   : > { %1298 = vmatpush3.bf16.xpose.msra.mxu1 %v677_v38  ;;  %1299 = vmatprep.mubr.msk.bf16.mxu1 %vm1490_vm3, %v1489_v3 }
 0x229   : > { %1309 = vmatprep.subr.bf16.mxu1 %v1489_v3 }
 0x22f   : > { %1300 = vmatmul.mubr.msk.bf16.vlgmr.msra.gmra.mrb[8].mxu1 %vm390_vm2, %v670_v37 }
 0x230   : > { %1310 = vmatpush3.bf16.xpose.msra.mxu1 %v817_v40  ;;  %1311 = vmatprep.mubr.msk.bf16.mxu1 %vm1490_vm3, %v1489_v3 }
 0x237   : > { %1312 = vmatmul.mubr.msk.bf16.vlgmr.msra.gmra.mrb[12].mxu1 %vm390_vm2, %v810_v41 }
 0x2f2   : > { %v1667_v42 = vpop.f32.mrb[0].mxu1 }
 0x2f3   : > { %v1283_v43 = vpop.f32.mrb[1].mxu1 }
 0x2f4   : > { %v508_v44 = vpop.f32.mrb[2].mxu1 }
 0x2f5   : > { %v1284_v45 = vpop.f32.mrb[3].mxu1 }
 0x2fa   : > { %v570_v46 = vpop.f32.mrb[4].mxu1 }
 0x2fb   : > { %v576_v47 = vsel %vm389_vm4, %v570_v46, -1e+30  ;;  %v1289_v48 = vpop.f32.mrb[5].mxu1 }
 0x2fc   : > { %v573_v49 = vpop.f32.mrb[6].mxu1  ;;  %v581_v50 = vsel %vm390_vm2, %v576_v47, -inf }
 0x2fd   : > { %582 = vmax.xlane.f32.xlu1 %v581_v50  ;;  %v1290_v51 = vpop.f32.mrb[7].mxu1  ;;  %v439_v50 = vld [vmem:[#allocation4] sm:$0xff] }
 0x2fe   : > { %v455_v51 = vmul.f32 %v1687_v11, %v439_v50 }
 0x302   : > { %v713_v52 = vpop.f32.mrb[8].mxu1 }
 0x303   : > { %v719_v53 = vsel %vm389_vm4, %v713_v52, -1e+30  ;;  %v1301_v54 = vpop.f32.mrb[9].mxu1 }
 0x304   : > { %v716_v55 = vpop.f32.mrb[10].mxu1  ;;  %v724_v56 = vsel %vm390_vm2, %v719_v53, -inf }
 0x305   : > { %725 = vmax.xlane.f32.xlu0 %v724_v56  ;;  %v1302_v57 = vpop.f32.mrb[11].mxu1  ;;  %v580_v55 = vld [vmem:[#allocation4 + $0x8] sm:$0xff] }
 0x30a   : > { %v853_v58 = vpop.f32.mrb[12].mxu1 }
 0x30b   : > { %v1680_v59 = vsel %vm389_vm4, %v853_v58, -1e+30  ;;  %v1313_v60 = vpop.f32.mrb[13].mxu1 }
 0x30c   : > { %v856_v61 = vpop.f32.mrb[14].mxu1  ;;  %v864_v62 = vsel %vm390_vm2, %v1680_v59, -inf }
 0x30d   : > { %865 = vmax.xlane.f32.xlu1 %v864_v62  ;;  %v1314_v63 = vpop.f32.mrb[15].mxu1 }
 0x38a   : > { %v583_v2 = vpop.xlane.xlu1 %582 }
 0x38b   : > { %v584_v4 = vmax.f32 %v578_v0, %v583_v2 }
 0x38d   : > { %602 = vst.msk [vmem:[#allocation3 + $0x8] sm:$0xff] %vm460_vm5, %v584_v4  ;;  %590 = vperm.xlu1 %1400, %v584_v4   ;;  %v585_v17 = vsub.f32 %v578_v0, %v584_v4 }
 0x38f   : > { %v586_v19 = vmul.f32 1.442695, %v585_v17 }
 0x391   : > { %607 = vrot.lane.b32.xlu1 %v1242_v5, %s1492_s9 }
 0x392   : > { %v726_v7 = vpop.xlane.xlu0 %725 }
 0x393   : > { %v727_v8 = vmax.f32 %v721_v6, %v726_v7 }
 0x395   : > { %v728_v9 = vsub.f32 %v721_v6, %v727_v8  ;;  %745 = vst.msk [vmem:[#allocation3 + $0x10] sm:$0xff] %vm460_vm5, %v727_v8  ;;  %733 = vperm.xlu0 %1399, %v727_v8  }
 0x397   : > { %v729_v10 = vmul.f32 1.442695, %v728_v9 }
 0x399   : > { %1407 = vpow2.f32 %v729_v10  ;;  %514 = vperm.xlu0 %1399, %v1687_v11  }
 0x39a   : > { %v866_v13 = vpop.xlane.xlu1 %865  ;;  %1409 = vpow2.f32 %v586_v19 }
 0x39b   : > { %v867_v14 = vmax.f32 %v861_v12, %v866_v13 }
 0x39d   : > { %v868_v15 = vsub.f32 %v861_v12, %v867_v14  ;;  %885 = vst.msk [vmem:[#allocation3 + $0x18] sm:$0xff] %vm460_vm5, %v867_v14  ;;  %873 = vperm.xlu1 %1400, %v867_v14  }
 0x39f   : > { %v869_v46 = vmul.f32 1.442695, %v868_v15 }
 0x3a1   : > { %747 = vrot.lane.b32.xlu1 %v1242_v5, %s1493_s11 }
 0x3a3   : > { %v1692_v16 = vpop.eup %1407 }
 0x3a4   : > { %798 = vperm.xlu0 %1399, %v1692_v16   ;;  %v1410_v20 = vpop.eup %1409 }
 0x3a5   : > { %887 = vrot.lane.b32.xlu1 %v1242_v5, %s1494_s13  ;;  %v596_v56 = vmul.f32 %v1410_v20, %v580_v55 }
 0x3c9   : > { %457 = vadd.xlane.f32.xlu1 %v456_v18 }
 0x3da   : > { %658 = vperm.xlu1 %1400, %v1410_v20  }
 0x40c   : > { %v591_v21 = vpop.permute.xlu1 %590 }
 0x40d   : > { %v593_v22 = vsub.f32 %v576_v47, %v591_v21  ;;  %v863_v21 = vld [vmem:[#allocation4 + $0x18] sm:$0xff] }
 0x40f   : > { %v594_v23 = vmul.f32 1.442695, %v593_v22 }
 0x410   : > { %v608_v24 = vpop.permute.xlu1 %607 }
 0x411   : > { %1411 = vpow2.f32 %v594_v23  ;;  %v613_v25 = vsel %vm467_vm6, %v608_v24, 0 }
 0x412   : > { %1292 = vmatpush3.bf16.msra.mxu0 %v613_v25 }
 0x413   : > { %1303 = vmatprep.subr.bf16.mxu0 %v1489_v3 }
 0x414   : > { %v734_v26 = vpop.permute.xlu0 %733 }
 0x415   : > { %v736_v27 = vsub.f32 %v719_v53, %v734_v26 }
 0x417   : > { %v737_v29 = vmul.f32 1.442695, %v736_v27 }
 0x418   : > { %v515_v30 = vpop.permute.xlu0 %514 }
 0x419   : > { %1413 = vpow2.f32 %v737_v29  ;;  %v517_v31 = vmul.f32 %v515_v30, %v511_v28 }
 0x41b   : > { %v1412_v32 = vpop.eup %1411  ;;  %v518_v33 = vadd.f32 %v517_v31, %v1667_v42 }
 0x41c   : > { %v874_v34 = vpop.permute.xlu1 %873  ;;  %v597_v35 = vsel %vm390_vm2, %v1412_v32, 0.0  ;;  %v603_v36 = vpack.c.bf16 %v1412_v32, %v1412_v32 }
 0x41d   : > { %519 = vst.msk [vmem:[#allocation2] sm:$0xff] %vm390_vm2, %v518_v33  ;;  %v876_v37 = vsub.f32 %v1680_v59, %v874_v34  ;;  %598 = vadd.xlane.f32.xlu0 %v597_v35  ;;  %v723_v59 = vld [vmem:[#allocation4 + $0x10] sm:$0xff] }
 0x41e   : > { %1294 = vmatmul.mubr.msk.bf16.vlgmr.msra.gmra.mrb[4].mxu0 %vm390_vm2, %v603_v36  ;;  %v739_v60 = vmul.f32 %v1692_v16, %v723_v59 }
 0x41f   : > { %v877_v38 = vmul.f32 1.442695, %v876_v37  ;;  %1305 = vmatprep.mubr.msk.bf16.mxu0 %vm1490_vm3, %v1489_v3 }
 0x420   : > { %v748_v39 = vpop.permute.xlu1 %747 }
 0x421   : > { %1415 = vpow2.f32 %v877_v38  ;;  %v753_v40 = vsel %vm467_vm6, %v748_v39, 0 }
 0x422   : > { %1304 = vmatpush3.bf16.msra.mxu0 %v753_v40  ;;  %1417 = vpow2.f32 %v869_v46 }
 0x423   : > { %v1414_v41 = vpop.eup %1413  ;;  %1315 = vmatprep.subr.bf16.mxu0 %v1489_v3  ;;  %v799_v54 = vpop.permute.xlu0 %798 }
 0x424   : > { %v740_v42 = vsel %vm390_vm2, %v1414_v41, 0.0  ;;  %v746_v43 = vpack.c.bf16 %v1414_v41, %v1414_v41  ;;  %v888_v44 = vpop.permute.xlu1 %887  ;;  %v655_v13 = vld [vmem:[#allocation2] sm:$0xff] }
 0x425   : > { %741 = vadd.xlane.f32.xlu1 %v740_v42  ;;  %v893_v45 = vsel %vm467_vm6, %v888_v44, 0 }
 0x426   : > { %1306 = vmatmul.mubr.msk.bf16.vlgmr.msra.gmra.mrb[8].mxu0 %vm390_vm2, %v746_v43 }
 0x427   : > { %1316 = vmatpush3.bf16.msra.mxu0 %v893_v45  ;;  %1317 = vmatprep.mubr.msk.bf16.mxu0 %vm1490_vm3, %v1489_v3 }
 0x42b   : > { %v1416_v47 = vpop.eup %1415 }
 0x42c   : > { %v886_v48 = vpack.c.bf16 %v1416_v47, %v1416_v47  ;;  %v1418_v49 = vpop.eup %1417  ;;  %v880_v12 = vsel %vm390_vm2, %v1416_v47, 0.0 }
 0x42d   : > { %v879_v22 = vmul.f32 %v1418_v49, %v863_v21 }
 0x42e   : > { %1318 = vmatmul.mubr.msk.bf16.vlgmr.msra.gmra.mrb[12].mxu0 %vm390_vm2, %v886_v48 }
 0x436   : > { %938 = vperm.xlu1 %1400, %v1418_v49  }
 0x456   : > { %v458_v52 = vpop.xlane.xlu1 %457 }
 0x457   : > { %v459_v53 = vadd.f32 %v458_v52, %v455_v51 }
 0x459   : > { %461 = vst.msk [vmem:[#allocation4] sm:$0xff] %vm460_vm5, %v459_v53 }
 0x45a   : > { %v659_v3 = vpop.permute.xlu1 %658 }
 0x45b   : > { %v661_v14 = vmul.f32 %v659_v3, %v655_v13 }
 0x4aa   : > { %v599_v57 = vpop.xlane.xlu0 %598 }
 0x4ab   : > { %v600_v58 = vadd.f32 %v599_v57, %v596_v56 }
 0x4ad   : > { %601 = vst.msk [vmem:[#allocation4 + $0x8] sm:$0xff] %vm460_vm5, %v600_v58 }
 0x4b2   : > { %v742_v61 = vpop.xlane.xlu1 %741 }
 0x4b3   : > { %v743_v62 = vadd.f32 %v742_v61, %v739_v60 }
 0x4b5   : > { %744 = vst.msk [vmem:[#allocation4 + $0x10] sm:$0xff] %vm460_vm5, %v743_v62 }
 0x4b6   : > { %v939_v26 = vpop.permute.xlu1 %938 }
 0x4f1   : > { %v649_v63 = vpop.f32.mrb[4].mxu0 }
 0x4f2   : > { %663 = vrot.lane.b32.xlu0 %v649_v63, %s1495_s14  ;;  %v1295_v0 = vpop.f32.mrb[5].mxu0 }
 0x4f3   : > { %v652_v1 = vpop.f32.mrb[6].mxu0 }
 0x4f4   : > { %v1296_v2 = vpop.f32.mrb[7].mxu0 }
 0x4f9   : > { %v789_v4 = vpop.f32.mrb[8].mxu0 }
 0x4fa   : > { %803 = vrot.lane.b32.xlu0 %v789_v4, %s1496_s15  ;;  %v1307_v5 = vpop.f32.mrb[9].mxu0 }
 0x4fb   : > { %v792_v6 = vpop.f32.mrb[10].mxu0 }
 0x4fc   : > { %v1308_v7 = vpop.f32.mrb[11].mxu0 }
 0x501   : > { %v929_v8 = vpop.f32.mrb[12].mxu0 }
 0x502   : > { %v1319_v9 = vpop.f32.mrb[13].mxu0 }
 0x503   : > { %v932_v10 = vpop.f32.mrb[14].mxu0 }
 0x504   : > { %v1320_v11 = vpop.f32.mrb[15].mxu0 }
 0x519   : > { %881 = vadd.xlane.f32.xlu0 %v880_v12 }
 0x52f   : > { %943 = vrot.lane.b32.xlu0 %v929_v8, %s1497_s17 }
 0x564   : > { %v664_v15 = vpop.permute.xlu0 %663 }
 0x565   : > { %v666_v16 = vadd.f32 %v664_v15, %v661_v14 }
 0x567   : > { %668 = vst.msk [vmem:[#allocation2] sm:$0xff] %vm667_vm7, %v666_v16 }
 0x56c   : > { %v804_v19 = vpop.permute.xlu0 %803 }
 0x56e   : > { %v795_v17 = vld [vmem:[#allocation2] sm:$0xff] }
 0x56f   : > { %v801_v18 = vmul.f32 %v799_v54, %v795_v17 }
 0x571   : > { %v806_v20 = vadd.f32 %v804_v19, %v801_v18 }
 0x573   : > { %808 = vst.msk [vmem:[#allocation2] sm:$0xff] %vm807_vm8, %v806_v20 }
 0x57a   : > { %v935_v24 = vld [vmem:[#allocation2] sm:$0xff] }
 0x57b   : > { %v941_v27 = vmul.f32 %v939_v26, %v935_v24 }
 0x5a6   : > { %v882_v23 = vpop.xlane.xlu0 %881 }
 0x5a7   : > { %v883_v25 = vadd.f32 %v882_v23, %v879_v22 }
 0x5a9   : > { %884 = vst.msk [vmem:[#allocation4 + $0x18] sm:$0xff] %vm460_vm5, %v883_v25 }
 0x5aa   : > { %v944_v28 = vpop.permute.xlu0 %943 }
 0x5ab   : > { %v946_v29 = vadd.f32 %v944_v28, %v941_v27 }
 0x5ad   : > { %948 = vst.msk [vmem:[#allocation2] sm:$0xff] %vm947_vm9, %v946_v29 }
 0x5ae PF: > { %p1248_p11 = scmp.ne.s32.totalorder %s1461_s18, %s1465_s19 }
 0x5af   : > { %v953_v30 = vld [vmem:[#allocation4] sm:$0xff] (!%p1248_p11)  ;;  %v965_v31 = vld [vmem:[#allocation4 + $0x8] sm:$0xff] (!%p1248_p11)  ;;  %v977_v32 = vld [vmem:[#allocation4 + $0x10] sm:$0xff] (!%p1248_p11)  ;;  %v1498_v33 = vmov (!%p1248_p11), 0   ;;  %vm1016_vm10 = vcmask (!%p1248_p11), 261120   ;;  %v1499_v40 = vmov (!%p1248_p11), 0.0  }
 0x5b0   : > { %952 = sbr.rel (%p1248_p11) target bundleno = 1854 (0x73e), region = 52  ;;  %1419 = vset.pattern.permute.xlu0 (!%p1248_p11), %v1498_v33  ;;  %1423 = vrcp.f32 (!%p1248_p11), %v953_v30  ;;  %1420 = vset.pattern.permute.xlu1 (!%p1248_p11), %v1498_v33  ;;  %v989_v34 = vld [vmem:[#allocation4 + $0x18] sm:$0xff] (!%p1248_p11)  ;;  %v1422_v42 = vld [vmem:[%s1768_s4 + $0x8] sm:$0xff] (!%p1248_p11)   ;;  %vm1500_vm11 = vmmov (!%p1248_p11), 0   ;;  %vm962_vm12 = vcmask (!%p1248_p11), 64512   ;;  %vm974_vm13 = vcmask (!%p1248_p11), 130112  }
 0x5b1   : > { %1425 = vrcp.f32 (!%p1248_p11), %v965_v31  ;;  %v1421_v39 = vld [vmem:[%s1768_s4] sm:$0xff] (!%p1248_p11)   ;;  %1321 = vmatprep.subr.bf16.mxu0 (!%p1248_p11), %v1499_v40  ;;  %1325 = vmatprep.mubr.msk.bf16.mxu0 (!%p1248_p11), %vm1500_vm11, %v1499_v40  ;;  %v1024_v43 = vsel (!%p1248_p11), %vm1016_vm10, %v1422_v42, 0  ;;  %vm986_vm14 = vcmask (!%p1248_p11), 195712   ;;  %vm998_vm15 = vcmask (!%p1248_p11), 261312  }
 0x5b2   : > { %1427 = vrcp.f32 (!%p1248_p11), %v977_v32  ;;  %v1021_v41 = vsel (!%p1248_p11), %vm1016_vm10, %v1421_v39, 0  ;;  %v1066_v58 = vld [vmem:[%s347_s12] sm:$0xf] (!%p1248_p11)  ;;  %vm1070_vm0 = vcmask (!%p1248_p11), 257024  }
 0x5b3   : > { %1429 = vrcp.f32 (!%p1248_p11), %v989_v34  ;;  %1322 = vmatpush3.bf16.xpose.msra.mxu0 (!%p1248_p11), %v1021_v41  ;;  %v1067_v3 = vunpack.c.l.bf16 (!%p1248_p11), %v1066_v58 }
 0x5b4   : > { %1323 = vmatprep.subr.bf16.mxu0 (!%p1248_p11), %v1499_v40  ;;  %v955_v44 = vld [vmem:[#allocation2] sm:$0xff] (!%p1248_p11) }
 0x5ba   : > { %v1424_v35 = vpop.eup %1423 }
 0x5bb   : > { %v1426_v36 = vpop.eup %1425  ;;  %958 = vperm.xlu0 %1419, %v1424_v35   ;;  %1324 = vmatpush3.bf16.xpose.msra.mxu0 %v1024_v43 }
 0x5bc   : > { %v1428_v37 = vpop.eup %1427 }
 0x5bd   : > { %982 = vperm.xlu1 %1420, %v1428_v37   ;;  %v1430_v38 = vpop.eup %1429 }
 0x5bf   : > { %970 = vperm.xlu0 %1419, %v1426_v36  }
 0x5c1   : > { %994 = vperm.xlu1 %1420, %v1430_v38  }
 0x63a   : > { %v959_v45 = vpop.permute.xlu0 %958 }
 0x63b   : > { %v961_v46 = vmul.f32 %v959_v45, %v955_v44 }
 0x63c   : > { %v983_v50 = vpop.permute.xlu1 %982 }
 0x63d   : > { %963 = vst.msk [vmem:[#allocation2] sm:$0xff] %vm962_vm12, %v961_v46 }
 0x63e   : > { %v971_v48 = vpop.permute.xlu0 %970 }
 0x640   : > { %v995_v53 = vpop.permute.xlu1 %994 }
 0x644   : > { %v967_v47 = vld [vmem:[#allocation2] sm:$0xff] }
 0x645   : > { %v973_v49 = vmul.f32 %v971_v48, %v967_v47 }
 0x647   : > { %975 = vst.msk [vmem:[#allocation2] sm:$0xff] %vm974_vm13, %v973_v49 }
 0x64e   : > { %v979_v51 = vld [vmem:[#allocation2] sm:$0xff] }
 0x64f   : > { %v985_v52 = vmul.f32 %v983_v50, %v979_v51 }
 0x651   : > { %987 = vst.msk [vmem:[#allocation2] sm:$0xff] %vm986_vm14, %v985_v52 }
 0x658   : > { %v991_v54 = vld [vmem:[#allocation2] sm:$0xff] }
 0x659   : > { %v997_v55 = vmul.f32 %v995_v53, %v991_v54 }
 0x65b   : > { %999 = vst.msk [vmem:[#allocation2] sm:$0xff] %vm998_vm15, %v997_v55 }
 0x662   : > { %v1000_v56 = vld [vmem:[#allocation2] sm:$0xff] }
 0x663   : > { %v1001_v57 = vpack.c.bf16 %v1000_v56, %v1000_v56 }
 0x665   : > { %1326 = vmatmul.mubr.msk.bf16.vlgmr.msra.gmra.mrb[0].mxu0 %vm1016_vm10, %v1001_v57 }
 0x738   : > { %v1060_v59 = vpop.f32.mrb[0].mxu0 }
 0x739   : > { %v1068_v60 = vadd.f32 %v1067_v3, %v1060_v59  ;;  %v1327_v61 = vpop.f32.mrb[1].mxu0 }
 0x73a   : > { %v1063_v62 = vpop.f32.mrb[2].mxu0 }
 0x73b   : > { %v1069_v63 = vpack.c.bf16 %v1068_v60, %v1068_v60  ;;  %v1328_v0 = vpop.f32.mrb[3].mxu0 }
 0x73d   : > { %1071 = vst.msk [vmem:[%s355_s16] sm:$0xf] %vm1070_vm0, %v1069_v63 }
 0x73e PF: > { %s15_s24 = sadd.s32 1, %s1485_s24   ;;  %s1772_s12 = sld [smem:[#allocation5_spill]] }
 0x73f   : > { %p12_p12 = scmp.ge.s32.totalorder %s15_s24, 10   ;;  %s1773_s27 = sld [smem:[#allocation6_spill]] }
 0x740   : > { %s1774_s18 = smov %s1473_s21  ;;  %s1775_s19 = smov %s1477_s22 }
 0x741   : > { %s1776_s20 = smov %s1481_s23  ;;  %s1777_s21 = smov %s1781_s25 }
 0x742   :  { %14 = sbr.rel (!%p12_p12) target bundleno = 4 (0x4), region = 100 }
 0x744   : > { %s1778_s22 = smov %s1772_s12 }
 0x745   : > { %s1779_s23 = smov %s1773_s27 }

</bundles_post_ra>
